<compile_context>
chip_gen: v7x
topology: tpu7x:2x2x1
jax: 0.10.0
libtpu: 0.0.40
codegen_flags: <defaults>
</compile_context>

<pallas_src>
import functools

import jax
import jax.numpy as jnp
from jax.experimental import pallas as pl
from jax.experimental.pallas import tpu as pltpu


def _round_up(x: int, m: int) -> int:
    return ((x + m - 1) // m) * m


def _slab_rows(d_in: int, f: int):
    """Row offsets of (W1p, b1p, W2p) inside the packed parameter slab."""
    r_b1 = _round_up(d_in, 8)   # b1 row, sublane-aligned after W1p
    r_w2 = r_b1 + 8             # W2p rows, sublane-aligned
    n_rows = r_w2 + _round_up(2 * f, 8)
    return r_b1, r_w2, n_rows


def _tensorcores_per_chip() -> int:
    """Best-effort TensorCore count per chip (drives grid/tile choice)."""
    try:
        kind = jax.devices()[0].device_kind.lower()
    except Exception:  # pragma: no cover - defensive
        return 1
    # v7x (and megacore v4/v5p) expose 2 TensorCores to a parallel grid axis.
    if any(tag in kind for tag in ("7", "v4", "v5p")):
        return 2
    return 1


def _pick_tile(n: int, cores: int, tile_n=None) -> int:
    """Node-tile size (rows per grid step)."""
    if tile_n is not None:
        tile = int(tile_n)
    elif cores >= 2 and n > 256:
        # Keep >= 2 grid steps so every TensorCore gets a node tile.
        tile = min(1024, _round_up(pl.cdiv(n, cores), 128))
    else:
        # Single-TC chips: as few grid steps as possible (per-step ~0.35us).
        tile = 1024
    tile = max(8, min(tile, _round_up(n, 8)))
    if tile >= n:
        tile = n  # single block == full array dims (always a legal BlockSpec)
    return tile


def _latency_encoder_kernel(x_ref, p_ref, mu_ref, lv_ref):
    """One node tile of the MLP in natural [nodes, features] layout.

    x_ref:  (TN, Din)      embedding tile
    p_ref:  (R, 2F)        packed parameter slab:
                             rows [0, Din)        -> W1 (cols [0, F); rest 0)
                             row  r_b1            -> b1 (cols [0, F)), col F = 1
                             rows [r_w2, r_w2+2F) -> W2 (rows [0, F)), row F = b2
    mu_ref: (TN, F)        output: z_latency_mu
    lv_ref: (TN, F)        output: tanh(z_latency_logvar)
    """
    d_in = x_ref.shape[-1]
    f = mu_ref.shape[-1]
    r_b1, r_w2, _ = _slab_rows(d_in, f)

    w1p = p_ref[0:d_in, :]               # (Din, 2F)
    b1p = p_ref[r_b1:r_b1 + 1, :]        # (1, 2F); col F == 1.0 (b2 hook)
    w2p = p_ref[r_w2:r_w2 + 2 * f, :]    # (2F, 2F); row F holds b2

    x = x_ref[...]
    # h[:, :F] = relu(x @ w1 + b1); h[:, F] == 1; h[:, F+1:] == 0
    h = jnp.maximum(
        jnp.dot(x, w1p, preferred_element_type=jnp.float32) + b1p, 0.0)
    # y = relu(x @ w1 + b1) @ w2 + b2   (b2 via the ones column)
    y = jnp.dot(h, w2p, preferred_element_type=jnp.float32)

    mu_ref[...] = y[:, :f].astype(mu_ref.dtype)
    lv_ref[...] = jnp.tanh(y[:, f:]).astype(lv_ref.dtype)


@functools.partial(jax.jit, static_argnames=("tile",))
def _tree_lstm_latency_encoder_impl(embed, w1, b1, w2, b2, *, tile):
    n, d_in = embed.shape
    f = w1.shape[1]
    two_f = 2 * f
    assert w2.shape == (f, two_f)
    assert b1.shape == (f,) and b2.shape == (two_f,)
    dtype = embed.dtype

    r_b1, r_w2, n_rows = _slab_rows(d_in, f)

    # ---- tiny (<= 8 KiB) packed parameter slab; single invariant DMA stream.
    slab = jnp.zeros((n_rows, two_f), dtype)
    slab = slab.at[:d_in, :f].set(w1.astype(dtype))
    slab = slab.at[r_b1, :f].set(b1.astype(dtype))
    slab = slab.at[r_b1, f].set(jnp.asarray(1.0, dtype))       # ones column
    slab = slab.at[r_w2:r_w2 + f, :].set(w2.astype(dtype))
    slab = slab.at[r_w2 + f, :].set(b2.astype(dtype))          # b2 row

    grid = (pl.cdiv(n, tile),)

    cost = pl.CostEstimate(
        flops=int(2 * n * (d_in * f + f * two_f)),
        transcendentals=int(n * f),
        bytes_accessed=int(4 * (n * d_in + 2 * n * f + n_rows * two_f)),
    )

    mu, lv = pl.pallas_call(
        _latency_encoder_kernel,
        out_shape=(
            jax.ShapeDtypeStruct((n, f), dtype),   # z_latency_mu
            jax.ShapeDtypeStruct((n, f), dtype),   # tanh(z_latency_logvar)
        ),
        grid_spec=pl.GridSpec(
            grid=grid,
            in_specs=[
                pl.BlockSpec((tile, d_in), lambda i: (i, 0)),      # embeddings
                pl.BlockSpec((n_rows, two_f), lambda i: (0, 0)),   # params (invariant)
            ],
            out_specs=[
                pl.BlockSpec((tile, f), lambda i: (i, 0)),
                pl.BlockSpec((tile, f), lambda i: (i, 0)),
            ],
        ),
        compiler_params=pltpu.CompilerParams(
            dimension_semantics=("parallel",),
        ),
        cost_estimate=cost,
    )(embed, slab)

    return mu, lv


def tree_lstm_latency_encoder(embed, w1, b1, w2, b2, *, tile_n=None):
    """Pallas implementation of TreeLSTMLatencyEncoder.forward.

    embed: [N, 3*E] float32
    w1:    [3*E, F], b1: [F]      (x @ w1 + b1 convention)
    w2:    [F, 2*F], b2: [2*F]
    returns (mu [N, F], logvar [N, F])
    """
    # TODO(synk): the DGLGraph argument `g` is unused by the forward pass and
    #             is therefore omitted from the kernel interface.
    n = embed.shape[0]
    tile = _pick_tile(n, _tensorcores_per_chip(), tile_n)
    return _tree_lstm_latency_encoder_impl(embed, w1, b1, w2, b2, tile=tile)


def _reference(embed, w1, b1, w2, b2):
    h = jnp.maximum(embed @ w1 + b1, 0.0)
    y = h @ w2 + b2
    f = w1.shape[1]
    mu, logvar = y[:, :f], y[:, f:]
    return mu, jnp.tanh(logvar)


if __name__ == "__main__":
    # Small, deterministic config:
    #   embedding_size = 8        -> input dim = 3 * 8 = 24
    #   latency_feature_size = 16 -> hidden = 16, MLP output = 32 (split 16/16)
    #   N (number of graph nodes) = 1000 (not tile-divisible: exercises the
    #   masked ragged edge block / per-generation tile choice).
    embedding_size = 8
    latency_feature_size = 16
    n_nodes = 1000
    d_in = embedding_size * 3
    f = latency_feature_size

    key = jax.random.PRNGKey(0)
    k_embed, k_w1, k_b1, k_w2, k_b2 = jax.random.split(key, 5)

    embed = jax.random.normal(k_embed, (n_nodes, d_in), dtype=jnp.float32)

    # Deterministic parameter init (scaled normal, ~nn.Linear magnitude).
    w1 = jax.random.normal(k_w1, (d_in, f), dtype=jnp.float32) / jnp.sqrt(d_in)
    b1 = jax.random.normal(k_b1, (f,), dtype=jnp.float32) * 0.01
    w2 = jax.random.normal(k_w2, (f, 2 * f), dtype=jnp.float32) / jnp.sqrt(f)
    b2 = jax.random.normal(k_b2, (2 * f,), dtype=jnp.float32) * 0.01

    mu, logvar = tree_lstm_latency_encoder(embed, w1, b1, w2, b2)
    jax.block_until_ready((mu, logvar))

    mu_ref, logvar_ref = _reference(embed, w1, b1, w2, b2)
    assert mu.shape == (n_nodes, f) and logvar.shape == (n_nodes, f)
    assert jnp.allclose(mu, mu_ref, atol=1e-4, rtol=1e-4)
    assert jnp.allclose(logvar, logvar_ref, atol=1e-4, rtol=1e-4)

    print("KERNEL_OK")
</pallas_src>

<mosaic_0001>
module attributes {stable_mosaic.version = 11 : i64} {
  func.func @_latency_encoder_kernel(%arg0: i32, %arg1: memref<1000x24xf32, #tpu.memory_space<vmem>>, %arg2: memref<64x32xf32, #tpu.memory_space<vmem>>, %arg3: memref<1000x16xf32, #tpu.memory_space<vmem>>, %arg4: memref<1000x16xf32, #tpu.memory_space<vmem>>) attributes {dimension_semantics = [#tpu.dimension_semantics<parallel>], iteration_bounds = array<i64: 1>, scalar_prefetch = 0 : i64, scratch_operands = 0 : i64, tpu.core_type = #tpu.core_type<tc>, window_params = [{transform_indices = @transform_0, window_bounds = array<i64: 1000, 24>}, {pipeline_mode = #tpu.pipeline_mode<synchronous>, transform_indices = @transform_1, window_bounds = array<i64: 64, 32>}, {transform_indices = @transform_2, window_bounds = array<i64: 1000, 16>}, {transform_indices = @transform_3, window_bounds = array<i64: 1000, 16>}]} {
    %c0 = arith.constant 0 : index
    %c0_0 = arith.constant 0 : index
    %0 = vector.load %arg2[%c0, %c0_0] : memref<64x32xf32, #tpu.memory_space<vmem>>, vector<24x32xf32>
    %c24 = arith.constant 24 : index
    %c0_1 = arith.constant 0 : index
    %1 = vector.load %arg2[%c24, %c0_1] : memref<64x32xf32, #tpu.memory_space<vmem>>, vector<1x32xf32>
    %c32 = arith.constant 32 : index
    %c0_2 = arith.constant 0 : index
    %2 = vector.load %arg2[%c32, %c0_2] : memref<64x32xf32, #tpu.memory_space<vmem>>, vector<32x32xf32>
    %c0_3 = arith.constant 0 : index
    %c0_4 = arith.constant 0 : index
    %3 = vector.load %arg1[%c0_3, %c0_4] : memref<1000x24xf32, #tpu.memory_space<vmem>>, vector<1000x24xf32>
    %cst = arith.constant dense<0.000000e+00> : vector<1000x32xf32>
    %4 = tpu.matmul %3, %0, %cst {dimension_numbers = #tpu.dot_dimension_numbers<[1], [0], [0], [1], [0, 0, 1, 1], [], []>} : vector<1000x24xf32>, vector<24x32xf32>, vector<1000x32xf32> -> vector<1000x32xf32>
    %5 = vector.broadcast %1 : vector<1x32xf32> to vector<1000x32xf32>
    %6 = arith.addf %4, %5 : vector<1000x32xf32>
    %cst_5 = arith.constant 0.000000e+00 : f32
    %7 = vector.broadcast %cst_5 : f32 to vector<1000x32xf32>
    %8 = arith.maximumf %6, %7 : vector<1000x32xf32>
    %cst_6 = arith.constant dense<0.000000e+00> : vector<1000x32xf32>
    %9 = tpu.matmul %8, %2, %cst_6 {dimension_numbers = #tpu.dot_dimension_numbers<[1], [0], [0], [1], [0, 0, 1, 1], [], []>} : vector<1000x32xf32>, vector<32x32xf32>, vector<1000x32xf32> -> vector<1000x32xf32>
    %10 = vector.extract_strided_slice %9 {offsets = [0, 0], sizes = [1000, 16], strides = [1, 1]} : vector<1000x32xf32> to vector<1000x16xf32>
    %c0_7 = arith.constant 0 : index
    %c0_8 = arith.constant 0 : index
    %11 = vector.load %arg3[%c0_7, %c0_8] : memref<1000x16xf32, #tpu.memory_space<vmem>>, vector<1000x16xf32>
    tpu.vector_store %arg3[%c0_7, %c0_8], %10 {strides = array<i32>} : memref<1000x16xf32, #tpu.memory_space<vmem>>, vector<1000x16xf32>,
    %12 = vector.extract_strided_slice %9 {offsets = [0, 16], sizes = [1000, 16], strides = [1, 1]} : vector<1000x32xf32> to vector<1000x16xf32>
    %13 = math.tanh %12 : vector<1000x16xf32>
    %c0_9 = arith.constant 0 : index
    %c0_10 = arith.constant 0 : index
    %14 = vector.load %arg4[%c0_9, %c0_10] : memref<1000x16xf32, #tpu.memory_space<vmem>>, vector<1000x16xf32>
    tpu.vector_store %arg4[%c0_9, %c0_10], %13 {strides = array<i32>} : memref<1000x16xf32, #tpu.memory_space<vmem>>, vector<1000x16xf32>,
    return
  }
  func.func @transform_0(%arg0: i32) -> (i32, i32) {
    %c0_i32 = arith.constant 0 : i32
    %c0_i32_0 = arith.constant 0 : i32
    return %arg0, %c0_i32 : i32, i32
  }
  func.func @transform_1(%arg0: i32) -> (i32, i32) {
    %c0_i32 = arith.constant 0 : i32
    %c0_i32_0 = arith.constant 0 : i32
    %c0_i32_1 = arith.constant 0 : i32
    return %c0_i32, %c0_i32_0 : i32, i32
  }
  func.func @transform_2(%arg0: i32) -> (i32, i32) {
    %c0_i32 = arith.constant 0 : i32
    %c0_i32_0 = arith.constant 0 : i32
    return %arg0, %c0_i32 : i32, i32
  }
  func.func @transform_3(%arg0: i32) -> (i32, i32) {
    %c0_i32 = arith.constant 0 : i32
    %c0_i32_0 = arith.constant 0 : i32
    return %arg0, %c0_i32 : i32, i32
  }
}

</mosaic_0001>

<bundles_post_ra>
// kernel: _tree_lstm_latency_encoder_impl.1
= control target key start
LH: loop header
LB: loop body
LE: loop exit
PB: predicated region body
PF: predicated region fallthrough
CT: control target
= control target key end

     0   :  { %v4828_v0 = vmov 0.0|0.0   ;;  %vm4829_vm0 = vmmov 0   ;;  %v4830_v3 = vmov 0.0   ;;  %vm150_vm1 = vcmask 195584   ;;  %s4831_s15 = smov 112   ;;  %s7267_s1 = inlined_call_operand.vmem [shape: f32[64,32], index: 1, kind: input, shape index: {}]   ;;  %s7268_s0 = inlined_call_operand.vmem [shape: f32[1000,24], index: 0, kind: input, shape index: {}]   ;;  %s7269_s2 = inlined_call_operand.vmem [shape: f32[1000,16], index: 2, kind: output, shape index: {0}]   ;;  %s7270_s3 = inlined_call_operand.vmem [shape: f32[1000,16], index: 3, kind: output, shape index: {1}]  }
   0x1   :  { %4563 = vmatprep.subr.bf16.mxu0 %v4828_v0  ;;  %v13_v1 = vld [vmem:[%s7267_s1] sm:$0xff]  ;;  %v14_v2 = vld [vmem:[%s7267_s1 + $0x8] sm:$0xff]  ;;  %3805 = vmatprep.mubr.msk.f32.mxu0 %vm4829_vm0, %v4830_v3  ;;  %v15_v5 = vld [vmem:[%s7267_s1 + $0x10] sm:$0xff]  ;;  %vm1341_vm2 = vcmask 261120   ;;  %vm2407_vm3 = vcmask 130048  }
   0x2   :  { %v4564_v4 = vpack.c.bf16 %v14_v2, %v13_v1  ;;  %4566 = vmatprep.subr.bf16.mxu1 %v4828_v0  ;;  %4188 = vmatprep.mubr.msk.f32.mxu1 %vm4829_vm0, %v4830_v3  ;;  %v21_v6 = vld [vmem:[%s7268_s0] sm:$0xff]  ;;  %v22_v7 = vld [vmem:[%s7268_s0 + $0x8] sm:$0xff]  ;;  %v23_v8 = vld [vmem:[%s7268_s0 + $0x10] sm:$0xff] }
   0x3   :  { %v24_v9 = vld [vmem:[%s7268_s0 + $0x18] sm:$0xff]  ;;  %v25_v10 = vld [vmem:[%s7268_s0 + $0x20] sm:$0xff]  ;;  %v26_v11 = vld [vmem:[%s7268_s0 + $0x28] sm:$0xff] }
   0x4   :  { %4565 = vmatpush3.bf16.msra.mxu0 %v4564_v4  ;;  %v27_v12 = vld [vmem:[%s7268_s0 + $0x30] sm:$0xff]  ;;  %v28_v13 = vld [vmem:[%s7268_s0 + $0x38] sm:$0xff]  ;;  %v29_v14 = vld [vmem:[%s7268_s0 + $0x40] sm:$0xff] }
   0x5   :  { %3803 = vmatprep.subr.mxu0 %v4830_v3  ;;  %v30_v15 = vld [vmem:[%s7268_s0 + $0x48] sm:$0xff]  ;;  %v31_v16 = vld [vmem:[%s7268_s0 + $0x50] sm:$0xff]  ;;  %v32_v17 = vld [vmem:[%s7268_s0 + $0x58] sm:$0xff] }
   0x6   :  { %v33_v18 = vld [vmem:[%s7268_s0 + $0x60] sm:$0xff]  ;;  %v34_v19 = vld [vmem:[%s7268_s0 + $0x68] sm:$0xff]  ;;  %v35_v20 = vld [vmem:[%s7268_s0 + $0x70] sm:$0xff] }
   0x7   :  { %v36_v21 = vld [vmem:[%s7268_s0 + $0x78] sm:$0xff]  ;;  %v37_v22 = vld [vmem:[%s7268_s0 + $0x80] sm:$0xff]  ;;  %v38_v23 = vld [vmem:[%s7268_s0 + $0x88] sm:$0xff] }
   0x8   :  { %3804 = vmatpush3.msra.mxu0 %v15_v5  ;;  %v39_v24 = vld [vmem:[%s7268_s0 + $0x90] sm:$0xff]  ;;  %v40_v25 = vld [vmem:[%s7268_s0 + $0x98] sm:$0xff]  ;;  %v41_v26 = vld [vmem:[%s7268_s0 + $0xa0] sm:$0xff] }
   0x9   :  { %3806 = vmatmul.mubr.msk.f32.vlgmr.msra.gmra.mrb[0].mxu0 %vm150_vm1, %v21_v6  ;;  %v17_v27 = vld [vmem:[%s7267_s1 + $0x20] sm:$0xff]  ;;  %v18_v28 = vld [vmem:[%s7267_s1 + $0x28] sm:$0xff]  ;;  %v19_v31 = vld [vmem:[%s7267_s1 + $0x30] sm:$0xff] }
   0xa   :  { %3808 = vmatprep.mubr.msk.f32.mxu0 %vm4829_vm0, %v4830_v3  ;;  %v4567_v29 = vpack.c.bf16 %v18_v28, %v17_v27  ;;  %v42_v30 = vld [vmem:[%s7268_s0 + $0xa8] sm:$0xff]  ;;  %v20_v32 = vld [vmem:[%s7267_s1 + $0x38] sm:$0xff]  ;;  %v43_v34 = vld [vmem:[%s7268_s0 + $0xb0] sm:$0xff] }
   0xb   :  { %v4570_v33 = vpack.c.bf16 %v20_v32, %v19_v31  ;;  %v44_v35 = vld [vmem:[%s7268_s0 + $0xb8] sm:$0xff]  ;;  %v45_v36 = vld [vmem:[%s7268_s0 + $0xc0] sm:$0xff]  ;;  %v46_v37 = vld [vmem:[%s7268_s0 + $0xc8] sm:$0xff] }
   0xc   :  { %4568 = vmatpush3.bf16.msra.mxu1 %v4567_v29  ;;  %v47_v38 = vld [vmem:[%s7268_s0 + $0xd0] sm:$0xff]  ;;  %v48_v39 = vld [vmem:[%s7268_s0 + $0xd8] sm:$0xff]  ;;  %v49_v40 = vld [vmem:[%s7268_s0 + $0xe0] sm:$0xff] }
   0xd   :  { %3809 = vmatmul.mubr.msk.f32.gmra.mrb[2].mxu0 %vm150_vm1, %v22_v7  ;;  %4569 = vmatprep.subr.bf16.mxu1 %v4828_v0  ;;  %v50_v41 = vld [vmem:[%s7268_s0 + $0xe8] sm:$0xff]  ;;  %v51_v42 = vld [vmem:[%s7268_s0 + $0xf0] sm:$0xff]  ;;  %v52_v43 = vld [vmem:[%s7268_s0 + $0xf8] sm:$0xff] }
   0xe   :  { %3811 = vmatprep.mubr.msk.f32.mxu0 %vm4829_vm0, %v4830_v3  ;;  %v53_v44 = vld [vmem:[%s7268_s0 + $0x100] sm:$0xff]  ;;  %v54_v45 = vld [vmem:[%s7268_s0 + $0x108] sm:$0xff]  ;;  %v55_v46 = vld [vmem:[%s7268_s0 + $0x110] sm:$0xff] }
   0xf   :  { %v56_v47 = vld [vmem:[%s7268_s0 + $0x118] sm:$0xff]  ;;  %v57_v48 = vld [vmem:[%s7268_s0 + $0x120] sm:$0xff]  ;;  %v58_v49 = vld [vmem:[%s7268_s0 + $0x128] sm:$0xff] }
  0x10   :  { %4571 = vmatpush3.bf16.msra.mxu1 %v4570_v33  ;;  %v59_v50 = vld [vmem:[%s7268_s0 + $0x130] sm:$0xff]  ;;  %v60_v51 = vld [vmem:[%s7268_s0 + $0x138] sm:$0xff]  ;;  %v61_v52 = vld [vmem:[%s7268_s0 + $0x140] sm:$0xff] }
  0x11   :  { %3812 = vmatmul.mubr.msk.f32.gmra.mrb[4].mxu0 %vm150_vm1, %v23_v8  ;;  %v62_v53 = vld [vmem:[%s7268_s0 + $0x148] sm:$0xff]  ;;  %v63_v54 = vld [vmem:[%s7268_s0 + $0x150] sm:$0xff]  ;;  %v64_v55 = vld [vmem:[%s7268_s0 + $0x158] sm:$0xff] }
  0x12   :  { %3814 = vmatprep.mubr.msk.f32.mxu0 %vm4829_vm0, %v4830_v3  ;;  %v65_v56 = vld [vmem:[%s7268_s0 + $0x160] sm:$0xff]  ;;  %v66_v57 = vld [vmem:[%s7268_s0 + $0x168] sm:$0xff]  ;;  %v67_v58 = vld [vmem:[%s7268_s0 + $0x170] sm:$0xff] }
  0x13   :  { %v68_v59 = vld [vmem:[%s7268_s0 + $0x178] sm:$0xff]  ;;  %v69_v60 = vld [vmem:[%s7268_s0 + $0x180] sm:$0xff]  ;;  %v70_v61 = vld [vmem:[%s7268_s0 + $0x188] sm:$0xff] }
  0x14   :  { %v71_v62 = vld [vmem:[%s7268_s0 + $0x190] sm:$0xff]  ;;  %v72_v63 = vld [vmem:[%s7268_s0 + $0x198] sm:$0xff]  ;;  %v73_v0 = vld [vmem:[%s7268_s0 + $0x1a0] sm:$0xff] }
  0x15   :  { %3815 = vmatmul.mubr.msk.f32.gmra.mrb[6].mxu0 %vm150_vm1, %v24_v9  ;;  %v5200_v1 = vld [vmem:[%s7267_s1 + $0x18] ss:$0 sm:$0xff]  ;;  %v74_v2 = vld [vmem:[%s7268_s0 + $0x1a8] sm:$0xff]  ;;  %v75_v7 = vld [vmem:[%s7268_s0 + $0x1b0] sm:$0xff] }
  0x16   :  { %3817 = vmatprep.mubr.msk.f32.mxu0 %vm4829_vm0, %v4830_v3  ;;  %v79_v27 = vld [vmem:[%s7268_s0 + $0x1d0] sm:$0xff]  ;;  %v80_v32 = vld [vmem:[%s7268_s0 + $0x1d8] sm:$0xff] }
  0x19   :  { %3818 = vmatmul.mubr.msk.f32.gmra.mrb[8].mxu0 %vm150_vm1, %v25_v10 }
  0x1a   :  { %3820 = vmatprep.mubr.msk.f32.mxu0 %vm4829_vm0, %v4830_v3 }
  0x1d   :  { %3821 = vmatmul.mubr.msk.f32.gmra.mrb[10].mxu0 %vm150_vm1, %v26_v11 }
  0x1e   :  { %3823 = vmatprep.mubr.msk.f32.mxu0 %vm4829_vm0, %v4830_v3 }
  0x21   :  { %3824 = vmatmul.mubr.msk.f32.gmra.mrb[12].mxu0 %vm150_vm1, %v27_v12  ;;  %v76_v12 = vld [vmem:[%s7268_s0 + $0x1b8] sm:$0xff] }
  0x22   :  { %3826 = vmatprep.mubr.msk.f32.mxu0 %vm4829_vm0, %v4830_v3 }
  0x25   :  { %3827 = vmatmul.mubr.msk.f32.gmra.mrb[14].mxu0 %vm150_vm1, %v28_v13 }
  0x26   :  { %3829 = vmatprep.mubr.msk.f32.mxu0 %vm4829_vm0, %v4830_v3 }
  0x29   :  { %3830 = vmatmul.mubr.msk.f32.gmra.mrb[16].mxu0 %vm150_vm1, %v29_v14 }
  0x2a   :  { %3832 = vmatprep.mubr.msk.f32.mxu0 %vm4829_vm0, %v4830_v3 }
  0x2d   :  { %3833 = vmatmul.mubr.msk.f32.gmra.mrb[18].mxu0 %vm150_vm1, %v30_v15 }
  0x2e   :  { %3835 = vmatprep.mubr.msk.f32.mxu0 %vm4829_vm0, %v4830_v3 }
  0x31   :  { %3836 = vmatmul.mubr.msk.f32.gmra.mrb[20].mxu0 %vm150_vm1, %v31_v16 }
  0x32   :  { %3838 = vmatprep.mubr.msk.f32.mxu0 %vm4829_vm0, %v4830_v3 }
  0x35   :  { %3839 = vmatmul.mubr.msk.f32.gmra.mrb[22].mxu0 %vm150_vm1, %v32_v17  ;;  %v77_v17 = vld [vmem:[%s7268_s0 + $0x1c0] sm:$0xff] }
  0x36   :  { %3841 = vmatprep.mubr.msk.f32.mxu0 %vm4829_vm0, %v4830_v3 }
  0x39   :  { %3842 = vmatmul.mubr.msk.f32.gmra.mrb[24].mxu0 %vm150_vm1, %v33_v18 }
  0x3a   :  { %3844 = vmatprep.mubr.msk.f32.mxu0 %vm4829_vm0, %v4830_v3 }
  0x3d   :  { %3845 = vmatmul.mubr.msk.f32.gmra.mrb[26].mxu0 %vm150_vm1, %v34_v19 }
  0x3e   :  { %3847 = vmatprep.mubr.msk.f32.mxu0 %vm4829_vm0, %v4830_v3 }
  0x41   :  { %3848 = vmatmul.mubr.msk.f32.gmra.mrb[28].mxu0 %vm150_vm1, %v35_v20 }
  0x42   :  { %3850 = vmatprep.mubr.msk.f32.mxu0 %vm4829_vm0, %v4830_v3 }
  0x45   :  { %3851 = vmatmul.mubr.msk.f32.gmra.mrb[30].mxu0 %vm150_vm1, %v36_v21 }
  0x46   :  { %3853 = vmatprep.mubr.msk.f32.mxu0 %vm4829_vm0, %v4830_v3 }
  0x49   :  { %3854 = vmatmul.mubr.msk.f32.gmra.mrb[32].mxu0 %vm150_vm1, %v37_v22  ;;  %v78_v22 = vld [vmem:[%s7268_s0 + $0x1c8] sm:$0xff] }
  0x4a   :  { %3856 = vmatprep.mubr.msk.f32.mxu0 %vm4829_vm0, %v4830_v3 }
  0x4d   :  { %3857 = vmatmul.mubr.msk.f32.gmra.mrb[34].mxu0 %vm150_vm1, %v38_v23 }
  0x4e   :  { %3859 = vmatprep.mubr.msk.f32.mxu0 %vm4829_vm0, %v4830_v3 }
  0x51   :  { %3860 = vmatmul.mubr.msk.f32.gmra.mrb[36].mxu0 %vm150_vm1, %v39_v24 }
  0x52   :  { %3862 = vmatprep.mubr.msk.f32.mxu0 %vm4829_vm0, %v4830_v3 }
  0x55   :  { %3863 = vmatmul.mubr.msk.f32.gmra.mrb[38].mxu0 %vm150_vm1, %v40_v25 }
  0x56   :  { %3865 = vmatprep.mubr.msk.f32.mxu0 %vm4829_vm0, %v4830_v3 }
  0x59   :  { %3866 = vmatmul.mubr.msk.f32.gmra.mrb[40].mxu0 %vm150_vm1, %v41_v26 }
  0x5a   :  { %3868 = vmatprep.mubr.msk.f32.mxu0 %vm4829_vm0, %v4830_v3 }
  0x5d   :  { %3869 = vmatmul.mubr.msk.f32.gmra.mrb[42].mxu0 %vm150_vm1, %v42_v30 }
  0x5e   :  { %3871 = vmatprep.mubr.msk.f32.mxu0 %vm4829_vm0, %v4830_v3 }
  0x61   :  { %3872 = vmatmul.mubr.msk.f32.gmra.mrb[44].mxu0 %vm150_vm1, %v43_v34 }
  0x62   :  { %3874 = vmatprep.mubr.msk.f32.mxu0 %vm4829_vm0, %v4830_v3 }
  0x65   :  { %3875 = vmatmul.mubr.msk.f32.gmra.mrb[46].mxu0 %vm150_vm1, %v44_v35 }
  0x66   :  { %3877 = vmatprep.mubr.msk.f32.mxu0 %vm4829_vm0, %v4830_v3 }
  0x69   :  { %3878 = vmatmul.mubr.msk.f32.gmra.mrb[48].mxu0 %vm150_vm1, %v45_v36 }
  0x6a   :  { %3880 = vmatprep.mubr.msk.f32.mxu0 %vm4829_vm0, %v4830_v3 }
  0x6d   :  { %3881 = vmatmul.mubr.msk.f32.gmra.mrb[50].mxu0 %vm150_vm1, %v46_v37  ;;  %v81_v37 = vld [vmem:[%s7268_s0 + $0x1e0] sm:$0xff] }
  0x6e   :  { %3883 = vmatprep.mubr.msk.f32.mxu0 %vm4829_vm0, %v4830_v3 }
  0x71   :  { %3884 = vmatmul.mubr.msk.f32.gmra.mrb[52].mxu0 %vm150_vm1, %v47_v38 }
  0x72   :  { %3886 = vmatprep.mubr.msk.f32.mxu0 %vm4829_vm0, %v4830_v3 }
  0x75   :  { %3887 = vmatmul.mubr.msk.f32.gmra.mrb[54].mxu0 %vm150_vm1, %v48_v39 }
  0x76   :  { %3889 = vmatprep.mubr.msk.f32.mxu0 %vm4829_vm0, %v4830_v3 }
  0x79   :  { %3890 = vmatmul.mubr.msk.f32.gmra.mrb[56].mxu0 %vm150_vm1, %v49_v40 }
  0x7a   :  { %3892 = vmatprep.mubr.msk.f32.mxu0 %vm4829_vm0, %v4830_v3 }
  0x7d   :  { %3893 = vmatmul.mubr.msk.f32.gmra.mrb[58].mxu0 %vm150_vm1, %v50_v41 }
  0x7e   :  { %3895 = vmatprep.mubr.msk.f32.mxu0 %vm4829_vm0, %v4830_v3 }
  0x81   :  { %3896 = vmatmul.mubr.msk.f32.gmra.mrb[60].mxu0 %vm150_vm1, %v51_v42  ;;  %v82_v42 = vld [vmem:[%s7268_s0 + $0x1e8] sm:$0xff] }
  0x82   :  { %3898 = vmatprep.mubr.msk.f32.mxu0 %vm4829_vm0, %v4830_v3 }
  0x85   :  { %3899 = vmatmul.mubr.msk.f32.gmra.mrb[62].mxu0 %vm150_vm1, %v52_v43 }
  0x86   :  { %3901 = vmatprep.mubr.msk.f32.mxu0 %vm4829_vm0, %v4830_v3 }
  0x89   :  { %3902 = vmatmul.mubr.msk.f32.gmra.mrb[64].mxu0 %vm150_vm1, %v53_v44 }
  0x8a   :  { %3904 = vmatprep.mubr.msk.f32.mxu0 %vm4829_vm0, %v4830_v3 }
  0x8d   :  { %3905 = vmatmul.mubr.msk.f32.gmra.mrb[66].mxu0 %vm150_vm1, %v54_v45 }
  0x8e   :  { %3907 = vmatprep.mubr.msk.f32.mxu0 %vm4829_vm0, %v4830_v3 }
  0x91   :  { %3908 = vmatmul.mubr.msk.f32.gmra.mrb[68].mxu0 %vm150_vm1, %v55_v46 }
  0x92   :  { %3910 = vmatprep.mubr.msk.f32.mxu0 %vm4829_vm0, %v4830_v3 }
  0x95   :  { %3911 = vmatmul.mubr.msk.f32.gmra.mrb[70].mxu0 %vm150_vm1, %v56_v47  ;;  %v83_v47 = vld [vmem:[%s7268_s0 + $0x1f0] sm:$0xff] }
  0x96   :  { %3913 = vmatprep.mubr.msk.f32.mxu0 %vm4829_vm0, %v4830_v3 }
  0x99   :  { %3914 = vmatmul.mubr.msk.f32.gmra.mrb[72].mxu0 %vm150_vm1, %v57_v48 }
  0x9a   :  { %3916 = vmatprep.mubr.msk.f32.mxu0 %vm4829_vm0, %v4830_v3 }
  0x9d   :  { %3917 = vmatmul.mubr.msk.f32.gmra.mrb[74].mxu0 %vm150_vm1, %v58_v49 }
  0x9e   :  { %3919 = vmatprep.mubr.msk.f32.mxu0 %vm4829_vm0, %v4830_v3 }
  0xa1   :  { %3920 = vmatmul.mubr.msk.f32.gmra.mrb[76].mxu0 %vm150_vm1, %v59_v50 }
  0xa2   :  { %3922 = vmatprep.mubr.msk.f32.mxu0 %vm4829_vm0, %v4830_v3 }
  0xa5   :  { %3923 = vmatmul.mubr.msk.f32.gmra.mrb[78].mxu0 %vm150_vm1, %v60_v51 }
  0xa6   :  { %3925 = vmatprep.mubr.msk.f32.mxu0 %vm4829_vm0, %v4830_v3 }
  0xa9   :  { %3926 = vmatmul.mubr.msk.f32.gmra.mrb[80].mxu0 %vm150_vm1, %v61_v52  ;;  %v84_v52 = vld [vmem:[%s7268_s0 + $0x1f8] sm:$0xff] }
  0xaa   :  { %3928 = vmatprep.mubr.msk.f32.mxu0 %vm4829_vm0, %v4830_v3 }
  0xad   :  { %3929 = vmatmul.mubr.msk.f32.gmra.mrb[82].mxu0 %vm150_vm1, %v62_v53 }
  0xae   :  { %3931 = vmatprep.mubr.msk.f32.mxu0 %vm4829_vm0, %v4830_v3 }
  0xb1   :  { %3932 = vmatmul.mubr.msk.f32.gmra.mrb[84].mxu0 %vm150_vm1, %v63_v54 }
  0xb2   :  { %3934 = vmatprep.mubr.msk.f32.mxu0 %vm4829_vm0, %v4830_v3 }
  0xb5   :  { %3935 = vmatmul.mubr.msk.f32.gmra.mrb[86].mxu0 %vm150_vm1, %v64_v55 }
  0xb6   :  { %3937 = vmatprep.mubr.msk.f32.mxu0 %vm4829_vm0, %v4830_v3 }
  0xb9   :  { %3938 = vmatmul.mubr.msk.f32.gmra.mrb[88].mxu0 %vm150_vm1, %v65_v56 }
  0xba   :  { %3940 = vmatprep.mubr.msk.f32.mxu0 %vm4829_vm0, %v4830_v3 }
  0xbd   :  { %3941 = vmatmul.mubr.msk.f32.gmra.mrb[90].mxu0 %vm150_vm1, %v66_v57  ;;  %v85_v57 = vld [vmem:[%s7268_s0 + $0x200] sm:$0xff] }
  0xbe   :  { %3943 = vmatprep.mubr.msk.f32.mxu0 %vm4829_vm0, %v4830_v3 }
  0xc1   :  { %3944 = vmatmul.mubr.msk.f32.gmra.mrb[92].mxu0 %vm150_vm1, %v67_v58 }
  0xc2   :  { %3946 = vmatprep.mubr.msk.f32.mxu0 %vm4829_vm0, %v4830_v3 }
  0xc5   :  { %3947 = vmatmul.mubr.msk.f32.gmra.mrb[94].mxu0 %vm150_vm1, %v68_v59 }
  0xc6   :  { %3949 = vmatprep.mubr.msk.f32.mxu0 %vm4829_vm0, %v4830_v3 }
  0xc9   :  { %3950 = vmatmul.mubr.msk.f32.gmra.mrb[96].mxu0 %vm150_vm1, %v69_v60 }
  0xca   :  { %3952 = vmatprep.mubr.msk.f32.mxu0 %vm4829_vm0, %v4830_v3 }
  0xcd   :  { %3953 = vmatmul.mubr.msk.f32.gmra.mrb[98].mxu0 %vm150_vm1, %v70_v61 }
  0xce   :  { %3955 = vmatprep.mubr.msk.f32.mxu0 %vm4829_vm0, %v4830_v3 }
  0xd1   :  { %3956 = vmatmul.mubr.msk.f32.gmra.mrb[100].mxu0 %vm150_vm1, %v71_v62  ;;  %v86_v62 = vld [vmem:[%s7268_s0 + $0x208] sm:$0xff] }
  0xd2   :  { %3958 = vmatprep.mubr.msk.f32.mxu0 %vm4829_vm0, %v4830_v3 }
  0xd5   :  { %3959 = vmatmul.mubr.msk.f32.gmra.mrb[102].mxu0 %vm150_vm1, %v72_v63 }
  0xd6   :  { %3961 = vmatprep.mubr.msk.f32.mxu0 %vm4829_vm0, %v4830_v3 }
  0xd9   :  { %3962 = vmatmul.mubr.msk.f32.gmra.mrb[104].mxu0 %vm150_vm1, %v73_v0 }
  0xda   :  { %3964 = vmatprep.mubr.msk.f32.mxu0 %vm4829_vm0, %v4830_v3 }
  0xdc   :  { %v592_v4 = vpop.f32.mrb[0].mxu0 }
  0xdd   :  { %v593_v5 = vadd.f32 %v5200_v1, %v592_v4  ;;  %v3807_v6 = vpop.f32.mrb[1].mxu0  ;;  %3965 = vmatmul.mubr.msk.f32.gmra.mrb[106].mxu0 %vm150_vm1, %v74_v2 }
  0xde   :  { %3967 = vmatprep.mubr.msk.f32.mxu0 %vm4829_vm0, %v4830_v3 }
  0xdf   :  { %v1216_v8 = vmax.f32 %v593_v5, 0.0  ;;  %v87_v5 = vld [vmem:[%s7268_s0 + $0x210] sm:$0xff] }
  0xe0   :  { %v597_v9 = vpop.f32.mrb[2].mxu0 }
  0xe1   :  { %v598_v10 = vadd.f32 %v5200_v1, %v597_v9  ;;  %v3810_v11 = vpop.f32.mrb[3].mxu0  ;;  %3968 = vmatmul.mubr.msk.f32.gmra.mrb[108].mxu0 %vm150_vm1, %v75_v7  ;;  %4189 = vmatmul.mubr.msk.f32.vlgmr.msra.gmra.mrb[0].mxu1 %vm1341_vm2, %v1216_v8 }
  0xe2   :  { %3970 = vmatprep.mubr.msk.f32.mxu0 %vm4829_vm0, %v4830_v3  ;;  %4191 = vmatprep.mubr.msk.f32.mxu1 %vm4829_vm0, %v4830_v3 }
  0xe3   :  { %v1217_v13 = vmax.f32 %v598_v10, 0.0  ;;  %v88_v10 = vld [vmem:[%s7268_s0 + $0x218] sm:$0xff] }
  0xe4   :  { %v602_v14 = vpop.f32.mrb[4].mxu0 }
  0xe5   :  { %v603_v15 = vadd.f32 %v5200_v1, %v602_v14  ;;  %v3813_v16 = vpop.f32.mrb[5].mxu0  ;;  %3971 = vmatmul.mubr.msk.f32.gmra.mrb[110].mxu0 %vm150_vm1, %v76_v12  ;;  %4192 = vmatmul.mubr.msk.f32.gmra.mrb[2].mxu1 %vm1341_vm2, %v1217_v13 }
  0xe6   :  { %3973 = vmatprep.mubr.msk.f32.mxu0 %vm4829_vm0, %v4830_v3  ;;  %4194 = vmatprep.mubr.msk.f32.mxu1 %vm4829_vm0, %v4830_v3 }
  0xe7   :  { %v1218_v18 = vmax.f32 %v603_v15, 0.0  ;;  %v89_v15 = vld [vmem:[%s7268_s0 + $0x220] sm:$0xff] }
  0xe8   :  { %v607_v19 = vpop.f32.mrb[6].mxu0 }
  0xe9   :  { %v608_v20 = vadd.f32 %v5200_v1, %v607_v19  ;;  %v3816_v21 = vpop.f32.mrb[7].mxu0  ;;  %3974 = vmatmul.mubr.msk.f32.gmra.mrb[112].mxu0 %vm150_vm1, %v77_v17  ;;  %4195 = vmatmul.mubr.msk.f32.gmra.mrb[4].mxu1 %vm1341_vm2, %v1218_v18 }
  0xea   :  { %3976 = vmatprep.mubr.msk.f32.mxu0 %vm4829_vm0, %v4830_v3  ;;  %4197 = vmatprep.mubr.msk.f32.mxu1 %vm4829_vm0, %v4830_v3 }
  0xeb   :  { %v1219_v23 = vmax.f32 %v608_v20, 0.0  ;;  %v90_v20 = vld [vmem:[%s7268_s0 + $0x228] sm:$0xff] }
  0xec   :  { %v612_v24 = vpop.f32.mrb[8].mxu0 }
  0xed   :  { %v613_v25 = vadd.f32 %v5200_v1, %v612_v24  ;;  %v3819_v26 = vpop.f32.mrb[9].mxu0  ;;  %3977 = vmatmul.mubr.msk.f32.gmra.mrb[114].mxu0 %vm150_vm1, %v78_v22  ;;  %4198 = vmatmul.mubr.msk.f32.gmra.mrb[6].mxu1 %vm1341_vm2, %v1219_v23 }
  0xee   :  { %3979 = vmatprep.mubr.msk.f32.mxu0 %vm4829_vm0, %v4830_v3  ;;  %4200 = vmatprep.mubr.msk.f32.mxu1 %vm4829_vm0, %v4830_v3 }
  0xef   :  { %v1220_v28 = vmax.f32 %v613_v25, 0.0  ;;  %v91_v25 = vld [vmem:[%s7268_s0 + $0x230] sm:$0xff] }
  0xf0   :  { %v617_v29 = vpop.f32.mrb[10].mxu0 }
  0xf1   :  { %v618_v30 = vadd.f32 %v5200_v1, %v617_v29  ;;  %v3822_v31 = vpop.f32.mrb[11].mxu0  ;;  %3980 = vmatmul.mubr.msk.f32.gmra.mrb[116].mxu0 %vm150_vm1, %v79_v27  ;;  %4201 = vmatmul.mubr.msk.f32.gmra.mrb[8].mxu1 %vm1341_vm2, %v1220_v28 }
  0xf2   :  { %3982 = vmatprep.mubr.msk.f32.mxu0 %vm4829_vm0, %v4830_v3  ;;  %4203 = vmatprep.mubr.msk.f32.mxu1 %vm4829_vm0, %v4830_v3 }
  0xf3   :  { %v1221_v33 = vmax.f32 %v618_v30, 0.0  ;;  %v92_v30 = vld [vmem:[%s7268_s0 + $0x238] sm:$0xff] }
  0xf4   :  { %v622_v34 = vpop.f32.mrb[12].mxu0 }
  0xf5   :  { %v623_v35 = vadd.f32 %v5200_v1, %v622_v34  ;;  %v3825_v36 = vpop.f32.mrb[13].mxu0  ;;  %3983 = vmatmul.mubr.msk.f32.gmra.mrb[118].mxu0 %vm150_vm1, %v80_v32  ;;  %4204 = vmatmul.mubr.msk.f32.gmra.mrb[10].mxu1 %vm1341_vm2, %v1221_v33 }
  0xf6   :  { %3985 = vmatprep.mubr.msk.f32.mxu0 %vm4829_vm0, %v4830_v3  ;;  %4206 = vmatprep.mubr.msk.f32.mxu1 %vm4829_vm0, %v4830_v3 }
  0xf7   :  { %v1222_v38 = vmax.f32 %v623_v35, 0.0  ;;  %v93_v35 = vld [vmem:[%s7268_s0 + $0x240] sm:$0xff] }
  0xf8   :  { %v627_v39 = vpop.f32.mrb[14].mxu0 }
  0xf9   :  { %v628_v40 = vadd.f32 %v5200_v1, %v627_v39  ;;  %v3828_v41 = vpop.f32.mrb[15].mxu0  ;;  %3986 = vmatmul.mubr.msk.f32.gmra.mrb[120].mxu0 %vm150_vm1, %v81_v37  ;;  %4207 = vmatmul.mubr.msk.f32.gmra.mrb[12].mxu1 %vm1341_vm2, %v1222_v38 }
  0xfa   :  { %3988 = vmatprep.mubr.msk.f32.mxu0 %vm4829_vm0, %v4830_v3  ;;  %4209 = vmatprep.mubr.msk.f32.mxu1 %vm4829_vm0, %v4830_v3 }
  0xfb   :  { %v1223_v43 = vmax.f32 %v628_v40, 0.0  ;;  %v94_v40 = vld [vmem:[%s7268_s0 + $0x248] sm:$0xff] }
  0xfc   :  { %v632_v44 = vpop.f32.mrb[16].mxu0 }
  0xfd   :  { %v633_v45 = vadd.f32 %v5200_v1, %v632_v44  ;;  %v3831_v46 = vpop.f32.mrb[17].mxu0  ;;  %3989 = vmatmul.mubr.msk.f32.gmra.mrb[122].mxu0 %vm150_vm1, %v82_v42  ;;  %4210 = vmatmul.mubr.msk.f32.gmra.mrb[14].mxu1 %vm1341_vm2, %v1223_v43 }
  0xfe   :  { %3991 = vmatprep.mubr.msk.f32.mxu0 %vm4829_vm0, %v4830_v3  ;;  %4212 = vmatprep.mubr.msk.f32.mxu1 %vm4829_vm0, %v4830_v3 }
  0xff   :  { %v1224_v48 = vmax.f32 %v633_v45, 0.0  ;;  %v95_v45 = vld [vmem:[%s7268_s0 + $0x250] sm:$0xff] }
 0x100   :  { %v637_v49 = vpop.f32.mrb[18].mxu0 }
 0x101   :  { %v638_v50 = vadd.f32 %v5200_v1, %v637_v49  ;;  %v3834_v51 = vpop.f32.mrb[19].mxu0  ;;  %3992 = vmatmul.mubr.msk.f32.gmra.mrb[124].mxu0 %vm150_vm1, %v83_v47  ;;  %4213 = vmatmul.mubr.msk.f32.gmra.mrb[16].mxu1 %vm1341_vm2, %v1224_v48 }
 0x102   :  { %3994 = vmatprep.mubr.msk.f32.mxu0 %vm4829_vm0, %v4830_v3  ;;  %4215 = vmatprep.mubr.msk.f32.mxu1 %vm4829_vm0, %v4830_v3 }
 0x103   :  { %v1225_v53 = vmax.f32 %v638_v50, 0.0  ;;  %v96_v50 = vld [vmem:[%s7268_s0 + $0x258] sm:$0xff] }
 0x104   :  { %v642_v54 = vpop.f32.mrb[20].mxu0 }
 0x105   :  { %v643_v55 = vadd.f32 %v5200_v1, %v642_v54  ;;  %v3837_v56 = vpop.f32.mrb[21].mxu0  ;;  %3995 = vmatmul.mubr.msk.f32.gmra.mrb[126].mxu0 %vm150_vm1, %v84_v52  ;;  %4216 = vmatmul.mubr.msk.f32.gmra.mrb[18].mxu1 %vm1341_vm2, %v1225_v53 }
 0x106   :  { %3997 = vmatprep.mubr.msk.f32.mxu0 %vm4829_vm0, %v4830_v3  ;;  %4218 = vmatprep.mubr.msk.f32.mxu1 %vm4829_vm0, %v4830_v3 }
 0x107   :  { %v1226_v58 = vmax.f32 %v643_v55, 0.0  ;;  %v97_v55 = vld [vmem:[%s7268_s0 + $0x260] sm:$0xff] }
 0x108   :  { %v647_v59 = vpop.f32.mrb[22].mxu0 }
 0x109   :  { %v648_v60 = vadd.f32 %v5200_v1, %v647_v59  ;;  %v3840_v61 = vpop.f32.mrb[23].mxu0  ;;  %3998 = vmatmul.mubr.msk.f32.gmra.mrb[128].mxu0 %vm150_vm1, %v85_v57  ;;  %4219 = vmatmul.mubr.msk.f32.gmra.mrb[20].mxu1 %vm1341_vm2, %v1226_v58 }
 0x10a   :  { %4000 = vmatprep.mubr.msk.f32.mxu0 %vm4829_vm0, %v4830_v3  ;;  %4221 = vmatprep.mubr.msk.f32.mxu1 %vm4829_vm0, %v4830_v3 }
 0x10b   :  { %v1227_v63 = vmax.f32 %v648_v60, 0.0  ;;  %v98_v60 = vld [vmem:[%s7268_s0 + $0x268] sm:$0xff] }
 0x10c   :  { %v652_v0 = vpop.f32.mrb[24].mxu0 }
 0x10d   :  { %v653_v2 = vadd.f32 %v5200_v1, %v652_v0  ;;  %v3843_v4 = vpop.f32.mrb[25].mxu0  ;;  %4001 = vmatmul.mubr.msk.f32.gmra.mrb[130].mxu0 %vm150_vm1, %v86_v62  ;;  %4222 = vmatmul.mubr.msk.f32.gmra.mrb[22].mxu1 %vm1341_vm2, %v1227_v63 }
 0x10e   :  { %4003 = vmatprep.mubr.msk.f32.mxu0 %vm4829_vm0, %v4830_v3  ;;  %4224 = vmatprep.mubr.msk.f32.mxu1 %vm4829_vm0, %v4830_v3 }
 0x10f   :  { %v1228_v6 = vmax.f32 %v653_v2, 0.0  ;;  %v99_v2 = vld [vmem:[%s7268_s0 + $0x270] sm:$0xff] }
 0x110   :  { %v657_v7 = vpop.f32.mrb[26].mxu0 }
 0x111   :  { %v658_v8 = vadd.f32 %v5200_v1, %v657_v7  ;;  %v3846_v9 = vpop.f32.mrb[27].mxu0  ;;  %4004 = vmatmul.mubr.msk.f32.gmra.mrb[132].mxu0 %vm150_vm1, %v87_v5  ;;  %4225 = vmatmul.mubr.msk.f32.gmra.mrb[24].mxu1 %vm1341_vm2, %v1228_v6 }
 0x112   :  { %4006 = vmatprep.mubr.msk.f32.mxu0 %vm4829_vm0, %v4830_v3  ;;  %4227 = vmatprep.mubr.msk.f32.mxu1 %vm4829_vm0, %v4830_v3 }
 0x113   :  { %v1229_v11 = vmax.f32 %v658_v8, 0.0  ;;  %v100_v8 = vld [vmem:[%s7268_s0 + $0x278] sm:$0xff] }
 0x114   :  { %v662_v12 = vpop.f32.mrb[28].mxu0 }
 0x115   :  { %v663_v13 = vadd.f32 %v5200_v1, %v662_v12  ;;  %v3849_v14 = vpop.f32.mrb[29].mxu0  ;;  %4007 = vmatmul.mubr.msk.f32.gmra.mrb[134].mxu0 %vm150_vm1, %v88_v10  ;;  %4228 = vmatmul.mubr.msk.f32.gmra.mrb[26].mxu1 %vm1341_vm2, %v1229_v11 }
 0x116   :  { %4009 = vmatprep.mubr.msk.f32.mxu0 %vm4829_vm0, %v4830_v3  ;;  %4230 = vmatprep.mubr.msk.f32.mxu1 %vm4829_vm0, %v4830_v3 }
 0x117   :  { %v1230_v16 = vmax.f32 %v663_v13, 0.0  ;;  %v101_v13 = vld [vmem:[%s7268_s0 + $0x280] sm:$0xff] }
 0x118   :  { %v667_v17 = vpop.f32.mrb[30].mxu0 }
 0x119   :  { %v668_v18 = vadd.f32 %v5200_v1, %v667_v17  ;;  %v3852_v19 = vpop.f32.mrb[31].mxu0  ;;  %4010 = vmatmul.mubr.msk.f32.gmra.mrb[136].mxu0 %vm150_vm1, %v89_v15  ;;  %4231 = vmatmul.mubr.msk.f32.gmra.mrb[28].mxu1 %vm1341_vm2, %v1230_v16 }
 0x11a   :  { %4012 = vmatprep.mubr.msk.f32.mxu0 %vm4829_vm0, %v4830_v3  ;;  %4233 = vmatprep.mubr.msk.f32.mxu1 %vm4829_vm0, %v4830_v3 }
 0x11b   :  { %v1231_v21 = vmax.f32 %v668_v18, 0.0  ;;  %v102_v18 = vld [vmem:[%s7268_s0 + $0x288] sm:$0xff] }
 0x11c   :  { %v672_v22 = vpop.f32.mrb[32].mxu0 }
 0x11d   :  { %v673_v23 = vadd.f32 %v5200_v1, %v672_v22  ;;  %v3855_v24 = vpop.f32.mrb[33].mxu0  ;;  %4013 = vmatmul.mubr.msk.f32.gmra.mrb[138].mxu0 %vm150_vm1, %v90_v20  ;;  %4234 = vmatmul.mubr.msk.f32.gmra.mrb[30].mxu1 %vm1341_vm2, %v1231_v21 }
 0x11e   :  { %4015 = vmatprep.mubr.msk.f32.mxu0 %vm4829_vm0, %v4830_v3  ;;  %4236 = vmatprep.mubr.msk.f32.mxu1 %vm4829_vm0, %v4830_v3 }
 0x11f   :  { %v1232_v26 = vmax.f32 %v673_v23, 0.0  ;;  %v103_v23 = vld [vmem:[%s7268_s0 + $0x290] sm:$0xff] }
 0x120   :  { %v677_v27 = vpop.f32.mrb[34].mxu0 }
 0x121   :  { %v678_v28 = vadd.f32 %v5200_v1, %v677_v27  ;;  %v3858_v29 = vpop.f32.mrb[35].mxu0  ;;  %4016 = vmatmul.mubr.msk.f32.gmra.mrb[140].mxu0 %vm150_vm1, %v91_v25  ;;  %4237 = vmatmul.mubr.msk.f32.gmra.mrb[32].mxu1 %vm1341_vm2, %v1232_v26 }
 0x122   :  { %4018 = vmatprep.mubr.msk.f32.mxu0 %vm4829_vm0, %v4830_v3  ;;  %4239 = vmatprep.mubr.msk.f32.mxu1 %vm4829_vm0, %v4830_v3 }
 0x123   :  { %v1233_v31 = vmax.f32 %v678_v28, 0.0  ;;  %v104_v28 = vld [vmem:[%s7268_s0 + $0x298] sm:$0xff] }
 0x124   :  { %v682_v32 = vpop.f32.mrb[36].mxu0 }
 0x125   :  { %v683_v33 = vadd.f32 %v5200_v1, %v682_v32  ;;  %v3861_v34 = vpop.f32.mrb[37].mxu0  ;;  %4019 = vmatmul.mubr.msk.f32.gmra.mrb[142].mxu0 %vm150_vm1, %v92_v30  ;;  %4240 = vmatmul.mubr.msk.f32.gmra.mrb[34].mxu1 %vm1341_vm2, %v1233_v31 }
 0x126   :  { %4021 = vmatprep.mubr.msk.f32.mxu0 %vm4829_vm0, %v4830_v3  ;;  %4242 = vmatprep.mubr.msk.f32.mxu1 %vm4829_vm0, %v4830_v3 }
 0x127   :  { %v1234_v36 = vmax.f32 %v683_v33, 0.0  ;;  %v105_v33 = vld [vmem:[%s7268_s0 + $0x2a0] sm:$0xff] }
 0x128   :  { %v687_v37 = vpop.f32.mrb[38].mxu0 }
 0x129   :  { %v688_v38 = vadd.f32 %v5200_v1, %v687_v37  ;;  %v3864_v39 = vpop.f32.mrb[39].mxu0  ;;  %4022 = vmatmul.mubr.msk.f32.gmra.mrb[144].mxu0 %vm150_vm1, %v93_v35  ;;  %4243 = vmatmul.mubr.msk.f32.gmra.mrb[36].mxu1 %vm1341_vm2, %v1234_v36 }
 0x12a   :  { %4024 = vmatprep.mubr.msk.f32.mxu0 %vm4829_vm0, %v4830_v3  ;;  %4245 = vmatprep.mubr.msk.f32.mxu1 %vm4829_vm0, %v4830_v3 }
 0x12b   :  { %v1235_v41 = vmax.f32 %v688_v38, 0.0  ;;  %v106_v38 = vld [vmem:[%s7268_s0 + $0x2a8] sm:$0xff] }
 0x12c   :  { %v692_v42 = vpop.f32.mrb[40].mxu0 }
 0x12d   :  { %v693_v43 = vadd.f32 %v5200_v1, %v692_v42  ;;  %v3867_v44 = vpop.f32.mrb[41].mxu0  ;;  %4025 = vmatmul.mubr.msk.f32.gmra.mrb[146].mxu0 %vm150_vm1, %v94_v40  ;;  %4246 = vmatmul.mubr.msk.f32.gmra.mrb[38].mxu1 %vm1341_vm2, %v1235_v41 }
 0x12e   :  { %4027 = vmatprep.mubr.msk.f32.mxu0 %vm4829_vm0, %v4830_v3  ;;  %4248 = vmatprep.mubr.msk.f32.mxu1 %vm4829_vm0, %v4830_v3 }
 0x12f   :  { %v1236_v46 = vmax.f32 %v693_v43, 0.0  ;;  %v107_v43 = vld [vmem:[%s7268_s0 + $0x2b0] sm:$0xff] }
 0x130   :  { %v697_v47 = vpop.f32.mrb[42].mxu0 }
 0x131   :  { %v698_v48 = vadd.f32 %v5200_v1, %v697_v47  ;;  %v3870_v49 = vpop.f32.mrb[43].mxu0  ;;  %4028 = vmatmul.mubr.msk.f32.gmra.mrb[148].mxu0 %vm150_vm1, %v95_v45  ;;  %4249 = vmatmul.mubr.msk.f32.gmra.mrb[40].mxu1 %vm1341_vm2, %v1236_v46 }
 0x132   :  { %4030 = vmatprep.mubr.msk.f32.mxu0 %vm4829_vm0, %v4830_v3  ;;  %4251 = vmatprep.mubr.msk.f32.mxu1 %vm4829_vm0, %v4830_v3 }
 0x133   :  { %v1237_v51 = vmax.f32 %v698_v48, 0.0  ;;  %v108_v48 = vld [vmem:[%s7268_s0 + $0x2b8] sm:$0xff] }
 0x134   :  { %v702_v52 = vpop.f32.mrb[44].mxu0 }
 0x135   :  { %v703_v53 = vadd.f32 %v5200_v1, %v702_v52  ;;  %v3873_v54 = vpop.f32.mrb[45].mxu0  ;;  %4031 = vmatmul.mubr.msk.f32.gmra.mrb[150].mxu0 %vm150_vm1, %v96_v50  ;;  %4252 = vmatmul.mubr.msk.f32.gmra.mrb[42].mxu1 %vm1341_vm2, %v1237_v51 }
 0x136   :  { %4033 = vmatprep.mubr.msk.f32.mxu0 %vm4829_vm0, %v4830_v3  ;;  %4254 = vmatprep.mubr.msk.f32.mxu1 %vm4829_vm0, %v4830_v3 }
 0x137   :  { %v1238_v56 = vmax.f32 %v703_v53, 0.0  ;;  %v109_v53 = vld [vmem:[%s7268_s0 + $0x2c0] sm:$0xff] }
 0x138   :  { %v707_v57 = vpop.f32.mrb[46].mxu0 }
 0x139   :  { %v708_v58 = vadd.f32 %v5200_v1, %v707_v57  ;;  %v3876_v59 = vpop.f32.mrb[47].mxu0  ;;  %4034 = vmatmul.mubr.msk.f32.gmra.mrb[152].mxu0 %vm150_vm1, %v97_v55  ;;  %4255 = vmatmul.mubr.msk.f32.gmra.mrb[44].mxu1 %vm1341_vm2, %v1238_v56 }
 0x13a   :  { %4036 = vmatprep.mubr.msk.f32.mxu0 %vm4829_vm0, %v4830_v3  ;;  %4257 = vmatprep.mubr.msk.f32.mxu1 %vm4829_vm0, %v4830_v3 }
 0x13b   :  { %v1239_v61 = vmax.f32 %v708_v58, 0.0  ;;  %v110_v58 = vld [vmem:[%s7268_s0 + $0x2c8] sm:$0xff] }
 0x13c   :  { %v712_v62 = vpop.f32.mrb[48].mxu0 }
 0x13d   :  { %v713_v63 = vadd.f32 %v5200_v1, %v712_v62  ;;  %v3879_v0 = vpop.f32.mrb[49].mxu0  ;;  %4037 = vmatmul.mubr.msk.f32.gmra.mrb[154].mxu0 %vm150_vm1, %v98_v60  ;;  %4258 = vmatmul.mubr.msk.f32.gmra.mrb[46].mxu1 %vm1341_vm2, %v1239_v61 }
 0x13e   :  { %4039 = vmatprep.mubr.msk.f32.mxu0 %vm4829_vm0, %v4830_v3  ;;  %4260 = vmatprep.mubr.msk.f32.mxu1 %vm4829_vm0, %v4830_v3 }
 0x13f   :  { %v1240_v4 = vmax.f32 %v713_v63, 0.0  ;;  %v111_v63 = vld [vmem:[%s7268_s0 + $0x2d0] sm:$0xff] }
 0x140   :  { %v717_v5 = vpop.f32.mrb[50].mxu0 }
 0x141   :  { %v718_v6 = vadd.f32 %v5200_v1, %v717_v5  ;;  %v3882_v7 = vpop.f32.mrb[51].mxu0  ;;  %4040 = vmatmul.mubr.msk.f32.gmra.mrb[156].mxu0 %vm150_vm1, %v99_v2  ;;  %4261 = vmatmul.mubr.msk.f32.gmra.mrb[48].mxu1 %vm1341_vm2, %v1240_v4 }
 0x142   :  { %4042 = vmatprep.mubr.msk.f32.mxu0 %vm4829_vm0, %v4830_v3  ;;  %4263 = vmatprep.mubr.msk.f32.mxu1 %vm4829_vm0, %v4830_v3 }
 0x143   :  { %v1241_v9 = vmax.f32 %v718_v6, 0.0  ;;  %v112_v6 = vld [vmem:[%s7268_s0 + $0x2d8] sm:$0xff] }
 0x144   :  { %v722_v10 = vpop.f32.mrb[52].mxu0 }
 0x145   :  { %v723_v11 = vadd.f32 %v5200_v1, %v722_v10  ;;  %v3885_v12 = vpop.f32.mrb[53].mxu0  ;;  %4043 = vmatmul.mubr.msk.f32.gmra.mrb[158].mxu0 %vm150_vm1, %v100_v8  ;;  %4264 = vmatmul.mubr.msk.f32.gmra.mrb[50].mxu1 %vm1341_vm2, %v1241_v9 }
 0x146   :  { %4045 = vmatprep.mubr.msk.f32.mxu0 %vm4829_vm0, %v4830_v3  ;;  %4266 = vmatprep.mubr.msk.f32.mxu1 %vm4829_vm0, %v4830_v3 }
 0x147   :  { %v1242_v14 = vmax.f32 %v723_v11, 0.0  ;;  %v113_v11 = vld [vmem:[%s7268_s0 + $0x2e0] sm:$0xff] }
 0x148   :  { %v727_v15 = vpop.f32.mrb[54].mxu0 }
 0x149   :  { %v728_v16 = vadd.f32 %v5200_v1, %v727_v15  ;;  %v3888_v17 = vpop.f32.mrb[55].mxu0  ;;  %4046 = vmatmul.mubr.msk.f32.gmra.mrb[160].mxu0 %vm150_vm1, %v101_v13  ;;  %4267 = vmatmul.mubr.msk.f32.gmra.mrb[52].mxu1 %vm1341_vm2, %v1242_v14 }
 0x14a   :  { %4048 = vmatprep.mubr.msk.f32.mxu0 %vm4829_vm0, %v4830_v3  ;;  %4269 = vmatprep.mubr.msk.f32.mxu1 %vm4829_vm0, %v4830_v3 }
 0x14b   :  { %v1243_v19 = vmax.f32 %v728_v16, 0.0  ;;  %v114_v16 = vld [vmem:[%s7268_s0 + $0x2e8] sm:$0xff] }
 0x14c   :  { %v732_v20 = vpop.f32.mrb[56].mxu0 }
 0x14d   :  { %v733_v21 = vadd.f32 %v5200_v1, %v732_v20  ;;  %v3891_v22 = vpop.f32.mrb[57].mxu0  ;;  %4049 = vmatmul.mubr.msk.f32.gmra.mrb[162].mxu0 %vm150_vm1, %v102_v18  ;;  %4270 = vmatmul.mubr.msk.f32.gmra.mrb[54].mxu1 %vm1341_vm2, %v1243_v19 }
 0x14e   :  { %4051 = vmatprep.mubr.msk.f32.mxu0 %vm4829_vm0, %v4830_v3  ;;  %4272 = vmatprep.mubr.msk.f32.mxu1 %vm4829_vm0, %v4830_v3 }
 0x14f   :  { %v1244_v24 = vmax.f32 %v733_v21, 0.0  ;;  %v115_v21 = vld [vmem:[%s7268_s0 + $0x2f0] sm:$0xff] }
 0x150   :  { %v737_v25 = vpop.f32.mrb[58].mxu0 }
 0x151   :  { %v738_v26 = vadd.f32 %v5200_v1, %v737_v25  ;;  %v3894_v27 = vpop.f32.mrb[59].mxu0  ;;  %4052 = vmatmul.mubr.msk.f32.gmra.mrb[164].mxu0 %vm150_vm1, %v103_v23  ;;  %4273 = vmatmul.mubr.msk.f32.gmra.mrb[56].mxu1 %vm1341_vm2, %v1244_v24 }
 0x152   :  { %4054 = vmatprep.mubr.msk.f32.mxu0 %vm4829_vm0, %v4830_v3  ;;  %4275 = vmatprep.mubr.msk.f32.mxu1 %vm4829_vm0, %v4830_v3 }
 0x153   :  { %v1245_v29 = vmax.f32 %v738_v26, 0.0  ;;  %v116_v26 = vld [vmem:[%s7268_s0 + $0x2f8] sm:$0xff] }
 0x154   :  { %v742_v30 = vpop.f32.mrb[60].mxu0 }
 0x155   :  { %v743_v31 = vadd.f32 %v5200_v1, %v742_v30  ;;  %v3897_v32 = vpop.f32.mrb[61].mxu0  ;;  %4055 = vmatmul.mubr.msk.f32.gmra.mrb[166].mxu0 %vm150_vm1, %v104_v28  ;;  %4276 = vmatmul.mubr.msk.f32.gmra.mrb[58].mxu1 %vm1341_vm2, %v1245_v29 }
 0x156   :  { %4057 = vmatprep.mubr.msk.f32.mxu0 %vm4829_vm0, %v4830_v3  ;;  %4278 = vmatprep.mubr.msk.f32.mxu1 %vm4829_vm0, %v4830_v3 }
 0x157   :  { %v1246_v34 = vmax.f32 %v743_v31, 0.0  ;;  %v117_v31 = vld [vmem:[%s7268_s0 + $0x300] sm:$0xff] }
 0x158   :  { %v747_v35 = vpop.f32.mrb[62].mxu0 }
 0x159   :  { %v748_v36 = vadd.f32 %v5200_v1, %v747_v35  ;;  %v3900_v37 = vpop.f32.mrb[63].mxu0  ;;  %4058 = vmatmul.mubr.msk.f32.gmra.mrb[168].mxu0 %vm150_vm1, %v105_v33  ;;  %4279 = vmatmul.mubr.msk.f32.gmra.mrb[60].mxu1 %vm1341_vm2, %v1246_v34 }
 0x15a   :  { %4060 = vmatprep.mubr.msk.f32.mxu0 %vm4829_vm0, %v4830_v3  ;;  %4281 = vmatprep.mubr.msk.f32.mxu1 %vm4829_vm0, %v4830_v3 }
 0x15b   :  { %v1247_v39 = vmax.f32 %v748_v36, 0.0  ;;  %v118_v36 = vld [vmem:[%s7268_s0 + $0x308] sm:$0xff] }
 0x15c   :  { %v752_v40 = vpop.f32.mrb[64].mxu0 }
 0x15d   :  { %v753_v41 = vadd.f32 %v5200_v1, %v752_v40  ;;  %v3903_v42 = vpop.f32.mrb[65].mxu0  ;;  %4061 = vmatmul.mubr.msk.f32.gmra.mrb[170].mxu0 %vm150_vm1, %v106_v38  ;;  %4282 = vmatmul.mubr.msk.f32.gmra.mrb[62].mxu1 %vm1341_vm2, %v1247_v39 }
 0x15e   :  { %4063 = vmatprep.mubr.msk.f32.mxu0 %vm4829_vm0, %v4830_v3  ;;  %4284 = vmatprep.mubr.msk.f32.mxu1 %vm4829_vm0, %v4830_v3 }
 0x15f   :  { %v1248_v44 = vmax.f32 %v753_v41, 0.0  ;;  %v119_v41 = vld [vmem:[%s7268_s0 + $0x310] sm:$0xff] }
 0x160   :  { %v757_v45 = vpop.f32.mrb[66].mxu0 }
 0x161   :  { %v758_v46 = vadd.f32 %v5200_v1, %v757_v45  ;;  %v3906_v47 = vpop.f32.mrb[67].mxu0  ;;  %4064 = vmatmul.mubr.msk.f32.gmra.mrb[172].mxu0 %vm150_vm1, %v107_v43  ;;  %4285 = vmatmul.mubr.msk.f32.gmra.mrb[64].mxu1 %vm1341_vm2, %v1248_v44 }
 0x162   :  { %4066 = vmatprep.mubr.msk.f32.mxu0 %vm4829_vm0, %v4830_v3  ;;  %4287 = vmatprep.mubr.msk.f32.mxu1 %vm4829_vm0, %v4830_v3 }
 0x163   :  { %v1249_v49 = vmax.f32 %v758_v46, 0.0  ;;  %v120_v46 = vld [vmem:[%s7268_s0 + $0x318] sm:$0xff] }
 0x164   :  { %v762_v50 = vpop.f32.mrb[68].mxu0 }
 0x165   :  { %v763_v51 = vadd.f32 %v5200_v1, %v762_v50  ;;  %v3909_v52 = vpop.f32.mrb[69].mxu0  ;;  %4067 = vmatmul.mubr.msk.f32.gmra.mrb[174].mxu0 %vm150_vm1, %v108_v48  ;;  %4288 = vmatmul.mubr.msk.f32.gmra.mrb[66].mxu1 %vm1341_vm2, %v1249_v49 }
 0x166   :  { %4069 = vmatprep.mubr.msk.f32.mxu0 %vm4829_vm0, %v4830_v3  ;;  %4290 = vmatprep.mubr.msk.f32.mxu1 %vm4829_vm0, %v4830_v3 }
 0x167   :  { %v1250_v54 = vmax.f32 %v763_v51, 0.0  ;;  %v121_v51 = vld [vmem:[%s7268_s0 + $0x320] sm:$0xff] }
 0x168   :  { %v767_v55 = vpop.f32.mrb[70].mxu0 }
 0x169   :  { %v768_v56 = vadd.f32 %v5200_v1, %v767_v55  ;;  %v3912_v57 = vpop.f32.mrb[71].mxu0  ;;  %4070 = vmatmul.mubr.msk.f32.gmra.mrb[176].mxu0 %vm150_vm1, %v109_v53  ;;  %4291 = vmatmul.mubr.msk.f32.gmra.mrb[68].mxu1 %vm1341_vm2, %v1250_v54 }
 0x16a   :  { %4072 = vmatprep.mubr.msk.f32.mxu0 %vm4829_vm0, %v4830_v3  ;;  %4293 = vmatprep.mubr.msk.f32.mxu1 %vm4829_vm0, %v4830_v3 }
 0x16b   :  { %v1251_v59 = vmax.f32 %v768_v56, 0.0  ;;  %v122_v56 = vld [vmem:[%s7268_s0 + $0x328] sm:$0xff] }
 0x16c   :  { %v772_v60 = vpop.f32.mrb[72].mxu0 }
 0x16d   :  { %v773_v61 = vadd.f32 %v5200_v1, %v772_v60  ;;  %v3915_v62 = vpop.f32.mrb[73].mxu0  ;;  %4073 = vmatmul.mubr.msk.f32.gmra.mrb[178].mxu0 %vm150_vm1, %v110_v58  ;;  %4294 = vmatmul.mubr.msk.f32.gmra.mrb[70].mxu1 %vm1341_vm2, %v1251_v59 }
 0x16e   :  { %4075 = vmatprep.mubr.msk.f32.mxu0 %vm4829_vm0, %v4830_v3  ;;  %4296 = vmatprep.mubr.msk.f32.mxu1 %vm4829_vm0, %v4830_v3 }
 0x16f   :  { %v1252_v0 = vmax.f32 %v773_v61, 0.0  ;;  %v123_v61 = vld [vmem:[%s7268_s0 + $0x330] sm:$0xff] }
 0x170   :  { %v777_v2 = vpop.f32.mrb[74].mxu0 }
 0x171   :  { %v778_v4 = vadd.f32 %v5200_v1, %v777_v2  ;;  %v3918_v5 = vpop.f32.mrb[75].mxu0  ;;  %4076 = vmatmul.mubr.msk.f32.gmra.mrb[180].mxu0 %vm150_vm1, %v111_v63  ;;  %4297 = vmatmul.mubr.msk.f32.gmra.mrb[72].mxu1 %vm1341_vm2, %v1252_v0 }
 0x172   :  { %4078 = vmatprep.mubr.msk.f32.mxu0 %vm4829_vm0, %v4830_v3  ;;  %4299 = vmatprep.mubr.msk.f32.mxu1 %vm4829_vm0, %v4830_v3 }
 0x173   :  { %v1253_v7 = vmax.f32 %v778_v4, 0.0  ;;  %v124_v4 = vld [vmem:[%s7268_s0 + $0x338] sm:$0xff] }
 0x174   :  { %v782_v8 = vpop.f32.mrb[76].mxu0 }
 0x175   :  { %v783_v9 = vadd.f32 %v5200_v1, %v782_v8  ;;  %v3921_v10 = vpop.f32.mrb[77].mxu0  ;;  %4079 = vmatmul.mubr.msk.f32.gmra.mrb[182].mxu0 %vm150_vm1, %v112_v6  ;;  %4300 = vmatmul.mubr.msk.f32.gmra.mrb[74].mxu1 %vm1341_vm2, %v1253_v7 }
 0x176   :  { %4081 = vmatprep.mubr.msk.f32.mxu0 %vm4829_vm0, %v4830_v3  ;;  %4302 = vmatprep.mubr.msk.f32.mxu1 %vm4829_vm0, %v4830_v3 }
 0x177   :  { %v1254_v12 = vmax.f32 %v783_v9, 0.0  ;;  %v125_v9 = vld [vmem:[%s7268_s0 + $0x340] sm:$0xff] }
 0x178   :  { %v787_v13 = vpop.f32.mrb[78].mxu0 }
 0x179   :  { %v788_v14 = vadd.f32 %v5200_v1, %v787_v13  ;;  %v3924_v15 = vpop.f32.mrb[79].mxu0  ;;  %4082 = vmatmul.mubr.msk.f32.gmra.mrb[184].mxu0 %vm150_vm1, %v113_v11  ;;  %4303 = vmatmul.mubr.msk.f32.gmra.mrb[76].mxu1 %vm1341_vm2, %v1254_v12 }
 0x17a   :  { %4084 = vmatprep.mubr.msk.f32.mxu0 %vm4829_vm0, %v4830_v3  ;;  %4305 = vmatprep.mubr.msk.f32.mxu1 %vm4829_vm0, %v4830_v3 }
 0x17b   :  { %v1255_v17 = vmax.f32 %v788_v14, 0.0  ;;  %v126_v14 = vld [vmem:[%s7268_s0 + $0x348] sm:$0xff] }
 0x17c   :  { %v792_v18 = vpop.f32.mrb[80].mxu0 }
 0x17d   :  { %v793_v19 = vadd.f32 %v5200_v1, %v792_v18  ;;  %v3927_v20 = vpop.f32.mrb[81].mxu0  ;;  %4085 = vmatmul.mubr.msk.f32.gmra.mrb[186].mxu0 %vm150_vm1, %v114_v16  ;;  %4306 = vmatmul.mubr.msk.f32.gmra.mrb[78].mxu1 %vm1341_vm2, %v1255_v17 }
 0x17e   :  { %4087 = vmatprep.mubr.msk.f32.mxu0 %vm4829_vm0, %v4830_v3  ;;  %4308 = vmatprep.mubr.msk.f32.mxu1 %vm4829_vm0, %v4830_v3 }
 0x17f   :  { %v1256_v22 = vmax.f32 %v793_v19, 0.0  ;;  %v127_v19 = vld [vmem:[%s7268_s0 + $0x350] sm:$0xff] }
 0x180   :  { %v797_v23 = vpop.f32.mrb[82].mxu0 }
 0x181   :  { %v798_v24 = vadd.f32 %v5200_v1, %v797_v23  ;;  %v3930_v25 = vpop.f32.mrb[83].mxu0  ;;  %4088 = vmatmul.mubr.msk.f32.gmra.mrb[188].mxu0 %vm150_vm1, %v115_v21  ;;  %4309 = vmatmul.mubr.msk.f32.gmra.mrb[80].mxu1 %vm1341_vm2, %v1256_v22 }
 0x182   :  { %4090 = vmatprep.mubr.msk.f32.mxu0 %vm4829_vm0, %v4830_v3  ;;  %4311 = vmatprep.mubr.msk.f32.mxu1 %vm4829_vm0, %v4830_v3 }
 0x183   :  { %v1257_v27 = vmax.f32 %v798_v24, 0.0  ;;  %v128_v24 = vld [vmem:[%s7268_s0 + $0x358] sm:$0xff] }
 0x184   :  { %v802_v28 = vpop.f32.mrb[84].mxu0 }
 0x185   :  { %v803_v29 = vadd.f32 %v5200_v1, %v802_v28  ;;  %v3933_v30 = vpop.f32.mrb[85].mxu0  ;;  %4091 = vmatmul.mubr.msk.f32.gmra.mrb[190].mxu0 %vm150_vm1, %v116_v26  ;;  %4312 = vmatmul.mubr.msk.f32.gmra.mrb[82].mxu1 %vm1341_vm2, %v1257_v27 }
 0x186   :  { %4093 = vmatprep.mubr.msk.f32.mxu0 %vm4829_vm0, %v4830_v3  ;;  %4314 = vmatprep.mubr.msk.f32.mxu1 %vm4829_vm0, %v4830_v3 }
 0x187   :  { %v1258_v32 = vmax.f32 %v803_v29, 0.0 }
 0x188   :  { %v807_v33 = vpop.f32.mrb[86].mxu0 }
 0x189   :  { %v808_v34 = vadd.f32 %v5200_v1, %v807_v33  ;;  %v3936_v35 = vpop.f32.mrb[87].mxu0  ;;  %4094 = vmatmul.mubr.msk.f32.gmra.mrb[192].mxu0 %vm150_vm1, %v117_v31  ;;  %4315 = vmatmul.mubr.msk.f32.gmra.mrb[84].mxu1 %vm1341_vm2, %v1258_v32  ;;  %v129_v31 = vld [vmem:[%s7268_s0 + $0x360] sm:$0xff] }
 0x18a   :  { %4096 = vmatprep.mubr.msk.f32.mxu0 %vm4829_vm0, %v4830_v3  ;;  %4317 = vmatprep.mubr.msk.f32.mxu1 %vm4829_vm0, %v4830_v3 }
 0x18b   :  { %v1259_v37 = vmax.f32 %v808_v34, 0.0 }
 0x18c   :  { %v812_v38 = vpop.f32.mrb[88].mxu0 }
 0x18d   :  { %v813_v39 = vadd.f32 %v5200_v1, %v812_v38  ;;  %v3939_v40 = vpop.f32.mrb[89].mxu0  ;;  %4097 = vmatmul.mubr.msk.f32.gmra.mrb[194].mxu0 %vm150_vm1, %v118_v36  ;;  %4318 = vmatmul.mubr.msk.f32.gmra.mrb[86].mxu1 %vm1341_vm2, %v1259_v37 }
 0x18e   :  { %4099 = vmatprep.mubr.msk.f32.mxu0 %vm4829_vm0, %v4830_v3  ;;  %4320 = vmatprep.mubr.msk.f32.mxu1 %vm4829_vm0, %v4830_v3 }
 0x18f   :  { %v1260_v42 = vmax.f32 %v813_v39, 0.0 }
 0x190   :  { %v817_v43 = vpop.f32.mrb[90].mxu0 }
 0x191   :  { %v818_v44 = vadd.f32 %v5200_v1, %v817_v43  ;;  %v3942_v45 = vpop.f32.mrb[91].mxu0  ;;  %4100 = vmatmul.mubr.msk.f32.gmra.mrb[196].mxu0 %vm150_vm1, %v119_v41  ;;  %4321 = vmatmul.mubr.msk.f32.gmra.mrb[88].mxu1 %vm1341_vm2, %v1260_v42  ;;  %v5775_v41 = vld [vmem:[%s7267_s1 + $0x18] ss:$0 sm:$0xff] }
 0x192   :  { %4102 = vmatprep.mubr.msk.f32.mxu0 %vm4829_vm0, %v4830_v3  ;;  %4323 = vmatprep.mubr.msk.f32.mxu1 %vm4829_vm0, %v4830_v3  ;;  %v131_v45 = vld [vmem:[%s7268_s0 + $0x370] sm:$0xff] }
 0x193   :  { %v1261_v47 = vmax.f32 %v818_v44, 0.0 }
 0x194   :  { %v822_v48 = vpop.f32.mrb[92].mxu0 }
 0x195   :  { %v823_v49 = vadd.f32 %v5200_v1, %v822_v48  ;;  %v3945_v50 = vpop.f32.mrb[93].mxu0  ;;  %4103 = vmatmul.mubr.msk.f32.gmra.mrb[198].mxu0 %vm150_vm1, %v120_v46  ;;  %4324 = vmatmul.mubr.msk.f32.gmra.mrb[90].mxu1 %vm1341_vm2, %v1261_v47 }
 0x196   :  { %4105 = vmatprep.mubr.msk.f32.mxu0 %vm4829_vm0, %v4830_v3  ;;  %4326 = vmatprep.mubr.msk.f32.mxu1 %vm4829_vm0, %v4830_v3 }
 0x197   :  { %v1262_v52 = vmax.f32 %v823_v49, 0.0 }
 0x198   :  { %v827_v53 = vpop.f32.mrb[94].mxu0 }
 0x199   :  { %v828_v54 = vadd.f32 %v5200_v1, %v827_v53  ;;  %v3948_v55 = vpop.f32.mrb[95].mxu0  ;;  %4106 = vmatmul.mubr.msk.f32.gmra.mrb[200].mxu0 %vm150_vm1, %v121_v51  ;;  %4327 = vmatmul.mubr.msk.f32.gmra.mrb[92].mxu1 %vm1341_vm2, %v1262_v52  ;;  %v132_v53 = vld [vmem:[%s7268_s0 + $0x378] sm:$0xff] }
 0x19a   :  { %4108 = vmatprep.mubr.msk.f32.mxu0 %vm4829_vm0, %v4830_v3  ;;  %4329 = vmatprep.mubr.msk.f32.mxu1 %vm4829_vm0, %v4830_v3 }
 0x19b   :  { %v1263_v57 = vmax.f32 %v828_v54, 0.0 }
 0x19c   :  { %v832_v58 = vpop.f32.mrb[96].mxu0 }
 0x19d   :  { %v833_v59 = vadd.f32 %v5200_v1, %v832_v58  ;;  %v3951_v60 = vpop.f32.mrb[97].mxu0  ;;  %4109 = vmatmul.mubr.msk.f32.gmra.mrb[202].mxu0 %vm150_vm1, %v122_v56  ;;  %4330 = vmatmul.mubr.msk.f32.gmra.mrb[94].mxu1 %vm1341_vm2, %v1263_v57 }
 0x19e   :  { %4111 = vmatprep.mubr.msk.f32.mxu0 %vm4829_vm0, %v4830_v3  ;;  %4332 = vmatprep.mubr.msk.f32.mxu1 %vm4829_vm0, %v4830_v3 }
 0x19f   :  { %v1264_v62 = vmax.f32 %v833_v59, 0.0 }
 0x1a0   :  { %v837_v63 = vpop.f32.mrb[98].mxu0 }
 0x1a1   :  { %v838_v0 = vadd.f32 %v5200_v1, %v837_v63  ;;  %v3954_v2 = vpop.f32.mrb[99].mxu0  ;;  %4112 = vmatmul.mubr.msk.f32.gmra.mrb[204].mxu0 %vm150_vm1, %v123_v61  ;;  %4333 = vmatmul.mubr.msk.f32.gmra.mrb[96].mxu1 %vm1341_vm2, %v1264_v62  ;;  %v133_v61 = vld [vmem:[%s7268_s0 + $0x380] sm:$0xff] }
 0x1a2   :  { %4114 = vmatprep.mubr.msk.f32.mxu0 %vm4829_vm0, %v4830_v3  ;;  %4335 = vmatprep.mubr.msk.f32.mxu1 %vm4829_vm0, %v4830_v3 }
 0x1a3   :  { %v1265_v5 = vmax.f32 %v838_v0, 0.0 }
 0x1a4   :  { %v842_v6 = vpop.f32.mrb[100].mxu0 }
 0x1a5   :  { %v843_v7 = vadd.f32 %v5200_v1, %v842_v6  ;;  %v3957_v8 = vpop.f32.mrb[101].mxu0  ;;  %4115 = vmatmul.mubr.msk.f32.gmra.mrb[206].mxu0 %vm150_vm1, %v124_v4  ;;  %4336 = vmatmul.mubr.msk.f32.gmra.mrb[98].mxu1 %vm1341_vm2, %v1265_v5 }
 0x1a6   :  { %4117 = vmatprep.mubr.msk.f32.mxu0 %vm4829_vm0, %v4830_v3  ;;  %4338 = vmatprep.mubr.msk.f32.mxu1 %vm4829_vm0, %v4830_v3 }
 0x1a7   :  { %v1266_v10 = vmax.f32 %v843_v7, 0.0  ;;  %v134_v7 = vld [vmem:[%s7268_s0 + $0x388] sm:$0xff] }
 0x1a8   :  { %v847_v11 = vpop.f32.mrb[102].mxu0 }
 0x1a9   :  { %v848_v12 = vadd.f32 %v5200_v1, %v847_v11  ;;  %v3960_v13 = vpop.f32.mrb[103].mxu0  ;;  %4118 = vmatmul.mubr.msk.f32.gmra.mrb[208].mxu0 %vm150_vm1, %v125_v9  ;;  %4339 = vmatmul.mubr.msk.f32.gmra.mrb[100].mxu1 %vm1341_vm2, %v1266_v10 }
 0x1aa   :  { %4120 = vmatprep.mubr.msk.f32.mxu0 %vm4829_vm0, %v4830_v3  ;;  %4341 = vmatprep.mubr.msk.f32.mxu1 %vm4829_vm0, %v4830_v3 }
 0x1ab   :  { %v1267_v15 = vmax.f32 %v848_v12, 0.0 }
 0x1ac   :  { %v852_v16 = vpop.f32.mrb[104].mxu0 }
 0x1ad   :  { %v853_v17 = vadd.f32 %v5200_v1, %v852_v16  ;;  %v3963_v18 = vpop.f32.mrb[105].mxu0  ;;  %4121 = vmatmul.mubr.msk.f32.gmra.mrb[210].mxu0 %vm150_vm1, %v126_v14  ;;  %4342 = vmatmul.mubr.msk.f32.gmra.mrb[102].mxu1 %vm1341_vm2, %v1267_v15  ;;  %v135_v15 = vld [vmem:[%s7268_s0 + $0x390] sm:$0xff] }
 0x1ae   :  { %4123 = vmatprep.mubr.msk.f32.mxu0 %vm4829_vm0, %v4830_v3  ;;  %4344 = vmatprep.mubr.msk.f32.mxu1 %vm4829_vm0, %v4830_v3 }
 0x1af   :  { %v1268_v20 = vmax.f32 %v853_v17, 0.0 }
 0x1b0   :  { %v857_v21 = vpop.f32.mrb[106].mxu0 }
 0x1b1   :  { %v858_v22 = vadd.f32 %v5200_v1, %v857_v21  ;;  %v3966_v23 = vpop.f32.mrb[107].mxu0  ;;  %4124 = vmatmul.mubr.msk.f32.gmra.mrb[212].mxu0 %vm150_vm1, %v127_v19  ;;  %4345 = vmatmul.mubr.msk.f32.gmra.mrb[104].mxu1 %vm1341_vm2, %v1268_v20 }
 0x1b2   :  { %4126 = vmatprep.mubr.msk.f32.mxu0 %vm4829_vm0, %v4830_v3  ;;  %4347 = vmatprep.mubr.msk.f32.mxu1 %vm4829_vm0, %v4830_v3  ;;  %v136_v23 = vld [vmem:[%s7268_s0 + $0x398] sm:$0xff] }
 0x1b3   :  { %v1269_v25 = vmax.f32 %v858_v22, 0.0 }
 0x1b4   :  { %v862_v26 = vpop.f32.mrb[108].mxu0  ;;  %v1783_v27 = vpop.f32.mrb[0].mxu1 }
 0x1b5   :  { %v863_v28 = vadd.f32 %v5200_v1, %v862_v26  ;;  %2408 = vst.msk [vmem:[%s7269_s2] sm:$0xff] %vm2407_vm3, %v1783_v27  ;;  %4576 = vtanh.f32 %v1783_v27  ;;  %v3969_v29 = vpop.f32.mrb[109].mxu0  ;;  %4127 = vmatmul.mubr.msk.f32.gmra.mrb[214].mxu0 %vm150_vm1, %v128_v24  ;;  %v4190_v30 = vpop.f32.mrb[1].mxu1  ;;  %4348 = vmatmul.mubr.msk.f32.gmra.mrb[106].mxu1 %vm1341_vm2, %v1269_v25 }
 0x1b6   :  { %4129 = vmatprep.mubr.msk.f32.mxu0 %vm4829_vm0, %v4830_v3  ;;  %4350 = vmatprep.mubr.msk.f32.mxu1 %vm4829_vm0, %v4830_v3 }
 0x1b7   :  { %v1270_v32 = vmax.f32 %v863_v28, 0.0 }
 0x1b8   :  { %v867_v33 = vpop.f32.mrb[110].mxu0  ;;  %v1788_v34 = vpop.f32.mrb[2].mxu1 }
 0x1b9   :  { %v868_v35 = vadd.f32 %v5200_v1, %v867_v33  ;;  %2409 = vst.msk [vmem:[%s7269_s2 + $0x8] sm:$0xff] %vm2407_vm3, %v1788_v34  ;;  %4578 = vtanh.f32 %v1788_v34  ;;  %v3972_v36 = vpop.f32.mrb[111].mxu0  ;;  %4130 = vmatmul.mubr.msk.f32.gmra.mrb[216].mxu0 %vm150_vm1, %v129_v31  ;;  %v4193_v37 = vpop.f32.mrb[3].mxu1  ;;  %4351 = vmatmul.mubr.msk.f32.gmra.mrb[108].mxu1 %vm1341_vm2, %v1270_v32  ;;  %v130_v1 = vld [vmem:[%s7268_s0 + $0x368] sm:$0xff]  ;;  %v137_v31 = vld [vmem:[%s7268_s0 + $0x3a0] sm:$0xff] }
 0x1ba   :  { %4132 = vmatprep.mubr.msk.f32.mxu0 %vm4829_vm0, %v4830_v3  ;;  %4353 = vmatprep.mubr.msk.f32.mxu1 %vm4829_vm0, %v4830_v3 }
 0x1bb   :  { %v1271_v38 = vmax.f32 %v868_v35, 0.0 }
 0x1bc   :  { %v872_v39 = vpop.f32.mrb[112].mxu0  ;;  %v1793_v40 = vpop.f32.mrb[4].mxu1 }
 0x1bd   :  { %v873_v42 = vadd.f32 %v5775_v41, %v872_v39  ;;  %2410 = vst.msk [vmem:[%s7269_s2 + $0x10] sm:$0xff] %vm2407_vm3, %v1793_v40  ;;  %4580 = vtanh.f32 %v1793_v40  ;;  %v3975_v43 = vpop.f32.mrb[113].mxu0  ;;  %4133 = vmatmul.mubr.msk.f32.gmra.mrb[218].mxu0 %vm150_vm1, %v130_v1  ;;  %v4196_v44 = vpop.f32.mrb[5].mxu1  ;;  %4354 = vmatmul.mubr.msk.f32.gmra.mrb[110].mxu1 %vm1341_vm2, %v1271_v38  ;;  %v138_v38 = vld [vmem:[%s7268_s0 + $0x3a8] sm:$0xff] }
 0x1be   :  { %4135 = vmatprep.mubr.msk.f32.mxu0 %vm4829_vm0, %v4830_v3  ;;  %4356 = vmatprep.mubr.msk.f32.mxu1 %vm4829_vm0, %v4830_v3 }
 0x1bf   :  { %v4577_v46 = vpop.eup %4576  ;;  %v1272_v47 = vmax.f32 %v873_v42, 0.0 }
 0x1c0   :  { %2783 = vrot.lane.b32.xlu0 %v4577_v46, %s4831_s15  ;;  %v877_v48 = vpop.f32.mrb[114].mxu0  ;;  %v1798_v49 = vpop.f32.mrb[6].mxu1 }
 0x1c1   :  { %v878_v50 = vadd.f32 %v5775_v41, %v877_v48  ;;  %2411 = vst.msk [vmem:[%s7269_s2 + $0x18] sm:$0xff] %vm2407_vm3, %v1798_v49  ;;  %4582 = vtanh.f32 %v1798_v49  ;;  %v3978_v51 = vpop.f32.mrb[115].mxu0  ;;  %4136 = vmatmul.mubr.msk.f32.gmra.mrb[220].mxu0 %vm150_vm1, %v131_v45  ;;  %v4199_v52 = vpop.f32.mrb[7].mxu1  ;;  %4357 = vmatmul.mubr.msk.f32.gmra.mrb[112].mxu1 %vm1341_vm2, %v1272_v47  ;;  %v139_v47 = vld [vmem:[%s7268_s0 + $0x3b0] sm:$0xff] }
 0x1c2   :  { %4138 = vmatprep.mubr.msk.f32.mxu0 %vm4829_vm0, %v4830_v3  ;;  %4359 = vmatprep.mubr.msk.f32.mxu1 %vm4829_vm0, %v4830_v3 }
 0x1c3   :  { %v4579_v54 = vpop.eup %4578  ;;  %v1273_v55 = vmax.f32 %v878_v50, 0.0 }
 0x1c4   :  { %2785 = vrot.lane.b32.xlu0 %v4579_v54, %s4831_s15  ;;  %v882_v56 = vpop.f32.mrb[116].mxu0  ;;  %v1803_v57 = vpop.f32.mrb[8].mxu1 }
 0x1c5   :  { %v883_v58 = vadd.f32 %v5775_v41, %v882_v56  ;;  %2412 = vst.msk [vmem:[%s7269_s2 + $0x20] sm:$0xff] %vm2407_vm3, %v1803_v57  ;;  %4584 = vtanh.f32 %v1803_v57  ;;  %v3981_v59 = vpop.f32.mrb[117].mxu0  ;;  %4139 = vmatmul.mubr.msk.f32.gmra.mrb[222].mxu0 %vm150_vm1, %v132_v53  ;;  %v4202_v60 = vpop.f32.mrb[9].mxu1  ;;  %4360 = vmatmul.mubr.msk.f32.gmra.mrb[114].mxu1 %vm1341_vm2, %v1273_v55  ;;  %v140_v55 = vld [vmem:[%s7268_s0 + $0x3b8] sm:$0xff] }
 0x1c6   :  { %4141 = vmatprep.mubr.msk.f32.mxu0 %vm4829_vm0, %v4830_v3  ;;  %4362 = vmatprep.mubr.msk.f32.mxu1 %vm4829_vm0, %v4830_v3 }
 0x1c7   :  { %v4581_v62 = vpop.eup %4580  ;;  %v1274_v63 = vmax.f32 %v883_v58, 0.0 }
 0x1c8   :  { %2787 = vrot.lane.b32.xlu1 %v4581_v62, %s4831_s15  ;;  %v887_v0 = vpop.f32.mrb[118].mxu0  ;;  %v1808_v2 = vpop.f32.mrb[10].mxu1 }
 0x1c9   :  { %v888_v4 = vadd.f32 %v5775_v41, %v887_v0  ;;  %2413 = vst.msk [vmem:[%s7269_s2 + $0x28] sm:$0xff] %vm2407_vm3, %v1808_v2  ;;  %4586 = vtanh.f32 %v1808_v2  ;;  %v3984_v5 = vpop.f32.mrb[119].mxu0  ;;  %4142 = vmatmul.mubr.msk.f32.gmra.mrb[224].mxu0 %vm150_vm1, %v133_v61  ;;  %v4205_v6 = vpop.f32.mrb[11].mxu1  ;;  %4363 = vmatmul.mubr.msk.f32.gmra.mrb[116].mxu1 %vm1341_vm2, %v1274_v63  ;;  %v141_v63 = vld [vmem:[%s7268_s0 + $0x3c0] sm:$0xff] }
 0x1ca   :  { %4144 = vmatprep.mubr.msk.f32.mxu0 %vm4829_vm0, %v4830_v3  ;;  %4365 = vmatprep.mubr.msk.f32.mxu1 %vm4829_vm0, %v4830_v3 }
 0x1cb   :  { %v4583_v8 = vpop.eup %4582  ;;  %v1275_v9 = vmax.f32 %v888_v4, 0.0 }
 0x1cc   :  { %2789 = vrot.lane.b32.xlu1 %v4583_v8, %s4831_s15  ;;  %v892_v10 = vpop.f32.mrb[120].mxu0  ;;  %v1813_v11 = vpop.f32.mrb[12].mxu1 }
 0x1cd   :  { %v893_v12 = vadd.f32 %v5775_v41, %v892_v10  ;;  %2414 = vst.msk [vmem:[%s7269_s2 + $0x30] sm:$0xff] %vm2407_vm3, %v1813_v11  ;;  %4588 = vtanh.f32 %v1813_v11  ;;  %v3987_v13 = vpop.f32.mrb[121].mxu0  ;;  %4145 = vmatmul.mubr.msk.f32.gmra.mrb[226].mxu0 %vm150_vm1, %v134_v7  ;;  %v4208_v14 = vpop.f32.mrb[13].mxu1  ;;  %4366 = vmatmul.mubr.msk.f32.gmra.mrb[118].mxu1 %vm1341_vm2, %v1275_v9  ;;  %v142_v9 = vld [vmem:[%s7268_s0 + $0x3c8] sm:$0xff] }
 0x1ce   :  { %4147 = vmatprep.mubr.msk.f32.mxu0 %vm4829_vm0, %v4830_v3  ;;  %4368 = vmatprep.mubr.msk.f32.mxu1 %vm4829_vm0, %v4830_v3 }
 0x1cf   :  { %v4585_v16 = vpop.eup %4584  ;;  %v1276_v17 = vmax.f32 %v893_v12, 0.0 }
 0x1d0   :  { %2791 = vrot.lane.b32.xlu0 %v4585_v16, %s4831_s15  ;;  %v897_v18 = vpop.f32.mrb[122].mxu0  ;;  %v1818_v19 = vpop.f32.mrb[14].mxu1 }
 0x1d1   :  { %v898_v20 = vadd.f32 %v5775_v41, %v897_v18  ;;  %2415 = vst.msk [vmem:[%s7269_s2 + $0x38] sm:$0xff] %vm2407_vm3, %v1818_v19  ;;  %4590 = vtanh.f32 %v1818_v19  ;;  %v3990_v21 = vpop.f32.mrb[123].mxu0  ;;  %4148 = vmatmul.mubr.msk.f32.gmra.mrb[228].mxu0 %vm150_vm1, %v135_v15  ;;  %v4211_v22 = vpop.f32.mrb[15].mxu1  ;;  %4369 = vmatmul.mubr.msk.f32.gmra.mrb[120].mxu1 %vm1341_vm2, %v1276_v17  ;;  %v143_v17 = vld [vmem:[%s7268_s0 + $0x3d0] sm:$0xff] }
 0x1d2   :  { %4150 = vmatprep.mubr.msk.f32.mxu0 %vm4829_vm0, %v4830_v3  ;;  %4371 = vmatprep.mubr.msk.f32.mxu1 %vm4829_vm0, %v4830_v3 }
 0x1d3   :  { %v4587_v24 = vpop.eup %4586  ;;  %v1277_v25 = vmax.f32 %v898_v20, 0.0 }
 0x1d4   :  { %2793 = vrot.lane.b32.xlu1 %v4587_v24, %s4831_s15  ;;  %v902_v26 = vpop.f32.mrb[124].mxu0  ;;  %v1823_v27 = vpop.f32.mrb[16].mxu1 }
 0x1d5   :  { %v903_v28 = vadd.f32 %v5775_v41, %v902_v26  ;;  %2416 = vst.msk [vmem:[%s7269_s2 + $0x40] sm:$0xff] %vm2407_vm3, %v1823_v27  ;;  %4592 = vtanh.f32 %v1823_v27  ;;  %v3993_v29 = vpop.f32.mrb[125].mxu0  ;;  %4151 = vmatmul.mubr.msk.f32.gmra.mrb[230].mxu0 %vm150_vm1, %v136_v23  ;;  %v4214_v30 = vpop.f32.mrb[17].mxu1  ;;  %4372 = vmatmul.mubr.msk.f32.gmra.mrb[122].mxu1 %vm1341_vm2, %v1277_v25  ;;  %v144_v25 = vld [vmem:[%s7268_s0 + $0x3d8] sm:$0xff] }
 0x1d6   :  { %4153 = vmatprep.mubr.msk.f32.mxu0 %vm4829_vm0, %v4830_v3  ;;  %4374 = vmatprep.mubr.msk.f32.mxu1 %vm4829_vm0, %v4830_v3 }
 0x1d7   :  { %v4589_v32 = vpop.eup %4588  ;;  %v1278_v33 = vmax.f32 %v903_v28, 0.0 }
 0x1d8   :  { %2795 = vrot.lane.b32.xlu0 %v4589_v32, %s4831_s15  ;;  %v907_v34 = vpop.f32.mrb[126].mxu0  ;;  %v1828_v35 = vpop.f32.mrb[18].mxu1 }
 0x1d9   :  { %v908_v36 = vadd.f32 %v5775_v41, %v907_v34  ;;  %2417 = vst.msk [vmem:[%s7269_s2 + $0x48] sm:$0xff] %vm2407_vm3, %v1828_v35  ;;  %4594 = vtanh.f32 %v1828_v35  ;;  %v3996_v37 = vpop.f32.mrb[127].mxu0  ;;  %4154 = vmatmul.mubr.msk.f32.gmra.mrb[232].mxu0 %vm150_vm1, %v137_v31  ;;  %v4217_v1 = vpop.f32.mrb[19].mxu1  ;;  %4375 = vmatmul.mubr.msk.f32.gmra.mrb[124].mxu1 %vm1341_vm2, %v1278_v33  ;;  %v145_v33 = vld [vmem:[%s7268_s0 + $0x3e0] sm:$0xff] }
 0x1da   :  { %4156 = vmatprep.mubr.msk.f32.mxu0 %vm4829_vm0, %v4830_v3  ;;  %4377 = vmatprep.mubr.msk.f32.mxu1 %vm4829_vm0, %v4830_v3 }
 0x1db   :  { %v4591_v39 = vpop.eup %4590  ;;  %v1279_v40 = vmax.f32 %v908_v36, 0.0 }
 0x1dc   :  { %2797 = vrot.lane.b32.xlu1 %v4591_v39, %s4831_s15  ;;  %v912_v42 = vpop.f32.mrb[128].mxu0  ;;  %v1833_v43 = vpop.f32.mrb[20].mxu1 }
 0x1dd   :  { %v913_v44 = vadd.f32 %v5775_v41, %v912_v42  ;;  %2418 = vst.msk [vmem:[%s7269_s2 + $0x50] sm:$0xff] %vm2407_vm3, %v1833_v43  ;;  %4596 = vtanh.f32 %v1833_v43  ;;  %v3999_v45 = vpop.f32.mrb[129].mxu0  ;;  %4157 = vmatmul.mubr.msk.f32.gmra.mrb[234].mxu0 %vm150_vm1, %v138_v38  ;;  %v4220_v46 = vpop.f32.mrb[21].mxu1  ;;  %4378 = vmatmul.mubr.msk.f32.gmra.mrb[126].mxu1 %vm1341_vm2, %v1279_v40 }
 0x1de   :  { %4159 = vmatprep.mubr.msk.f32.mxu0 %vm4829_vm0, %v4830_v3  ;;  %4380 = vmatprep.mubr.msk.f32.mxu1 %vm4829_vm0, %v4830_v3 }
 0x1df   :  { %v4593_v48 = vpop.eup %4592  ;;  %v1280_v49 = vmax.f32 %v913_v44, 0.0 }
 0x1e0   :  { %2799 = vrot.lane.b32.xlu0 %v4593_v48, %s4831_s15  ;;  %v917_v50 = vpop.f32.mrb[130].mxu0  ;;  %v1838_v51 = vpop.f32.mrb[22].mxu1 }
 0x1e1   :  { %v918_v52 = vadd.f32 %v5775_v41, %v917_v50  ;;  %2419 = vst.msk [vmem:[%s7269_s2 + $0x58] sm:$0xff] %vm2407_vm3, %v1838_v51  ;;  %4598 = vtanh.f32 %v1838_v51  ;;  %v4002_v53 = vpop.f32.mrb[131].mxu0  ;;  %4160 = vmatmul.mubr.msk.f32.gmra.mrb[236].mxu0 %vm150_vm1, %v139_v47  ;;  %v4223_v54 = vpop.f32.mrb[23].mxu1  ;;  %4381 = vmatmul.mubr.msk.f32.gmra.mrb[128].mxu1 %vm1341_vm2, %v1280_v49 }
 0x1e2   :  { %4162 = vmatprep.mubr.msk.f32.mxu0 %vm4829_vm0, %v4830_v3  ;;  %4383 = vmatprep.mubr.msk.f32.mxu1 %vm4829_vm0, %v4830_v3 }
 0x1e3   :  { %v4595_v56 = vpop.eup %4594  ;;  %v1281_v57 = vmax.f32 %v918_v52, 0.0 }
 0x1e4   :  { %2801 = vrot.lane.b32.xlu1 %v4595_v56, %s4831_s15  ;;  %v922_v58 = vpop.f32.mrb[132].mxu0  ;;  %v1843_v59 = vpop.f32.mrb[24].mxu1 }
 0x1e5   :  { %v923_v60 = vadd.f32 %v5775_v41, %v922_v58  ;;  %2420 = vst.msk [vmem:[%s7269_s2 + $0x60] sm:$0xff] %vm2407_vm3, %v1843_v59  ;;  %4600 = vtanh.f32 %v1843_v59  ;;  %v4005_v61 = vpop.f32.mrb[133].mxu0  ;;  %4163 = vmatmul.mubr.msk.f32.gmra.mrb[238].mxu0 %vm150_vm1, %v140_v55  ;;  %v4226_v62 = vpop.f32.mrb[25].mxu1  ;;  %4384 = vmatmul.mubr.msk.f32.gmra.mrb[130].mxu1 %vm1341_vm2, %v1281_v57 }
 0x1e6   :  { %4165 = vmatprep.mubr.msk.f32.mxu0 %vm4829_vm0, %v4830_v3  ;;  %4386 = vmatprep.mubr.msk.f32.mxu1 %vm4829_vm0, %v4830_v3 }
 0x1e7   :  { %v4597_v0 = vpop.eup %4596  ;;  %v1282_v2 = vmax.f32 %v923_v60, 0.0 }
 0x1e8   :  { %2803 = vrot.lane.b32.xlu0 %v4597_v0, %s4831_s15  ;;  %v927_v4 = vpop.f32.mrb[134].mxu0  ;;  %v1848_v5 = vpop.f32.mrb[26].mxu1 }
 0x1e9   :  { %v928_v6 = vadd.f32 %v5775_v41, %v927_v4  ;;  %2421 = vst.msk [vmem:[%s7269_s2 + $0x68] sm:$0xff] %vm2407_vm3, %v1848_v5  ;;  %4602 = vtanh.f32 %v1848_v5  ;;  %v4008_v7 = vpop.f32.mrb[135].mxu0  ;;  %4166 = vmatmul.mubr.msk.f32.gmra.mrb[240].mxu0 %vm150_vm1, %v141_v63  ;;  %v4229_v8 = vpop.f32.mrb[27].mxu1  ;;  %4387 = vmatmul.mubr.msk.f32.gmra.mrb[132].mxu1 %vm1341_vm2, %v1282_v2 }
 0x1ea   :  { %4168 = vmatprep.mubr.msk.f32.mxu0 %vm4829_vm0, %v4830_v3  ;;  %4389 = vmatprep.mubr.msk.f32.mxu1 %vm4829_vm0, %v4830_v3 }
 0x1eb   :  { %v4599_v10 = vpop.eup %4598  ;;  %v1283_v11 = vmax.f32 %v928_v6, 0.0 }
 0x1ec   :  { %2805 = vrot.lane.b32.xlu1 %v4599_v10, %s4831_s15  ;;  %v932_v12 = vpop.f32.mrb[136].mxu0  ;;  %v1853_v13 = vpop.f32.mrb[28].mxu1 }
 0x1ed   :  { %v933_v14 = vadd.f32 %v5775_v41, %v932_v12  ;;  %2422 = vst.msk [vmem:[%s7269_s2 + $0x70] sm:$0xff] %vm2407_vm3, %v1853_v13  ;;  %4604 = vtanh.f32 %v1853_v13  ;;  %v4011_v15 = vpop.f32.mrb[137].mxu0  ;;  %4169 = vmatmul.mubr.msk.f32.gmra.mrb[242].mxu0 %vm150_vm1, %v142_v9  ;;  %v4232_v16 = vpop.f32.mrb[29].mxu1  ;;  %4390 = vmatmul.mubr.msk.f32.gmra.mrb[134].mxu1 %vm1341_vm2, %v1283_v11 }
 0x1ee   :  { %4171 = vmatprep.mubr.msk.f32.mxu0 %vm4829_vm0, %v4830_v3  ;;  %4392 = vmatprep.mubr.msk.f32.mxu1 %vm4829_vm0, %v4830_v3 }
 0x1ef   :  { %v4601_v18 = vpop.eup %4600  ;;  %v1284_v19 = vmax.f32 %v933_v14, 0.0 }
 0x1f0   :  { %2807 = vrot.lane.b32.xlu0 %v4601_v18, %s4831_s15  ;;  %v937_v20 = vpop.f32.mrb[138].mxu0  ;;  %v1858_v21 = vpop.f32.mrb[30].mxu1 }
 0x1f1   :  { %v938_v22 = vadd.f32 %v5775_v41, %v937_v20  ;;  %2423 = vst.msk [vmem:[%s7269_s2 + $0x78] sm:$0xff] %vm2407_vm3, %v1858_v21  ;;  %4606 = vtanh.f32 %v1858_v21  ;;  %v4014_v23 = vpop.f32.mrb[139].mxu0  ;;  %4172 = vmatmul.mubr.msk.f32.gmra.mrb[244].mxu0 %vm150_vm1, %v143_v17  ;;  %v4235_v24 = vpop.f32.mrb[31].mxu1  ;;  %4393 = vmatmul.mubr.msk.f32.gmra.mrb[136].mxu1 %vm1341_vm2, %v1284_v19 }
 0x1f2   :  { %4174 = vmatprep.mubr.msk.f32.mxu0 %vm4829_vm0, %v4830_v3  ;;  %4395 = vmatprep.mubr.msk.f32.mxu1 %vm4829_vm0, %v4830_v3 }
 0x1f3   :  { %v4603_v26 = vpop.eup %4602  ;;  %v1285_v27 = vmax.f32 %v938_v22, 0.0 }
 0x1f4   :  { %2809 = vrot.lane.b32.xlu1 %v4603_v26, %s4831_s15  ;;  %v942_v28 = vpop.f32.mrb[140].mxu0  ;;  %v1863_v29 = vpop.f32.mrb[32].mxu1 }
 0x1f5   :  { %v943_v30 = vadd.f32 %v5775_v41, %v942_v28  ;;  %2424 = vst.msk [vmem:[%s7269_s2 + $0x80] sm:$0xff] %vm2407_vm3, %v1863_v29  ;;  %4608 = vtanh.f32 %v1863_v29  ;;  %v4017_v31 = vpop.f32.mrb[141].mxu0  ;;  %4175 = vmatmul.mubr.msk.f32.gmra.mrb[246].mxu0 %vm150_vm1, %v144_v25  ;;  %v4238_v32 = vpop.f32.mrb[33].mxu1  ;;  %4396 = vmatmul.mubr.msk.f32.gmra.mrb[138].mxu1 %vm1341_vm2, %v1285_v27 }
 0x1f6   :  { %4177 = vmatprep.mubr.msk.f32.mxu0 %vm4829_vm0, %v4830_v3  ;;  %4398 = vmatprep.mubr.msk.f32.mxu1 %vm4829_vm0, %v4830_v3 }
 0x1f7   :  { %v4605_v34 = vpop.eup %4604  ;;  %v1286_v35 = vmax.f32 %v943_v30, 0.0 }
 0x1f8   :  { %2811 = vrot.lane.b32.xlu0 %v4605_v34, %s4831_s15  ;;  %v947_v36 = vpop.f32.mrb[142].mxu0  ;;  %v1868_v37 = vpop.f32.mrb[34].mxu1 }
 0x1f9   :  { %v948_v1 = vadd.f32 %v5775_v41, %v947_v36  ;;  %2425 = vst.msk [vmem:[%s7269_s2 + $0x88] sm:$0xff] %vm2407_vm3, %v1868_v37  ;;  %4610 = vtanh.f32 %v1868_v37  ;;  %v4020_v38 = vpop.f32.mrb[143].mxu0  ;;  %4178 = vmatmul.mubr.msk.f32.gmra.mrb[248].mxu0 %vm150_vm1, %v145_v33  ;;  %v4241_v39 = vpop.f32.mrb[35].mxu1  ;;  %4399 = vmatmul.mubr.msk.f32.gmra.mrb[140].mxu1 %vm1341_vm2, %v1286_v35 }
 0x1fa   :  { %4401 = vmatprep.mubr.msk.f32.mxu1 %vm4829_vm0, %v4830_v3 }
 0x1fb   :  { %v4607_v40 = vpop.eup %4606  ;;  %v1287_v42 = vmax.f32 %v948_v1, 0.0 }
 0x1fc   :  { %2813 = vrot.lane.b32.xlu1 %v4607_v40, %s4831_s15  ;;  %v952_v43 = vpop.f32.mrb[144].mxu0  ;;  %v1873_v44 = vpop.f32.mrb[36].mxu1 }
 0x1fd   :  { %v953_v45 = vadd.f32 %v5775_v41, %v952_v43  ;;  %2426 = vst.msk [vmem:[%s7269_s2 + $0x90] sm:$0xff] %vm2407_vm3, %v1873_v44  ;;  %4612 = vtanh.f32 %v1873_v44  ;;  %v4023_v46 = vpop.f32.mrb[145].mxu0  ;;  %v4244_v47 = vpop.f32.mrb[37].mxu1  ;;  %4402 = vmatmul.mubr.msk.f32.gmra.mrb[142].mxu1 %vm1341_vm2, %v1287_v42 }
 0x1fe   :  { %4404 = vmatprep.mubr.msk.f32.mxu1 %vm4829_vm0, %v4830_v3 }
 0x1ff   :  { %v4609_v48 = vpop.eup %4608  ;;  %v1288_v49 = vmax.f32 %v953_v45, 0.0 }
 0x200   :  { %2815 = vrot.lane.b32.xlu0 %v4609_v48, %s4831_s15  ;;  %v957_v50 = vpop.f32.mrb[146].mxu0  ;;  %v1878_v51 = vpop.f32.mrb[38].mxu1 }
 0x201   :  { %v958_v52 = vadd.f32 %v5775_v41, %v957_v50  ;;  %2427 = vst.msk [vmem:[%s7269_s2 + $0x98] sm:$0xff] %vm2407_vm3, %v1878_v51  ;;  %4614 = vtanh.f32 %v1878_v51  ;;  %v4026_v53 = vpop.f32.mrb[147].mxu0  ;;  %v4247_v54 = vpop.f32.mrb[39].mxu1  ;;  %4405 = vmatmul.mubr.msk.f32.gmra.mrb[144].mxu1 %vm1341_vm2, %v1288_v49 }
 0x202   :  { %4407 = vmatprep.mubr.msk.f32.mxu1 %vm4829_vm0, %v4830_v3 }
 0x203   :  { %v4611_v55 = vpop.eup %4610  ;;  %v1289_v56 = vmax.f32 %v958_v52, 0.0 }
 0x204   :  { %2817 = vrot.lane.b32.xlu1 %v4611_v55, %s4831_s15  ;;  %v962_v57 = vpop.f32.mrb[148].mxu0  ;;  %v1883_v58 = vpop.f32.mrb[40].mxu1 }
 0x205   :  { %v963_v59 = vadd.f32 %v5775_v41, %v962_v57  ;;  %2428 = vst.msk [vmem:[%s7269_s2 + $0xa0] sm:$0xff] %vm2407_vm3, %v1883_v58  ;;  %4616 = vtanh.f32 %v1883_v58  ;;  %v4029_v60 = vpop.f32.mrb[149].mxu0  ;;  %v4250_v61 = vpop.f32.mrb[41].mxu1  ;;  %4408 = vmatmul.mubr.msk.f32.gmra.mrb[146].mxu1 %vm1341_vm2, %v1289_v56 }
 0x206   :  { %4410 = vmatprep.mubr.msk.f32.mxu1 %vm4829_vm0, %v4830_v3 }
 0x207   :  { %v4613_v62 = vpop.eup %4612  ;;  %v1290_v63 = vmax.f32 %v963_v59, 0.0 }
 0x208   :  { %2819 = vrot.lane.b32.xlu0 %v4613_v62, %s4831_s15  ;;  %v967_v0 = vpop.f32.mrb[150].mxu0  ;;  %v1888_v2 = vpop.f32.mrb[42].mxu1 }
 0x209   :  { %v968_v4 = vadd.f32 %v5775_v41, %v967_v0  ;;  %2429 = vst.msk [vmem:[%s7269_s2 + $0xa8] sm:$0xff] %vm2407_vm3, %v1888_v2  ;;  %4618 = vtanh.f32 %v1888_v2  ;;  %v4032_v5 = vpop.f32.mrb[151].mxu0  ;;  %v4253_v6 = vpop.f32.mrb[43].mxu1  ;;  %4411 = vmatmul.mubr.msk.f32.gmra.mrb[148].mxu1 %vm1341_vm2, %v1290_v63 }
 0x20a   :  { %4413 = vmatprep.mubr.msk.f32.mxu1 %vm4829_vm0, %v4830_v3 }
 0x20b   :  { %v4615_v7 = vpop.eup %4614  ;;  %v1291_v8 = vmax.f32 %v968_v4, 0.0 }
 0x20c   :  { %2821 = vrot.lane.b32.xlu1 %v4615_v7, %s4831_s15  ;;  %v972_v9 = vpop.f32.mrb[152].mxu0  ;;  %v1893_v10 = vpop.f32.mrb[44].mxu1 }
 0x20d   :  { %v973_v11 = vadd.f32 %v5775_v41, %v972_v9  ;;  %2430 = vst.msk [vmem:[%s7269_s2 + $0xb0] sm:$0xff] %vm2407_vm3, %v1893_v10  ;;  %4620 = vtanh.f32 %v1893_v10  ;;  %v4035_v12 = vpop.f32.mrb[153].mxu0  ;;  %v4256_v13 = vpop.f32.mrb[45].mxu1  ;;  %4414 = vmatmul.mubr.msk.f32.gmra.mrb[150].mxu1 %vm1341_vm2, %v1291_v8 }
 0x20e   :  { %4416 = vmatprep.mubr.msk.f32.mxu1 %vm4829_vm0, %v4830_v3 }
 0x20f   :  { %v4617_v14 = vpop.eup %4616  ;;  %v1292_v15 = vmax.f32 %v973_v11, 0.0 }
 0x210   :  { %2823 = vrot.lane.b32.xlu0 %v4617_v14, %s4831_s15  ;;  %v977_v16 = vpop.f32.mrb[154].mxu0  ;;  %v1898_v17 = vpop.f32.mrb[46].mxu1 }
 0x211   :  { %v978_v18 = vadd.f32 %v5775_v41, %v977_v16  ;;  %2431 = vst.msk [vmem:[%s7269_s2 + $0xb8] sm:$0xff] %vm2407_vm3, %v1898_v17  ;;  %4622 = vtanh.f32 %v1898_v17  ;;  %v4038_v19 = vpop.f32.mrb[155].mxu0  ;;  %v4259_v20 = vpop.f32.mrb[47].mxu1  ;;  %4417 = vmatmul.mubr.msk.f32.gmra.mrb[152].mxu1 %vm1341_vm2, %v1292_v15 }
 0x212   :  { %4419 = vmatprep.mubr.msk.f32.mxu1 %vm4829_vm0, %v4830_v3 }
 0x213   :  { %v4619_v21 = vpop.eup %4618  ;;  %v1293_v22 = vmax.f32 %v978_v18, 0.0 }
 0x214   :  { %2825 = vrot.lane.b32.xlu1 %v4619_v21, %s4831_s15  ;;  %v982_v23 = vpop.f32.mrb[156].mxu0  ;;  %v1903_v24 = vpop.f32.mrb[48].mxu1 }
 0x215   :  { %v983_v25 = vadd.f32 %v5775_v41, %v982_v23  ;;  %2432 = vst.msk [vmem:[%s7269_s2 + $0xc0] sm:$0xff] %vm2407_vm3, %v1903_v24  ;;  %4624 = vtanh.f32 %v1903_v24  ;;  %v4041_v26 = vpop.f32.mrb[157].mxu0  ;;  %v4262_v27 = vpop.f32.mrb[49].mxu1  ;;  %4420 = vmatmul.mubr.msk.f32.gmra.mrb[154].mxu1 %vm1341_vm2, %v1293_v22 }
 0x216   :  { %4422 = vmatprep.mubr.msk.f32.mxu1 %vm4829_vm0, %v4830_v3 }
 0x217   :  { %v4621_v28 = vpop.eup %4620  ;;  %v1294_v29 = vmax.f32 %v983_v25, 0.0 }
 0x218   :  { %2827 = vrot.lane.b32.xlu0 %v4621_v28, %s4831_s15  ;;  %v987_v30 = vpop.f32.mrb[158].mxu0  ;;  %v1908_v31 = vpop.f32.mrb[50].mxu1 }
 0x219   :  { %v988_v32 = vadd.f32 %v5775_v41, %v987_v30  ;;  %2433 = vst.msk [vmem:[%s7269_s2 + $0xc8] sm:$0xff] %vm2407_vm3, %v1908_v31  ;;  %4626 = vtanh.f32 %v1908_v31  ;;  %v4044_v33 = vpop.f32.mrb[159].mxu0  ;;  %v4265_v34 = vpop.f32.mrb[51].mxu1  ;;  %4423 = vmatmul.mubr.msk.f32.gmra.mrb[156].mxu1 %vm1341_vm2, %v1294_v29 }
 0x21a   :  { %4425 = vmatprep.mubr.msk.f32.mxu1 %vm4829_vm0, %v4830_v3 }
 0x21b   :  { %v4623_v35 = vpop.eup %4622  ;;  %v1295_v36 = vmax.f32 %v988_v32, 0.0 }
 0x21c   :  { %2829 = vrot.lane.b32.xlu1 %v4623_v35, %s4831_s15  ;;  %v992_v37 = vpop.f32.mrb[160].mxu0  ;;  %v1913_v1 = vpop.f32.mrb[52].mxu1 }
 0x21d   :  { %v993_v38 = vadd.f32 %v5775_v41, %v992_v37  ;;  %2434 = vst.msk [vmem:[%s7269_s2 + $0xd0] sm:$0xff] %vm2407_vm3, %v1913_v1  ;;  %4628 = vtanh.f32 %v1913_v1  ;;  %v4047_v39 = vpop.f32.mrb[161].mxu0  ;;  %v4268_v40 = vpop.f32.mrb[53].mxu1  ;;  %4426 = vmatmul.mubr.msk.f32.gmra.mrb[158].mxu1 %vm1341_vm2, %v1295_v36 }
 0x21e   :  { %4428 = vmatprep.mubr.msk.f32.mxu1 %vm4829_vm0, %v4830_v3 }
 0x21f   :  { %v4625_v42 = vpop.eup %4624  ;;  %v1296_v43 = vmax.f32 %v993_v38, 0.0 }
 0x220   :  { %2831 = vrot.lane.b32.xlu0 %v4625_v42, %s4831_s15  ;;  %v997_v44 = vpop.f32.mrb[162].mxu0  ;;  %v1918_v45 = vpop.f32.mrb[54].mxu1 }
 0x221   :  { %v998_v46 = vadd.f32 %v5775_v41, %v997_v44  ;;  %2435 = vst.msk [vmem:[%s7269_s2 + $0xd8] sm:$0xff] %vm2407_vm3, %v1918_v45  ;;  %4630 = vtanh.f32 %v1918_v45  ;;  %v4050_v47 = vpop.f32.mrb[163].mxu0  ;;  %v4271_v48 = vpop.f32.mrb[55].mxu1  ;;  %4429 = vmatmul.mubr.msk.f32.gmra.mrb[160].mxu1 %vm1341_vm2, %v1296_v43 }
 0x222   :  { %4431 = vmatprep.mubr.msk.f32.mxu1 %vm4829_vm0, %v4830_v3 }
 0x223   :  { %v4627_v49 = vpop.eup %4626  ;;  %v1297_v50 = vmax.f32 %v998_v46, 0.0 }
 0x224   :  { %2833 = vrot.lane.b32.xlu1 %v4627_v49, %s4831_s15  ;;  %v1002_v51 = vpop.f32.mrb[164].mxu0  ;;  %v1923_v52 = vpop.f32.mrb[56].mxu1 }
 0x225   :  { %v1003_v53 = vadd.f32 %v5775_v41, %v1002_v51  ;;  %2436 = vst.msk [vmem:[%s7269_s2 + $0xe0] sm:$0xff] %vm2407_vm3, %v1923_v52  ;;  %4632 = vtanh.f32 %v1923_v52  ;;  %v4053_v54 = vpop.f32.mrb[165].mxu0  ;;  %v4274_v55 = vpop.f32.mrb[57].mxu1  ;;  %4432 = vmatmul.mubr.msk.f32.gmra.mrb[162].mxu1 %vm1341_vm2, %v1297_v50 }
 0x226   :  { %4434 = vmatprep.mubr.msk.f32.mxu1 %vm4829_vm0, %v4830_v3 }
 0x227   :  { %v4629_v56 = vpop.eup %4628  ;;  %v1298_v57 = vmax.f32 %v1003_v53, 0.0 }
 0x228   :  { %2835 = vrot.lane.b32.xlu0 %v4629_v56, %s4831_s15  ;;  %v1007_v58 = vpop.f32.mrb[166].mxu0  ;;  %v1928_v59 = vpop.f32.mrb[58].mxu1 }
 0x229   :  { %v1008_v60 = vadd.f32 %v5775_v41, %v1007_v58  ;;  %2437 = vst.msk [vmem:[%s7269_s2 + $0xe8] sm:$0xff] %vm2407_vm3, %v1928_v59  ;;  %4634 = vtanh.f32 %v1928_v59  ;;  %v4056_v61 = vpop.f32.mrb[167].mxu0  ;;  %v4277_v62 = vpop.f32.mrb[59].mxu1  ;;  %4435 = vmatmul.mubr.msk.f32.gmra.mrb[164].mxu1 %vm1341_vm2, %v1298_v57 }
 0x22a   :  { %4437 = vmatprep.mubr.msk.f32.mxu1 %vm4829_vm0, %v4830_v3 }
 0x22b   :  { %v4631_v63 = vpop.eup %4630  ;;  %v1299_v0 = vmax.f32 %v1008_v60, 0.0 }
 0x22c   :  { %2837 = vrot.lane.b32.xlu1 %v4631_v63, %s4831_s15  ;;  %v1012_v2 = vpop.f32.mrb[168].mxu0  ;;  %v1933_v4 = vpop.f32.mrb[60].mxu1 }
 0x22d   :  { %v1013_v5 = vadd.f32 %v5775_v41, %v1012_v2  ;;  %2438 = vst.msk [vmem:[%s7269_s2 + $0xf0] sm:$0xff] %vm2407_vm3, %v1933_v4  ;;  %4636 = vtanh.f32 %v1933_v4  ;;  %v4059_v6 = vpop.f32.mrb[169].mxu0  ;;  %v4280_v7 = vpop.f32.mrb[61].mxu1  ;;  %4438 = vmatmul.mubr.msk.f32.gmra.mrb[166].mxu1 %vm1341_vm2, %v1299_v0 }
 0x22e   :  { %4440 = vmatprep.mubr.msk.f32.mxu1 %vm4829_vm0, %v4830_v3 }
 0x22f   :  { %v4633_v8 = vpop.eup %4632  ;;  %v1300_v9 = vmax.f32 %v1013_v5, 0.0 }
 0x230   :  { %2839 = vrot.lane.b32.xlu0 %v4633_v8, %s4831_s15  ;;  %v1017_v10 = vpop.f32.mrb[170].mxu0  ;;  %v1938_v11 = vpop.f32.mrb[62].mxu1 }
 0x231   :  { %v1018_v12 = vadd.f32 %v5775_v41, %v1017_v10  ;;  %2439 = vst.msk [vmem:[%s7269_s2 + $0xf8] sm:$0xff] %vm2407_vm3, %v1938_v11  ;;  %4638 = vtanh.f32 %v1938_v11  ;;  %v4062_v13 = vpop.f32.mrb[171].mxu0  ;;  %v4283_v14 = vpop.f32.mrb[63].mxu1  ;;  %4441 = vmatmul.mubr.msk.f32.gmra.mrb[168].mxu1 %vm1341_vm2, %v1300_v9 }
 0x232   :  { %v2784_v15 = vpop.permute.xlu0 %2783  ;;  %4443 = vmatprep.mubr.msk.f32.mxu1 %vm4829_vm0, %v4830_v3 }
 0x233   :  { %v4635_v16 = vpop.eup %4634  ;;  %v1301_v17 = vmax.f32 %v1018_v12, 0.0  ;;  %3158 = vst.msk [vmem:[%s7270_s3] sm:$0xff] %vm2407_vm3, %v2784_v15 }
 0x234   :  { %2841 = vrot.lane.b32.xlu1 %v4635_v16, %s4831_s15  ;;  %v1022_v18 = vpop.f32.mrb[172].mxu0  ;;  %v1943_v19 = vpop.f32.mrb[64].mxu1 }
 0x235   :  { %v1023_v20 = vadd.f32 %v5775_v41, %v1022_v18  ;;  %2440 = vst.msk [vmem:[%s7269_s2 + $0x100] sm:$0xff] %vm2407_vm3, %v1943_v19  ;;  %4640 = vtanh.f32 %v1943_v19  ;;  %v4065_v21 = vpop.f32.mrb[173].mxu0  ;;  %v4286_v22 = vpop.f32.mrb[65].mxu1  ;;  %4444 = vmatmul.mubr.msk.f32.gmra.mrb[170].mxu1 %vm1341_vm2, %v1301_v17 }
 0x236   :  { %v2786_v23 = vpop.permute.xlu0 %2785  ;;  %4446 = vmatprep.mubr.msk.f32.mxu1 %vm4829_vm0, %v4830_v3  ;;  %v6249_v21 = vld [vmem:[%s7267_s1 + $0x18] ss:$0 sm:$0xff] }
 0x237   :  { %v4637_v24 = vpop.eup %4636  ;;  %v1302_v25 = vmax.f32 %v1023_v20, 0.0  ;;  %3159 = vst.msk [vmem:[%s7270_s3 + $0x8] sm:$0xff] %vm2407_vm3, %v2786_v23 }
 0x238   :  { %2843 = vrot.lane.b32.xlu0 %v4637_v24, %s4831_s15  ;;  %v1027_v26 = vpop.f32.mrb[174].mxu0  ;;  %v1948_v27 = vpop.f32.mrb[66].mxu1 }
 0x239   :  { %v1028_v28 = vadd.f32 %v5775_v41, %v1027_v26  ;;  %2441 = vst.msk [vmem:[%s7269_s2 + $0x108] sm:$0xff] %vm2407_vm3, %v1948_v27  ;;  %4642 = vtanh.f32 %v1948_v27  ;;  %v4068_v29 = vpop.f32.mrb[175].mxu0  ;;  %v4289_v30 = vpop.f32.mrb[67].mxu1  ;;  %4447 = vmatmul.mubr.msk.f32.gmra.mrb[172].mxu1 %vm1341_vm2, %v1302_v25 }
 0x23a   :  { %v2788_v31 = vpop.permute.xlu1 %2787  ;;  %4449 = vmatprep.mubr.msk.f32.mxu1 %vm4829_vm0, %v4830_v3 }
 0x23b   :  { %v4639_v32 = vpop.eup %4638  ;;  %v1303_v33 = vmax.f32 %v1028_v28, 0.0  ;;  %3160 = vst.msk [vmem:[%s7270_s3 + $0x10] sm:$0xff] %vm2407_vm3, %v2788_v31 }
 0x23c   :  { %2845 = vrot.lane.b32.xlu1 %v4639_v32, %s4831_s15  ;;  %v1032_v34 = vpop.f32.mrb[176].mxu0  ;;  %v1953_v35 = vpop.f32.mrb[68].mxu1 }
 0x23d   :  { %v1033_v36 = vadd.f32 %v5775_v41, %v1032_v34  ;;  %2442 = vst.msk [vmem:[%s7269_s2 + $0x110] sm:$0xff] %vm2407_vm3, %v1953_v35  ;;  %4644 = vtanh.f32 %v1953_v35  ;;  %v4071_v37 = vpop.f32.mrb[177].mxu0  ;;  %v4292_v1 = vpop.f32.mrb[69].mxu1  ;;  %4450 = vmatmul.mubr.msk.f32.gmra.mrb[174].mxu1 %vm1341_vm2, %v1303_v33 }
 0x23e   :  { %v2790_v38 = vpop.permute.xlu1 %2789  ;;  %4452 = vmatprep.mubr.msk.f32.mxu1 %vm4829_vm0, %v4830_v3 }
 0x23f   :  { %v4641_v39 = vpop.eup %4640  ;;  %v1304_v40 = vmax.f32 %v1033_v36, 0.0  ;;  %3161 = vst.msk [vmem:[%s7270_s3 + $0x18] sm:$0xff] %vm2407_vm3, %v2790_v38 }
 0x240   :  { %2847 = vrot.lane.b32.xlu0 %v4641_v39, %s4831_s15  ;;  %v1037_v42 = vpop.f32.mrb[178].mxu0  ;;  %v1958_v43 = vpop.f32.mrb[70].mxu1 }
 0x241   :  { %v1038_v44 = vadd.f32 %v5775_v41, %v1037_v42  ;;  %2443 = vst.msk [vmem:[%s7269_s2 + $0x118] sm:$0xff] %vm2407_vm3, %v1958_v43  ;;  %4646 = vtanh.f32 %v1958_v43  ;;  %v4074_v45 = vpop.f32.mrb[179].mxu0  ;;  %v4295_v46 = vpop.f32.mrb[71].mxu1  ;;  %4453 = vmatmul.mubr.msk.f32.gmra.mrb[176].mxu1 %vm1341_vm2, %v1304_v40 }
 0x242   :  { %v2792_v47 = vpop.permute.xlu0 %2791  ;;  %4455 = vmatprep.mubr.msk.f32.mxu1 %vm4829_vm0, %v4830_v3 }
 0x243   :  { %v4643_v48 = vpop.eup %4642  ;;  %v1305_v49 = vmax.f32 %v1038_v44, 0.0  ;;  %3162 = vst.msk [vmem:[%s7270_s3 + $0x20] sm:$0xff] %vm2407_vm3, %v2792_v47 }
 0x244   :  { %2849 = vrot.lane.b32.xlu1 %v4643_v48, %s4831_s15  ;;  %v1042_v50 = vpop.f32.mrb[180].mxu0  ;;  %v1963_v51 = vpop.f32.mrb[72].mxu1 }
 0x245   :  { %v1043_v52 = vadd.f32 %v5775_v41, %v1042_v50  ;;  %2444 = vst.msk [vmem:[%s7269_s2 + $0x120] sm:$0xff] %vm2407_vm3, %v1963_v51  ;;  %4648 = vtanh.f32 %v1963_v51  ;;  %v4077_v53 = vpop.f32.mrb[181].mxu0  ;;  %v4298_v54 = vpop.f32.mrb[73].mxu1  ;;  %4456 = vmatmul.mubr.msk.f32.gmra.mrb[178].mxu1 %vm1341_vm2, %v1305_v49 }
 0x246   :  { %v2794_v55 = vpop.permute.xlu1 %2793  ;;  %4458 = vmatprep.mubr.msk.f32.mxu1 %vm4829_vm0, %v4830_v3 }
 0x247   :  { %v4645_v56 = vpop.eup %4644  ;;  %v1306_v57 = vmax.f32 %v1043_v52, 0.0  ;;  %3163 = vst.msk [vmem:[%s7270_s3 + $0x28] sm:$0xff] %vm2407_vm3, %v2794_v55 }
 0x248   :  { %2851 = vrot.lane.b32.xlu0 %v4645_v56, %s4831_s15  ;;  %v1047_v58 = vpop.f32.mrb[182].mxu0  ;;  %v1968_v59 = vpop.f32.mrb[74].mxu1 }
 0x249   :  { %v1048_v60 = vadd.f32 %v5775_v41, %v1047_v58  ;;  %2445 = vst.msk [vmem:[%s7269_s2 + $0x128] sm:$0xff] %vm2407_vm3, %v1968_v59  ;;  %4650 = vtanh.f32 %v1968_v59  ;;  %v4080_v61 = vpop.f32.mrb[183].mxu0  ;;  %v4301_v62 = vpop.f32.mrb[75].mxu1  ;;  %4459 = vmatmul.mubr.msk.f32.gmra.mrb[180].mxu1 %vm1341_vm2, %v1306_v57 }
 0x24a   :  { %v2796_v63 = vpop.permute.xlu0 %2795  ;;  %4461 = vmatprep.mubr.msk.f32.mxu1 %vm4829_vm0, %v4830_v3 }
 0x24b   :  { %v4647_v0 = vpop.eup %4646  ;;  %v1307_v2 = vmax.f32 %v1048_v60, 0.0  ;;  %3164 = vst.msk [vmem:[%s7270_s3 + $0x30] sm:$0xff] %vm2407_vm3, %v2796_v63 }
 0x24c   :  { %2853 = vrot.lane.b32.xlu1 %v4647_v0, %s4831_s15  ;;  %v1052_v4 = vpop.f32.mrb[184].mxu0  ;;  %v1973_v5 = vpop.f32.mrb[76].mxu1 }
 0x24d   :  { %v1053_v6 = vadd.f32 %v5775_v41, %v1052_v4  ;;  %2446 = vst.msk [vmem:[%s7269_s2 + $0x130] sm:$0xff] %vm2407_vm3, %v1973_v5  ;;  %4652 = vtanh.f32 %v1973_v5  ;;  %v4083_v7 = vpop.f32.mrb[185].mxu0  ;;  %v4304_v8 = vpop.f32.mrb[77].mxu1  ;;  %4462 = vmatmul.mubr.msk.f32.gmra.mrb[182].mxu1 %vm1341_vm2, %v1307_v2 }
 0x24e   :  { %v2798_v9 = vpop.permute.xlu1 %2797  ;;  %4464 = vmatprep.mubr.msk.f32.mxu1 %vm4829_vm0, %v4830_v3 }
 0x24f   :  { %v4649_v10 = vpop.eup %4648  ;;  %v1308_v11 = vmax.f32 %v1053_v6, 0.0  ;;  %3165 = vst.msk [vmem:[%s7270_s3 + $0x38] sm:$0xff] %vm2407_vm3, %v2798_v9 }
 0x250   :  { %2855 = vrot.lane.b32.xlu0 %v4649_v10, %s4831_s15  ;;  %v1057_v12 = vpop.f32.mrb[186].mxu0  ;;  %v1978_v13 = vpop.f32.mrb[78].mxu1 }
 0x251   :  { %v1058_v14 = vadd.f32 %v5775_v41, %v1057_v12  ;;  %2447 = vst.msk [vmem:[%s7269_s2 + $0x138] sm:$0xff] %vm2407_vm3, %v1978_v13  ;;  %4654 = vtanh.f32 %v1978_v13  ;;  %v4086_v15 = vpop.f32.mrb[187].mxu0  ;;  %v4307_v16 = vpop.f32.mrb[79].mxu1  ;;  %4465 = vmatmul.mubr.msk.f32.gmra.mrb[184].mxu1 %vm1341_vm2, %v1308_v11 }
 0x252   :  { %v2800_v17 = vpop.permute.xlu0 %2799  ;;  %4467 = vmatprep.mubr.msk.f32.mxu1 %vm4829_vm0, %v4830_v3 }
 0x253   :  { %v4651_v18 = vpop.eup %4650  ;;  %v1309_v19 = vmax.f32 %v1058_v14, 0.0  ;;  %3166 = vst.msk [vmem:[%s7270_s3 + $0x40] sm:$0xff] %vm2407_vm3, %v2800_v17 }
 0x254   :  { %2857 = vrot.lane.b32.xlu1 %v4651_v18, %s4831_s15  ;;  %v1062_v41 = vpop.f32.mrb[188].mxu0  ;;  %v1983_v20 = vpop.f32.mrb[80].mxu1 }
 0x255   :  { %v1063_v22 = vadd.f32 %v6249_v21, %v1062_v41  ;;  %2448 = vst.msk [vmem:[%s7269_s2 + $0x140] sm:$0xff] %vm2407_vm3, %v1983_v20  ;;  %4656 = vtanh.f32 %v1983_v20  ;;  %v4089_v23 = vpop.f32.mrb[189].mxu0  ;;  %v4310_v24 = vpop.f32.mrb[81].mxu1  ;;  %4468 = vmatmul.mubr.msk.f32.gmra.mrb[186].mxu1 %vm1341_vm2, %v1309_v19 }
 0x256   :  { %v2802_v25 = vpop.permute.xlu1 %2801  ;;  %4470 = vmatprep.mubr.msk.f32.mxu1 %vm4829_vm0, %v4830_v3 }
 0x257   :  { %v4653_v26 = vpop.eup %4652  ;;  %v1310_v27 = vmax.f32 %v1063_v22, 0.0  ;;  %3167 = vst.msk [vmem:[%s7270_s3 + $0x48] sm:$0xff] %vm2407_vm3, %v2802_v25 }
 0x258   :  { %2859 = vrot.lane.b32.xlu0 %v4653_v26, %s4831_s15  ;;  %v1067_v28 = vpop.f32.mrb[190].mxu0  ;;  %v1988_v29 = vpop.f32.mrb[82].mxu1 }
 0x259   :  { %v1068_v30 = vadd.f32 %v6249_v21, %v1067_v28  ;;  %2449 = vst.msk [vmem:[%s7269_s2 + $0x148] sm:$0xff] %vm2407_vm3, %v1988_v29  ;;  %4658 = vtanh.f32 %v1988_v29  ;;  %v4092_v31 = vpop.f32.mrb[191].mxu0  ;;  %v4313_v32 = vpop.f32.mrb[83].mxu1  ;;  %4471 = vmatmul.mubr.msk.f32.gmra.mrb[188].mxu1 %vm1341_vm2, %v1310_v27 }
 0x25a   :  { %v2804_v33 = vpop.permute.xlu0 %2803  ;;  %4473 = vmatprep.mubr.msk.f32.mxu1 %vm4829_vm0, %v4830_v3 }
 0x25b   :  { %v4655_v34 = vpop.eup %4654  ;;  %v1311_v35 = vmax.f32 %v1068_v30, 0.0  ;;  %3168 = vst.msk [vmem:[%s7270_s3 + $0x50] sm:$0xff] %vm2407_vm3, %v2804_v33 }
 0x25c   :  { %2861 = vrot.lane.b32.xlu1 %v4655_v34, %s4831_s15  ;;  %v1072_v36 = vpop.f32.mrb[192].mxu0  ;;  %v1993_v37 = vpop.f32.mrb[84].mxu1 }
 0x25d   :  { %v1073_v1 = vadd.f32 %v6249_v21, %v1072_v36  ;;  %2450 = vst.msk [vmem:[%s7269_s2 + $0x150] sm:$0xff] %vm2407_vm3, %v1993_v37  ;;  %4660 = vtanh.f32 %v1993_v37  ;;  %v4095_v38 = vpop.f32.mrb[193].mxu0  ;;  %v4316_v39 = vpop.f32.mrb[85].mxu1  ;;  %4474 = vmatmul.mubr.msk.f32.gmra.mrb[190].mxu1 %vm1341_vm2, %v1311_v35 }
 0x25e   :  { %v2806_v40 = vpop.permute.xlu1 %2805  ;;  %4476 = vmatprep.mubr.msk.f32.mxu1 %vm4829_vm0, %v4830_v3 }
 0x25f   :  { %v4657_v42 = vpop.eup %4656  ;;  %v1312_v43 = vmax.f32 %v1073_v1, 0.0  ;;  %3169 = vst.msk [vmem:[%s7270_s3 + $0x58] sm:$0xff] %vm2407_vm3, %v2806_v40 }
 0x260   :  { %2863 = vrot.lane.b32.xlu0 %v4657_v42, %s4831_s15  ;;  %v1077_v44 = vpop.f32.mrb[194].mxu0  ;;  %v1998_v45 = vpop.f32.mrb[86].mxu1 }
 0x261   :  { %v1078_v46 = vadd.f32 %v6249_v21, %v1077_v44  ;;  %2451 = vst.msk [vmem:[%s7269_s2 + $0x158] sm:$0xff] %vm2407_vm3, %v1998_v45  ;;  %4662 = vtanh.f32 %v1998_v45  ;;  %v4098_v47 = vpop.f32.mrb[195].mxu0  ;;  %v4319_v48 = vpop.f32.mrb[87].mxu1  ;;  %4477 = vmatmul.mubr.msk.f32.gmra.mrb[192].mxu1 %vm1341_vm2, %v1312_v43 }
 0x262   :  { %v2808_v49 = vpop.permute.xlu0 %2807  ;;  %4479 = vmatprep.mubr.msk.f32.mxu1 %vm4829_vm0, %v4830_v3 }
 0x263   :  { %v4659_v50 = vpop.eup %4658  ;;  %v1313_v51 = vmax.f32 %v1078_v46, 0.0  ;;  %3170 = vst.msk [vmem:[%s7270_s3 + $0x60] sm:$0xff] %vm2407_vm3, %v2808_v49 }
 0x264   :  { %2865 = vrot.lane.b32.xlu1 %v4659_v50, %s4831_s15  ;;  %v1082_v52 = vpop.f32.mrb[196].mxu0  ;;  %v2003_v53 = vpop.f32.mrb[88].mxu1 }
 0x265   :  { %v1083_v54 = vadd.f32 %v6249_v21, %v1082_v52  ;;  %2452 = vst.msk [vmem:[%s7269_s2 + $0x160] sm:$0xff] %vm2407_vm3, %v2003_v53  ;;  %4664 = vtanh.f32 %v2003_v53  ;;  %v4101_v55 = vpop.f32.mrb[197].mxu0  ;;  %v4322_v56 = vpop.f32.mrb[89].mxu1  ;;  %4480 = vmatmul.mubr.msk.f32.gmra.mrb[194].mxu1 %vm1341_vm2, %v1313_v51 }
 0x266   :  { %v2810_v57 = vpop.permute.xlu1 %2809  ;;  %4482 = vmatprep.mubr.msk.f32.mxu1 %vm4829_vm0, %v4830_v3 }
 0x267   :  { %v4661_v58 = vpop.eup %4660  ;;  %v1314_v59 = vmax.f32 %v1083_v54, 0.0  ;;  %3171 = vst.msk [vmem:[%s7270_s3 + $0x68] sm:$0xff] %vm2407_vm3, %v2810_v57 }
 0x268   :  { %2867 = vrot.lane.b32.xlu0 %v4661_v58, %s4831_s15  ;;  %v1087_v60 = vpop.f32.mrb[198].mxu0  ;;  %v2008_v61 = vpop.f32.mrb[90].mxu1 }
 0x269   :  { %v1088_v62 = vadd.f32 %v6249_v21, %v1087_v60  ;;  %2453 = vst.msk [vmem:[%s7269_s2 + $0x168] sm:$0xff] %vm2407_vm3, %v2008_v61  ;;  %4666 = vtanh.f32 %v2008_v61  ;;  %v4104_v63 = vpop.f32.mrb[199].mxu0  ;;  %v4325_v0 = vpop.f32.mrb[91].mxu1  ;;  %4483 = vmatmul.mubr.msk.f32.gmra.mrb[196].mxu1 %vm1341_vm2, %v1314_v59 }
 0x26a   :  { %v2812_v2 = vpop.permute.xlu0 %2811  ;;  %4485 = vmatprep.mubr.msk.f32.mxu1 %vm4829_vm0, %v4830_v3 }
 0x26b   :  { %v4663_v4 = vpop.eup %4662  ;;  %v1315_v5 = vmax.f32 %v1088_v62, 0.0  ;;  %3172 = vst.msk [vmem:[%s7270_s3 + $0x70] sm:$0xff] %vm2407_vm3, %v2812_v2 }
 0x26c   :  { %2869 = vrot.lane.b32.xlu1 %v4663_v4, %s4831_s15  ;;  %v1092_v6 = vpop.f32.mrb[200].mxu0  ;;  %v2013_v7 = vpop.f32.mrb[92].mxu1 }
 0x26d   :  { %v1093_v8 = vadd.f32 %v6249_v21, %v1092_v6  ;;  %2454 = vst.msk [vmem:[%s7269_s2 + $0x170] sm:$0xff] %vm2407_vm3, %v2013_v7  ;;  %4668 = vtanh.f32 %v2013_v7  ;;  %v4107_v9 = vpop.f32.mrb[201].mxu0  ;;  %v4328_v10 = vpop.f32.mrb[93].mxu1  ;;  %4486 = vmatmul.mubr.msk.f32.gmra.mrb[198].mxu1 %vm1341_vm2, %v1315_v5 }
 0x26e   :  { %v2814_v11 = vpop.permute.xlu1 %2813  ;;  %4488 = vmatprep.mubr.msk.f32.mxu1 %vm4829_vm0, %v4830_v3 }
 0x26f   :  { %v4665_v12 = vpop.eup %4664  ;;  %v1316_v13 = vmax.f32 %v1093_v8, 0.0  ;;  %3173 = vst.msk [vmem:[%s7270_s3 + $0x78] sm:$0xff] %vm2407_vm3, %v2814_v11 }
 0x270   :  { %2871 = vrot.lane.b32.xlu0 %v4665_v12, %s4831_s15  ;;  %v1097_v14 = vpop.f32.mrb[202].mxu0  ;;  %v2018_v15 = vpop.f32.mrb[94].mxu1 }
 0x271   :  { %v1098_v16 = vadd.f32 %v6249_v21, %v1097_v14  ;;  %2455 = vst.msk [vmem:[%s7269_s2 + $0x178] sm:$0xff] %vm2407_vm3, %v2018_v15  ;;  %4670 = vtanh.f32 %v2018_v15  ;;  %v4110_v17 = vpop.f32.mrb[203].mxu0  ;;  %v4331_v18 = vpop.f32.mrb[95].mxu1  ;;  %4489 = vmatmul.mubr.msk.f32.gmra.mrb[200].mxu1 %vm1341_vm2, %v1316_v13 }
 0x272   :  { %v2816_v19 = vpop.permute.xlu0 %2815  ;;  %4491 = vmatprep.mubr.msk.f32.mxu1 %vm4829_vm0, %v4830_v3 }
 0x273   :  { %v4667_v41 = vpop.eup %4666  ;;  %v1317_v20 = vmax.f32 %v1098_v16, 0.0  ;;  %3174 = vst.msk [vmem:[%s7270_s3 + $0x80] sm:$0xff] %vm2407_vm3, %v2816_v19 }
 0x274   :  { %2873 = vrot.lane.b32.xlu1 %v4667_v41, %s4831_s15  ;;  %v1102_v22 = vpop.f32.mrb[204].mxu0  ;;  %v2023_v23 = vpop.f32.mrb[96].mxu1 }
 0x275   :  { %v1103_v24 = vadd.f32 %v6249_v21, %v1102_v22  ;;  %2456 = vst.msk [vmem:[%s7269_s2 + $0x180] sm:$0xff] %vm2407_vm3, %v2023_v23  ;;  %4672 = vtanh.f32 %v2023_v23  ;;  %v4113_v25 = vpop.f32.mrb[205].mxu0  ;;  %v4334_v26 = vpop.f32.mrb[97].mxu1  ;;  %4492 = vmatmul.mubr.msk.f32.gmra.mrb[202].mxu1 %vm1341_vm2, %v1317_v20 }
 0x276   :  { %v2818_v27 = vpop.permute.xlu1 %2817  ;;  %4494 = vmatprep.mubr.msk.f32.mxu1 %vm4829_vm0, %v4830_v3 }
 0x277   :  { %v4669_v28 = vpop.eup %4668  ;;  %v1318_v29 = vmax.f32 %v1103_v24, 0.0  ;;  %3175 = vst.msk [vmem:[%s7270_s3 + $0x88] sm:$0xff] %vm2407_vm3, %v2818_v27 }
 0x278   :  { %2875 = vrot.lane.b32.xlu0 %v4669_v28, %s4831_s15  ;;  %v1107_v30 = vpop.f32.mrb[206].mxu0  ;;  %v2028_v31 = vpop.f32.mrb[98].mxu1 }
 0x279   :  { %v1108_v32 = vadd.f32 %v6249_v21, %v1107_v30  ;;  %2457 = vst.msk [vmem:[%s7269_s2 + $0x188] sm:$0xff] %vm2407_vm3, %v2028_v31  ;;  %4674 = vtanh.f32 %v2028_v31  ;;  %v4116_v33 = vpop.f32.mrb[207].mxu0  ;;  %v4337_v34 = vpop.f32.mrb[99].mxu1  ;;  %4495 = vmatmul.mubr.msk.f32.gmra.mrb[204].mxu1 %vm1341_vm2, %v1318_v29 }
 0x27a   :  { %v2820_v35 = vpop.permute.xlu0 %2819  ;;  %4497 = vmatprep.mubr.msk.f32.mxu1 %vm4829_vm0, %v4830_v3 }
 0x27b   :  { %v4671_v36 = vpop.eup %4670  ;;  %v1319_v37 = vmax.f32 %v1108_v32, 0.0  ;;  %3176 = vst.msk [vmem:[%s7270_s3 + $0x90] sm:$0xff] %vm2407_vm3, %v2820_v35 }
 0x27c   :  { %2877 = vrot.lane.b32.xlu1 %v4671_v36, %s4831_s15  ;;  %v1112_v1 = vpop.f32.mrb[208].mxu0  ;;  %v2033_v38 = vpop.f32.mrb[100].mxu1 }
 0x27d   :  { %v1113_v39 = vadd.f32 %v6249_v21, %v1112_v1  ;;  %2458 = vst.msk [vmem:[%s7269_s2 + $0x190] sm:$0xff] %vm2407_vm3, %v2033_v38  ;;  %4676 = vtanh.f32 %v2033_v38  ;;  %v4119_v40 = vpop.f32.mrb[209].mxu0  ;;  %v4340_v42 = vpop.f32.mrb[101].mxu1  ;;  %4498 = vmatmul.mubr.msk.f32.gmra.mrb[206].mxu1 %vm1341_vm2, %v1319_v37 }
 0x27e   :  { %v2822_v43 = vpop.permute.xlu1 %2821  ;;  %4500 = vmatprep.mubr.msk.f32.mxu1 %vm4829_vm0, %v4830_v3 }
 0x27f   :  { %v4673_v44 = vpop.eup %4672  ;;  %v1320_v45 = vmax.f32 %v1113_v39, 0.0  ;;  %3177 = vst.msk [vmem:[%s7270_s3 + $0x98] sm:$0xff] %vm2407_vm3, %v2822_v43 }
 0x280   :  { %2879 = vrot.lane.b32.xlu0 %v4673_v44, %s4831_s15  ;;  %v1117_v46 = vpop.f32.mrb[210].mxu0  ;;  %v2038_v47 = vpop.f32.mrb[102].mxu1 }
 0x281   :  { %v1118_v48 = vadd.f32 %v6249_v21, %v1117_v46  ;;  %2459 = vst.msk [vmem:[%s7269_s2 + $0x198] sm:$0xff] %vm2407_vm3, %v2038_v47  ;;  %4678 = vtanh.f32 %v2038_v47  ;;  %v4122_v49 = vpop.f32.mrb[211].mxu0  ;;  %v4343_v50 = vpop.f32.mrb[103].mxu1  ;;  %4501 = vmatmul.mubr.msk.f32.gmra.mrb[208].mxu1 %vm1341_vm2, %v1320_v45 }
 0x282   :  { %v2824_v51 = vpop.permute.xlu0 %2823  ;;  %4503 = vmatprep.mubr.msk.f32.mxu1 %vm4829_vm0, %v4830_v3 }
 0x283   :  { %v4675_v52 = vpop.eup %4674  ;;  %v1321_v53 = vmax.f32 %v1118_v48, 0.0  ;;  %3178 = vst.msk [vmem:[%s7270_s3 + $0xa0] sm:$0xff] %vm2407_vm3, %v2824_v51 }
 0x284   :  { %2881 = vrot.lane.b32.xlu1 %v4675_v52, %s4831_s15  ;;  %v1122_v54 = vpop.f32.mrb[212].mxu0  ;;  %v2043_v55 = vpop.f32.mrb[104].mxu1 }
 0x285   :  { %v1123_v56 = vadd.f32 %v6249_v21, %v1122_v54  ;;  %2460 = vst.msk [vmem:[%s7269_s2 + $0x1a0] sm:$0xff] %vm2407_vm3, %v2043_v55  ;;  %4680 = vtanh.f32 %v2043_v55  ;;  %v4125_v57 = vpop.f32.mrb[213].mxu0  ;;  %v4346_v58 = vpop.f32.mrb[105].mxu1  ;;  %4504 = vmatmul.mubr.msk.f32.gmra.mrb[210].mxu1 %vm1341_vm2, %v1321_v53 }
 0x286   :  { %v2826_v59 = vpop.permute.xlu1 %2825  ;;  %4506 = vmatprep.mubr.msk.f32.mxu1 %vm4829_vm0, %v4830_v3 }
 0x287   :  { %v4677_v60 = vpop.eup %4676  ;;  %v1322_v61 = vmax.f32 %v1123_v56, 0.0  ;;  %3179 = vst.msk [vmem:[%s7270_s3 + $0xa8] sm:$0xff] %vm2407_vm3, %v2826_v59 }
 0x288   :  { %2883 = vrot.lane.b32.xlu0 %v4677_v60, %s4831_s15  ;;  %v1127_v62 = vpop.f32.mrb[214].mxu0  ;;  %v2048_v63 = vpop.f32.mrb[106].mxu1 }
 0x289   :  { %v1128_v0 = vadd.f32 %v6249_v21, %v1127_v62  ;;  %2461 = vst.msk [vmem:[%s7269_s2 + $0x1a8] sm:$0xff] %vm2407_vm3, %v2048_v63  ;;  %4682 = vtanh.f32 %v2048_v63  ;;  %v4128_v2 = vpop.f32.mrb[215].mxu0  ;;  %v4349_v4 = vpop.f32.mrb[107].mxu1  ;;  %4507 = vmatmul.mubr.msk.f32.gmra.mrb[212].mxu1 %vm1341_vm2, %v1322_v61 }
 0x28a   :  { %v2828_v5 = vpop.permute.xlu0 %2827  ;;  %4509 = vmatprep.mubr.msk.f32.mxu1 %vm4829_vm0, %v4830_v3 }
 0x28b   :  { %v4679_v6 = vpop.eup %4678  ;;  %v1323_v7 = vmax.f32 %v1128_v0, 0.0  ;;  %3180 = vst.msk [vmem:[%s7270_s3 + $0xb0] sm:$0xff] %vm2407_vm3, %v2828_v5 }
 0x28c   :  { %2885 = vrot.lane.b32.xlu1 %v4679_v6, %s4831_s15  ;;  %v1132_v8 = vpop.f32.mrb[216].mxu0  ;;  %v2053_v9 = vpop.f32.mrb[108].mxu1 }
 0x28d   :  { %v1133_v10 = vadd.f32 %v6249_v21, %v1132_v8  ;;  %2462 = vst.msk [vmem:[%s7269_s2 + $0x1b0] sm:$0xff] %vm2407_vm3, %v2053_v9  ;;  %4684 = vtanh.f32 %v2053_v9  ;;  %v4131_v11 = vpop.f32.mrb[217].mxu0  ;;  %v4352_v12 = vpop.f32.mrb[109].mxu1  ;;  %4510 = vmatmul.mubr.msk.f32.gmra.mrb[214].mxu1 %vm1341_vm2, %v1323_v7 }
 0x28e   :  { %v2830_v13 = vpop.permute.xlu1 %2829  ;;  %4512 = vmatprep.mubr.msk.f32.mxu1 %vm4829_vm0, %v4830_v3 }
 0x28f   :  { %v4681_v14 = vpop.eup %4680  ;;  %v1324_v15 = vmax.f32 %v1133_v10, 0.0  ;;  %3181 = vst.msk [vmem:[%s7270_s3 + $0xb8] sm:$0xff] %vm2407_vm3, %v2830_v13 }
 0x290   :  { %2887 = vrot.lane.b32.xlu0 %v4681_v14, %s4831_s15  ;;  %v1137_v16 = vpop.f32.mrb[218].mxu0  ;;  %v2058_v17 = vpop.f32.mrb[110].mxu1 }
 0x291   :  { %v1138_v18 = vadd.f32 %v6249_v21, %v1137_v16  ;;  %2463 = vst.msk [vmem:[%s7269_s2 + $0x1b8] sm:$0xff] %vm2407_vm3, %v2058_v17  ;;  %4686 = vtanh.f32 %v2058_v17  ;;  %v4134_v19 = vpop.f32.mrb[219].mxu0  ;;  %v4355_v41 = vpop.f32.mrb[111].mxu1  ;;  %4513 = vmatmul.mubr.msk.f32.gmra.mrb[216].mxu1 %vm1341_vm2, %v1324_v15 }
 0x292   :  { %v2832_v20 = vpop.permute.xlu0 %2831  ;;  %4515 = vmatprep.mubr.msk.f32.mxu1 %vm4829_vm0, %v4830_v3 }
 0x293   :  { %v4683_v22 = vpop.eup %4682  ;;  %v1325_v23 = vmax.f32 %v1138_v18, 0.0  ;;  %3182 = vst.msk [vmem:[%s7270_s3 + $0xc0] sm:$0xff] %vm2407_vm3, %v2832_v20 }
 0x294   :  { %2889 = vrot.lane.b32.xlu1 %v4683_v22, %s4831_s15  ;;  %v1142_v24 = vpop.f32.mrb[220].mxu0  ;;  %v2063_v25 = vpop.f32.mrb[112].mxu1 }
 0x295   :  { %v1143_v26 = vadd.f32 %v6249_v21, %v1142_v24  ;;  %2464 = vst.msk [vmem:[%s7269_s2 + $0x1c0] sm:$0xff] %vm2407_vm3, %v2063_v25  ;;  %4688 = vtanh.f32 %v2063_v25  ;;  %v4137_v27 = vpop.f32.mrb[221].mxu0  ;;  %v4358_v28 = vpop.f32.mrb[113].mxu1  ;;  %4516 = vmatmul.mubr.msk.f32.gmra.mrb[218].mxu1 %vm1341_vm2, %v1325_v23 }
 0x296   :  { %v2834_v29 = vpop.permute.xlu1 %2833  ;;  %4518 = vmatprep.mubr.msk.f32.mxu1 %vm4829_vm0, %v4830_v3 }
 0x297   :  { %v4685_v30 = vpop.eup %4684  ;;  %v1326_v31 = vmax.f32 %v1143_v26, 0.0  ;;  %3183 = vst.msk [vmem:[%s7270_s3 + $0xc8] sm:$0xff] %vm2407_vm3, %v2834_v29 }
 0x298   :  { %2891 = vrot.lane.b32.xlu0 %v4685_v30, %s4831_s15  ;;  %v1147_v32 = vpop.f32.mrb[222].mxu0  ;;  %v2068_v33 = vpop.f32.mrb[114].mxu1 }
 0x299   :  { %v1148_v34 = vadd.f32 %v6249_v21, %v1147_v32  ;;  %2465 = vst.msk [vmem:[%s7269_s2 + $0x1c8] sm:$0xff] %vm2407_vm3, %v2068_v33  ;;  %4690 = vtanh.f32 %v2068_v33  ;;  %v4140_v35 = vpop.f32.mrb[223].mxu0  ;;  %v4361_v36 = vpop.f32.mrb[115].mxu1  ;;  %4519 = vmatmul.mubr.msk.f32.gmra.mrb[220].mxu1 %vm1341_vm2, %v1326_v31 }
 0x29a   :  { %v2836_v37 = vpop.permute.xlu0 %2835  ;;  %4521 = vmatprep.mubr.msk.f32.mxu1 %vm4829_vm0, %v4830_v3 }
 0x29b   :  { %v4687_v1 = vpop.eup %4686  ;;  %v1327_v38 = vmax.f32 %v1148_v34, 0.0  ;;  %3184 = vst.msk [vmem:[%s7270_s3 + $0xd0] sm:$0xff] %vm2407_vm3, %v2836_v37 }
 0x29c   :  { %2893 = vrot.lane.b32.xlu1 %v4687_v1, %s4831_s15  ;;  %v1152_v39 = vpop.f32.mrb[224].mxu0  ;;  %v2073_v40 = vpop.f32.mrb[116].mxu1 }
 0x29d   :  { %v1153_v42 = vadd.f32 %v6249_v21, %v1152_v39  ;;  %2466 = vst.msk [vmem:[%s7269_s2 + $0x1d0] sm:$0xff] %vm2407_vm3, %v2073_v40  ;;  %4692 = vtanh.f32 %v2073_v40  ;;  %v4143_v43 = vpop.f32.mrb[225].mxu0  ;;  %v4364_v44 = vpop.f32.mrb[117].mxu1  ;;  %4522 = vmatmul.mubr.msk.f32.gmra.mrb[222].mxu1 %vm1341_vm2, %v1327_v38 }
 0x29e   :  { %v2838_v45 = vpop.permute.xlu1 %2837  ;;  %4524 = vmatprep.mubr.msk.f32.mxu1 %vm4829_vm0, %v4830_v3 }
 0x29f   :  { %v4689_v46 = vpop.eup %4688  ;;  %v1328_v47 = vmax.f32 %v1153_v42, 0.0  ;;  %3185 = vst.msk [vmem:[%s7270_s3 + $0xd8] sm:$0xff] %vm2407_vm3, %v2838_v45 }
 0x2a0   :  { %2895 = vrot.lane.b32.xlu0 %v4689_v46, %s4831_s15  ;;  %v1157_v48 = vpop.f32.mrb[226].mxu0  ;;  %v2078_v49 = vpop.f32.mrb[118].mxu1 }
 0x2a1   :  { %v1158_v50 = vadd.f32 %v6249_v21, %v1157_v48  ;;  %2467 = vst.msk [vmem:[%s7269_s2 + $0x1d8] sm:$0xff] %vm2407_vm3, %v2078_v49  ;;  %4694 = vtanh.f32 %v2078_v49  ;;  %v4146_v51 = vpop.f32.mrb[227].mxu0  ;;  %v4367_v52 = vpop.f32.mrb[119].mxu1  ;;  %4525 = vmatmul.mubr.msk.f32.gmra.mrb[224].mxu1 %vm1341_vm2, %v1328_v47 }
 0x2a2   :  { %v2840_v53 = vpop.permute.xlu0 %2839  ;;  %4527 = vmatprep.mubr.msk.f32.mxu1 %vm4829_vm0, %v4830_v3 }
 0x2a3   :  { %v4691_v54 = vpop.eup %4690  ;;  %v1329_v55 = vmax.f32 %v1158_v50, 0.0  ;;  %3186 = vst.msk [vmem:[%s7270_s3 + $0xe0] sm:$0xff] %vm2407_vm3, %v2840_v53 }
 0x2a4   :  { %2897 = vrot.lane.b32.xlu1 %v4691_v54, %s4831_s15  ;;  %v1162_v56 = vpop.f32.mrb[228].mxu0  ;;  %v2083_v57 = vpop.f32.mrb[120].mxu1 }
 0x2a5   :  { %v1163_v58 = vadd.f32 %v6249_v21, %v1162_v56  ;;  %2468 = vst.msk [vmem:[%s7269_s2 + $0x1e0] sm:$0xff] %vm2407_vm3, %v2083_v57  ;;  %4696 = vtanh.f32 %v2083_v57  ;;  %v4149_v59 = vpop.f32.mrb[229].mxu0  ;;  %v4370_v60 = vpop.f32.mrb[121].mxu1  ;;  %4528 = vmatmul.mubr.msk.f32.gmra.mrb[226].mxu1 %vm1341_vm2, %v1329_v55 }
 0x2a6   :  { %v2842_v61 = vpop.permute.xlu1 %2841  ;;  %4530 = vmatprep.mubr.msk.f32.mxu1 %vm4829_vm0, %v4830_v3 }
 0x2a7   :  { %v4693_v62 = vpop.eup %4692  ;;  %v1330_v63 = vmax.f32 %v1163_v58, 0.0  ;;  %3187 = vst.msk [vmem:[%s7270_s3 + $0xe8] sm:$0xff] %vm2407_vm3, %v2842_v61 }
 0x2a8   :  { %2899 = vrot.lane.b32.xlu0 %v4693_v62, %s4831_s15  ;;  %v1167_v0 = vpop.f32.mrb[230].mxu0  ;;  %v2088_v2 = vpop.f32.mrb[122].mxu1 }
 0x2a9   :  { %v1168_v4 = vadd.f32 %v6249_v21, %v1167_v0  ;;  %2469 = vst.msk [vmem:[%s7269_s2 + $0x1e8] sm:$0xff] %vm2407_vm3, %v2088_v2  ;;  %4698 = vtanh.f32 %v2088_v2  ;;  %v4152_v5 = vpop.f32.mrb[231].mxu0  ;;  %v4373_v6 = vpop.f32.mrb[123].mxu1  ;;  %4531 = vmatmul.mubr.msk.f32.gmra.mrb[228].mxu1 %vm1341_vm2, %v1330_v63 }
 0x2aa   :  { %v2844_v7 = vpop.permute.xlu0 %2843  ;;  %4533 = vmatprep.mubr.msk.f32.mxu1 %vm4829_vm0, %v4830_v3 }
 0x2ab   :  { %v4695_v8 = vpop.eup %4694  ;;  %v1331_v9 = vmax.f32 %v1168_v4, 0.0  ;;  %3188 = vst.msk [vmem:[%s7270_s3 + $0xf0] sm:$0xff] %vm2407_vm3, %v2844_v7 }
 0x2ac   :  { %2901 = vrot.lane.b32.xlu1 %v4695_v8, %s4831_s15  ;;  %v1172_v10 = vpop.f32.mrb[232].mxu0  ;;  %v2093_v11 = vpop.f32.mrb[124].mxu1 }
 0x2ad   :  { %v1173_v12 = vadd.f32 %v6249_v21, %v1172_v10  ;;  %2470 = vst.msk [vmem:[%s7269_s2 + $0x1f0] sm:$0xff] %vm2407_vm3, %v2093_v11  ;;  %4700 = vtanh.f32 %v2093_v11  ;;  %v4155_v13 = vpop.f32.mrb[233].mxu0  ;;  %v4376_v14 = vpop.f32.mrb[125].mxu1  ;;  %4534 = vmatmul.mubr.msk.f32.gmra.mrb[230].mxu1 %vm1341_vm2, %v1331_v9 }
 0x2ae   :  { %v2846_v15 = vpop.permute.xlu1 %2845  ;;  %4536 = vmatprep.mubr.msk.f32.mxu1 %vm4829_vm0, %v4830_v3 }
 0x2af   :  { %v4697_v16 = vpop.eup %4696  ;;  %v1332_v17 = vmax.f32 %v1173_v12, 0.0  ;;  %3189 = vst.msk [vmem:[%s7270_s3 + $0xf8] sm:$0xff] %vm2407_vm3, %v2846_v15 }
 0x2b0   :  { %2903 = vrot.lane.b32.xlu0 %v4697_v16, %s4831_s15  ;;  %v1177_v18 = vpop.f32.mrb[234].mxu0  ;;  %v2098_v19 = vpop.f32.mrb[126].mxu1 }
 0x2b1   :  { %v1178_v41 = vadd.f32 %v6249_v21, %v1177_v18  ;;  %2471 = vst.msk [vmem:[%s7269_s2 + $0x1f8] sm:$0xff] %vm2407_vm3, %v2098_v19  ;;  %4702 = vtanh.f32 %v2098_v19  ;;  %v4158_v20 = vpop.f32.mrb[235].mxu0  ;;  %v4379_v22 = vpop.f32.mrb[127].mxu1  ;;  %4537 = vmatmul.mubr.msk.f32.gmra.mrb[232].mxu1 %vm1341_vm2, %v1332_v17 }
 0x2b2   :  { %v2848_v23 = vpop.permute.xlu0 %2847  ;;  %4539 = vmatprep.mubr.msk.f32.mxu1 %vm4829_vm0, %v4830_v3 }
 0x2b3   :  { %v4699_v24 = vpop.eup %4698  ;;  %v1333_v25 = vmax.f32 %v1178_v41, 0.0  ;;  %3190 = vst.msk [vmem:[%s7270_s3 + $0x100] sm:$0xff] %vm2407_vm3, %v2848_v23 }
 0x2b4   :  { %2905 = vrot.lane.b32.xlu1 %v4699_v24, %s4831_s15  ;;  %v1182_v26 = vpop.f32.mrb[236].mxu0  ;;  %v2103_v27 = vpop.f32.mrb[128].mxu1 }
 0x2b5   :  { %v1183_v28 = vadd.f32 %v6249_v21, %v1182_v26  ;;  %2472 = vst.msk [vmem:[%s7269_s2 + $0x200] sm:$0xff] %vm2407_vm3, %v2103_v27  ;;  %4704 = vtanh.f32 %v2103_v27  ;;  %v4161_v29 = vpop.f32.mrb[237].mxu0  ;;  %v4382_v30 = vpop.f32.mrb[129].mxu1  ;;  %4540 = vmatmul.mubr.msk.f32.gmra.mrb[234].mxu1 %vm1341_vm2, %v1333_v25 }
 0x2b6   :  { %v2850_v31 = vpop.permute.xlu1 %2849  ;;  %4542 = vmatprep.mubr.msk.f32.mxu1 %vm4829_vm0, %v4830_v3 }
 0x2b7   :  { %v4701_v32 = vpop.eup %4700  ;;  %v1334_v33 = vmax.f32 %v1183_v28, 0.0  ;;  %3191 = vst.msk [vmem:[%s7270_s3 + $0x108] sm:$0xff] %vm2407_vm3, %v2850_v31 }
 0x2b8   :  { %2907 = vrot.lane.b32.xlu0 %v4701_v32, %s4831_s15  ;;  %v1187_v34 = vpop.f32.mrb[238].mxu0  ;;  %v2108_v35 = vpop.f32.mrb[130].mxu1 }
 0x2b9   :  { %v1188_v36 = vadd.f32 %v6249_v21, %v1187_v34  ;;  %2473 = vst.msk [vmem:[%s7269_s2 + $0x208] sm:$0xff] %vm2407_vm3, %v2108_v35  ;;  %4706 = vtanh.f32 %v2108_v35  ;;  %v4164_v37 = vpop.f32.mrb[239].mxu0  ;;  %v4385_v1 = vpop.f32.mrb[131].mxu1  ;;  %4543 = vmatmul.mubr.msk.f32.gmra.mrb[236].mxu1 %vm1341_vm2, %v1334_v33 }
 0x2ba   :  { %v2852_v38 = vpop.permute.xlu0 %2851  ;;  %4545 = vmatprep.mubr.msk.f32.mxu1 %vm4829_vm0, %v4830_v3 }
 0x2bb   :  { %v4703_v39 = vpop.eup %4702  ;;  %v1335_v40 = vmax.f32 %v1188_v36, 0.0  ;;  %3192 = vst.msk [vmem:[%s7270_s3 + $0x110] sm:$0xff] %vm2407_vm3, %v2852_v38 }
 0x2bc   :  { %2909 = vrot.lane.b32.xlu1 %v4703_v39, %s4831_s15  ;;  %v1192_v42 = vpop.f32.mrb[240].mxu0  ;;  %v2113_v43 = vpop.f32.mrb[132].mxu1 }
 0x2bd   :  { %v1193_v44 = vadd.f32 %v6249_v21, %v1192_v42  ;;  %2474 = vst.msk [vmem:[%s7269_s2 + $0x210] sm:$0xff] %vm2407_vm3, %v2113_v43  ;;  %4708 = vtanh.f32 %v2113_v43  ;;  %v4167_v45 = vpop.f32.mrb[241].mxu0  ;;  %v4388_v46 = vpop.f32.mrb[133].mxu1  ;;  %4546 = vmatmul.mubr.msk.f32.gmra.mrb[238].mxu1 %vm1341_vm2, %v1335_v40 }
 0x2be   :  { %v2854_v47 = vpop.permute.xlu1 %2853  ;;  %4548 = vmatprep.mubr.msk.f32.mxu1 %vm4829_vm0, %v4830_v3 }
 0x2bf   :  { %v4705_v48 = vpop.eup %4704  ;;  %v1336_v49 = vmax.f32 %v1193_v44, 0.0  ;;  %3193 = vst.msk [vmem:[%s7270_s3 + $0x118] sm:$0xff] %vm2407_vm3, %v2854_v47 }
 0x2c0   :  { %2911 = vrot.lane.b32.xlu0 %v4705_v48, %s4831_s15  ;;  %v1197_v50 = vpop.f32.mrb[242].mxu0  ;;  %v2118_v51 = vpop.f32.mrb[134].mxu1 }
 0x2c1   :  { %v1198_v52 = vadd.f32 %v6249_v21, %v1197_v50  ;;  %2475 = vst.msk [vmem:[%s7269_s2 + $0x218] sm:$0xff] %vm2407_vm3, %v2118_v51  ;;  %4710 = vtanh.f32 %v2118_v51  ;;  %v4170_v53 = vpop.f32.mrb[243].mxu0  ;;  %v4391_v54 = vpop.f32.mrb[135].mxu1  ;;  %4549 = vmatmul.mubr.msk.f32.gmra.mrb[240].mxu1 %vm1341_vm2, %v1336_v49 }
 0x2c2   :  { %v2856_v55 = vpop.permute.xlu0 %2855  ;;  %4551 = vmatprep.mubr.msk.f32.mxu1 %vm4829_vm0, %v4830_v3 }
 0x2c3   :  { %v4707_v56 = vpop.eup %4706  ;;  %v1337_v57 = vmax.f32 %v1198_v52, 0.0  ;;  %3194 = vst.msk [vmem:[%s7270_s3 + $0x120] sm:$0xff] %vm2407_vm3, %v2856_v55 }
 0x2c4   :  { %2913 = vrot.lane.b32.xlu1 %v4707_v56, %s4831_s15  ;;  %v1202_v58 = vpop.f32.mrb[244].mxu0  ;;  %v2123_v59 = vpop.f32.mrb[136].mxu1 }
 0x2c5   :  { %v1203_v60 = vadd.f32 %v6249_v21, %v1202_v58  ;;  %2476 = vst.msk [vmem:[%s7269_s2 + $0x220] sm:$0xff] %vm2407_vm3, %v2123_v59  ;;  %4712 = vtanh.f32 %v2123_v59  ;;  %v4173_v61 = vpop.f32.mrb[245].mxu0  ;;  %v4394_v62 = vpop.f32.mrb[137].mxu1  ;;  %4552 = vmatmul.mubr.msk.f32.gmra.mrb[242].mxu1 %vm1341_vm2, %v1337_v57 }
 0x2c6   :  { %v2858_v63 = vpop.permute.xlu1 %2857  ;;  %4554 = vmatprep.mubr.msk.f32.mxu1 %vm4829_vm0, %v4830_v3 }
 0x2c7   :  { %v4709_v0 = vpop.eup %4708  ;;  %v1338_v2 = vmax.f32 %v1203_v60, 0.0  ;;  %3195 = vst.msk [vmem:[%s7270_s3 + $0x128] sm:$0xff] %vm2407_vm3, %v2858_v63 }
 0x2c8   :  { %2915 = vrot.lane.b32.xlu0 %v4709_v0, %s4831_s15  ;;  %v1207_v4 = vpop.f32.mrb[246].mxu0  ;;  %v2128_v5 = vpop.f32.mrb[138].mxu1 }
 0x2c9   :  { %v1208_v6 = vadd.f32 %v6249_v21, %v1207_v4  ;;  %2477 = vst.msk [vmem:[%s7269_s2 + $0x228] sm:$0xff] %vm2407_vm3, %v2128_v5  ;;  %4714 = vtanh.f32 %v2128_v5  ;;  %v4176_v7 = vpop.f32.mrb[247].mxu0  ;;  %v4397_v8 = vpop.f32.mrb[139].mxu1  ;;  %4555 = vmatmul.mubr.msk.f32.gmra.mrb[244].mxu1 %vm1341_vm2, %v1338_v2 }
 0x2ca   :  { %v2860_v9 = vpop.permute.xlu0 %2859  ;;  %4557 = vmatprep.mubr.msk.f32.mxu1 %vm4829_vm0, %v4830_v3 }
 0x2cb   :  { %v4711_v10 = vpop.eup %4710  ;;  %v1339_v11 = vmax.f32 %v1208_v6, 0.0  ;;  %3196 = vst.msk [vmem:[%s7270_s3 + $0x130] sm:$0xff] %vm2407_vm3, %v2860_v9 }
 0x2cc   :  { %2917 = vrot.lane.b32.xlu1 %v4711_v10, %s4831_s15  ;;  %v1212_v12 = vpop.f32.mrb[248].mxu0  ;;  %v2133_v13 = vpop.f32.mrb[140].mxu1 }
 0x2cd   :  { %v1213_v14 = vadd.f32 %v6249_v21, %v1212_v12  ;;  %2478 = vst.msk [vmem:[%s7269_s2 + $0x230] sm:$0xff] %vm2407_vm3, %v2133_v13  ;;  %4716 = vtanh.f32 %v2133_v13  ;;  %v4179_v15 = vpop.f32.mrb[249].mxu0  ;;  %v4400_v16 = vpop.f32.mrb[141].mxu1  ;;  %4558 = vmatmul.mubr.msk.f32.gmra.mrb[246].mxu1 %vm1341_vm2, %v1339_v11 }
 0x2ce   :  { %v2862_v17 = vpop.permute.xlu1 %2861  ;;  %4560 = vmatprep.mubr.msk.f32.mxu1 %vm4829_vm0, %v4830_v3 }
 0x2cf   :  { %v4713_v18 = vpop.eup %4712  ;;  %v1340_v19 = vmax.f32 %v1213_v14, 0.0  ;;  %3197 = vst.msk [vmem:[%s7270_s3 + $0x138] sm:$0xff] %vm2407_vm3, %v2862_v17 }
 0x2d0   :  { %2919 = vrot.lane.b32.xlu0 %v4713_v18, %s4831_s15  ;;  %v2138_v21 = vpop.f32.mrb[142].mxu1 }
 0x2d1   :  { %2479 = vst.msk [vmem:[%s7269_s2 + $0x238] sm:$0xff] %vm2407_vm3, %v2138_v21  ;;  %4718 = vtanh.f32 %v2138_v21  ;;  %v4403_v41 = vpop.f32.mrb[143].mxu1  ;;  %4561 = vmatmul.mubr.msk.f32.gmra.mrb[248].mxu1 %vm1341_vm2, %v1340_v19 }
 0x2d2   :  { %v2864_v3 = vpop.permute.xlu0 %2863 }
 0x2d3   :  { %v4715_v20 = vpop.eup %4714  ;;  %3198 = vst.msk [vmem:[%s7270_s3 + $0x140] sm:$0xff] %vm2407_vm3, %v2864_v3 }
 0x2d4   :  { %2921 = vrot.lane.b32.xlu1 %v4715_v20, %s4831_s15  ;;  %v2143_v22 = vpop.f32.mrb[144].mxu1 }
 0x2d5   :  { %2480 = vst.msk [vmem:[%s7269_s2 + $0x240] sm:$0xff] %vm2407_vm3, %v2143_v22  ;;  %4720 = vtanh.f32 %v2143_v22  ;;  %v4406_v23 = vpop.f32.mrb[145].mxu1 }
 0x2d6   :  { %v2866_v24 = vpop.permute.xlu1 %2865 }
 0x2d7   :  { %v4717_v25 = vpop.eup %4716  ;;  %3199 = vst.msk [vmem:[%s7270_s3 + $0x148] sm:$0xff] %vm2407_vm3, %v2866_v24 }
 0x2d8   :  { %2923 = vrot.lane.b32.xlu0 %v4717_v25, %s4831_s15  ;;  %v2148_v26 = vpop.f32.mrb[146].mxu1 }
 0x2d9   :  { %2481 = vst.msk [vmem:[%s7269_s2 + $0x248] sm:$0xff] %vm2407_vm3, %v2148_v26  ;;  %4722 = vtanh.f32 %v2148_v26  ;;  %v4409_v27 = vpop.f32.mrb[147].mxu1 }
 0x2da   :  { %v2868_v28 = vpop.permute.xlu0 %2867 }
 0x2db   :  { %v4719_v29 = vpop.eup %4718  ;;  %3200 = vst.msk [vmem:[%s7270_s3 + $0x150] sm:$0xff] %vm2407_vm3, %v2868_v28 }
 0x2dc   :  { %2925 = vrot.lane.b32.xlu1 %v4719_v29, %s4831_s15  ;;  %v2153_v30 = vpop.f32.mrb[148].mxu1 }
 0x2dd   :  { %2482 = vst.msk [vmem:[%s7269_s2 + $0x250] sm:$0xff] %vm2407_vm3, %v2153_v30  ;;  %4724 = vtanh.f32 %v2153_v30  ;;  %v4412_v31 = vpop.f32.mrb[149].mxu1 }
 0x2de   :  { %v2870_v32 = vpop.permute.xlu1 %2869 }
 0x2df   :  { %v4721_v33 = vpop.eup %4720  ;;  %3201 = vst.msk [vmem:[%s7270_s3 + $0x158] sm:$0xff] %vm2407_vm3, %v2870_v32 }
 0x2e0   :  { %2927 = vrot.lane.b32.xlu0 %v4721_v33, %s4831_s15  ;;  %v2158_v34 = vpop.f32.mrb[150].mxu1 }
 0x2e1   :  { %2483 = vst.msk [vmem:[%s7269_s2 + $0x258] sm:$0xff] %vm2407_vm3, %v2158_v34  ;;  %4726 = vtanh.f32 %v2158_v34  ;;  %v4415_v35 = vpop.f32.mrb[151].mxu1 }
 0x2e2   :  { %v2872_v36 = vpop.permute.xlu0 %2871 }
 0x2e3   :  { %v4723_v37 = vpop.eup %4722  ;;  %3202 = vst.msk [vmem:[%s7270_s3 + $0x160] sm:$0xff] %vm2407_vm3, %v2872_v36 }
 0x2e4   :  { %2929 = vrot.lane.b32.xlu1 %v4723_v37, %s4831_s15  ;;  %v2163_v1 = vpop.f32.mrb[152].mxu1 }
 0x2e5   :  { %2484 = vst.msk [vmem:[%s7269_s2 + $0x260] sm:$0xff] %vm2407_vm3, %v2163_v1  ;;  %4728 = vtanh.f32 %v2163_v1  ;;  %v4418_v38 = vpop.f32.mrb[153].mxu1 }
 0x2e6   :  { %v2874_v39 = vpop.permute.xlu1 %2873 }
 0x2e7   :  { %v4725_v40 = vpop.eup %4724  ;;  %3203 = vst.msk [vmem:[%s7270_s3 + $0x168] sm:$0xff] %vm2407_vm3, %v2874_v39 }
 0x2e8   :  { %2931 = vrot.lane.b32.xlu0 %v4725_v40, %s4831_s15  ;;  %v2168_v42 = vpop.f32.mrb[154].mxu1 }
 0x2e9   :  { %2485 = vst.msk [vmem:[%s7269_s2 + $0x268] sm:$0xff] %vm2407_vm3, %v2168_v42  ;;  %4730 = vtanh.f32 %v2168_v42  ;;  %v4421_v43 = vpop.f32.mrb[155].mxu1 }
 0x2ea   :  { %v2876_v44 = vpop.permute.xlu0 %2875 }
 0x2eb   :  { %v4727_v45 = vpop.eup %4726  ;;  %3204 = vst.msk [vmem:[%s7270_s3 + $0x170] sm:$0xff] %vm2407_vm3, %v2876_v44 }
 0x2ec   :  { %2933 = vrot.lane.b32.xlu1 %v4727_v45, %s4831_s15  ;;  %v2173_v46 = vpop.f32.mrb[156].mxu1 }
 0x2ed   :  { %2486 = vst.msk [vmem:[%s7269_s2 + $0x270] sm:$0xff] %vm2407_vm3, %v2173_v46  ;;  %4732 = vtanh.f32 %v2173_v46  ;;  %v4424_v47 = vpop.f32.mrb[157].mxu1 }
 0x2ee   :  { %v2878_v48 = vpop.permute.xlu1 %2877 }
 0x2ef   :  { %v4729_v49 = vpop.eup %4728  ;;  %3205 = vst.msk [vmem:[%s7270_s3 + $0x178] sm:$0xff] %vm2407_vm3, %v2878_v48 }
 0x2f0   :  { %2935 = vrot.lane.b32.xlu0 %v4729_v49, %s4831_s15  ;;  %v2178_v50 = vpop.f32.mrb[158].mxu1 }
 0x2f1   :  { %2487 = vst.msk [vmem:[%s7269_s2 + $0x278] sm:$0xff] %vm2407_vm3, %v2178_v50  ;;  %4734 = vtanh.f32 %v2178_v50  ;;  %v4427_v51 = vpop.f32.mrb[159].mxu1 }
 0x2f2   :  { %v2880_v52 = vpop.permute.xlu0 %2879 }
 0x2f3   :  { %v4731_v53 = vpop.eup %4730  ;;  %3206 = vst.msk [vmem:[%s7270_s3 + $0x180] sm:$0xff] %vm2407_vm3, %v2880_v52 }
 0x2f4   :  { %2937 = vrot.lane.b32.xlu1 %v4731_v53, %s4831_s15  ;;  %v2183_v54 = vpop.f32.mrb[160].mxu1 }
 0x2f5   :  { %2488 = vst.msk [vmem:[%s7269_s2 + $0x280] sm:$0xff] %vm2407_vm3, %v2183_v54  ;;  %4736 = vtanh.f32 %v2183_v54  ;;  %v4430_v55 = vpop.f32.mrb[161].mxu1 }
 0x2f6   :  { %v2882_v56 = vpop.permute.xlu1 %2881 }
 0x2f7   :  { %v4733_v57 = vpop.eup %4732  ;;  %3207 = vst.msk [vmem:[%s7270_s3 + $0x188] sm:$0xff] %vm2407_vm3, %v2882_v56 }
 0x2f8   :  { %2939 = vrot.lane.b32.xlu0 %v4733_v57, %s4831_s15  ;;  %v2188_v58 = vpop.f32.mrb[162].mxu1 }
 0x2f9   :  { %2489 = vst.msk [vmem:[%s7269_s2 + $0x288] sm:$0xff] %vm2407_vm3, %v2188_v58  ;;  %4738 = vtanh.f32 %v2188_v58  ;;  %v4433_v59 = vpop.f32.mrb[163].mxu1 }
 0x2fa   :  { %v2884_v60 = vpop.permute.xlu0 %2883 }
 0x2fb   :  { %v4735_v61 = vpop.eup %4734  ;;  %3208 = vst.msk [vmem:[%s7270_s3 + $0x190] sm:$0xff] %vm2407_vm3, %v2884_v60 }
 0x2fc   :  { %2941 = vrot.lane.b32.xlu1 %v4735_v61, %s4831_s15  ;;  %v2193_v62 = vpop.f32.mrb[164].mxu1 }
 0x2fd   :  { %2490 = vst.msk [vmem:[%s7269_s2 + $0x290] sm:$0xff] %vm2407_vm3, %v2193_v62  ;;  %4740 = vtanh.f32 %v2193_v62  ;;  %v4436_v63 = vpop.f32.mrb[165].mxu1 }
 0x2fe   :  { %v2886_v0 = vpop.permute.xlu1 %2885 }
 0x2ff   :  { %v4737_v2 = vpop.eup %4736  ;;  %3209 = vst.msk [vmem:[%s7270_s3 + $0x198] sm:$0xff] %vm2407_vm3, %v2886_v0 }
 0x300   :  { %2943 = vrot.lane.b32.xlu0 %v4737_v2, %s4831_s15  ;;  %v2198_v4 = vpop.f32.mrb[166].mxu1 }
 0x301   :  { %2491 = vst.msk [vmem:[%s7269_s2 + $0x298] sm:$0xff] %vm2407_vm3, %v2198_v4  ;;  %4742 = vtanh.f32 %v2198_v4  ;;  %v4439_v5 = vpop.f32.mrb[167].mxu1 }
 0x302   :  { %v2888_v6 = vpop.permute.xlu0 %2887 }
 0x303   :  { %v4739_v7 = vpop.eup %4738  ;;  %3210 = vst.msk [vmem:[%s7270_s3 + $0x1a0] sm:$0xff] %vm2407_vm3, %v2888_v6 }
 0x304   :  { %2945 = vrot.lane.b32.xlu1 %v4739_v7, %s4831_s15  ;;  %v2203_v8 = vpop.f32.mrb[168].mxu1 }
 0x305   :  { %2492 = vst.msk [vmem:[%s7269_s2 + $0x2a0] sm:$0xff] %vm2407_vm3, %v2203_v8  ;;  %4744 = vtanh.f32 %v2203_v8  ;;  %v4442_v9 = vpop.f32.mrb[169].mxu1 }
 0x306   :  { %v2890_v10 = vpop.permute.xlu1 %2889 }
 0x307   :  { %v4741_v11 = vpop.eup %4740  ;;  %3211 = vst.msk [vmem:[%s7270_s3 + $0x1a8] sm:$0xff] %vm2407_vm3, %v2890_v10 }
 0x308   :  { %2947 = vrot.lane.b32.xlu0 %v4741_v11, %s4831_s15  ;;  %v2208_v12 = vpop.f32.mrb[170].mxu1 }
 0x309   :  { %2493 = vst.msk [vmem:[%s7269_s2 + $0x2a8] sm:$0xff] %vm2407_vm3, %v2208_v12  ;;  %4746 = vtanh.f32 %v2208_v12  ;;  %v4445_v13 = vpop.f32.mrb[171].mxu1 }
 0x30a   :  { %v2892_v14 = vpop.permute.xlu0 %2891 }
 0x30b   :  { %v4743_v15 = vpop.eup %4742  ;;  %3212 = vst.msk [vmem:[%s7270_s3 + $0x1b0] sm:$0xff] %vm2407_vm3, %v2892_v14 }
 0x30c   :  { %2949 = vrot.lane.b32.xlu1 %v4743_v15, %s4831_s15  ;;  %v2213_v16 = vpop.f32.mrb[172].mxu1 }
 0x30d   :  { %2494 = vst.msk [vmem:[%s7269_s2 + $0x2b0] sm:$0xff] %vm2407_vm3, %v2213_v16  ;;  %4748 = vtanh.f32 %v2213_v16  ;;  %v4448_v17 = vpop.f32.mrb[173].mxu1 }
 0x30e   :  { %v2894_v18 = vpop.permute.xlu1 %2893 }
 0x30f   :  { %v4745_v19 = vpop.eup %4744  ;;  %3213 = vst.msk [vmem:[%s7270_s3 + $0x1b8] sm:$0xff] %vm2407_vm3, %v2894_v18 }
 0x310   :  { %2951 = vrot.lane.b32.xlu0 %v4745_v19, %s4831_s15  ;;  %v2218_v21 = vpop.f32.mrb[174].mxu1 }
 0x311   :  { %2495 = vst.msk [vmem:[%s7269_s2 + $0x2b8] sm:$0xff] %vm2407_vm3, %v2218_v21  ;;  %4750 = vtanh.f32 %v2218_v21  ;;  %v4451_v41 = vpop.f32.mrb[175].mxu1 }
 0x312   :  { %v2896_v3 = vpop.permute.xlu0 %2895 }
 0x313   :  { %v4747_v20 = vpop.eup %4746  ;;  %3214 = vst.msk [vmem:[%s7270_s3 + $0x1c0] sm:$0xff] %vm2407_vm3, %v2896_v3 }
 0x314   :  { %2953 = vrot.lane.b32.xlu1 %v4747_v20, %s4831_s15  ;;  %v2223_v22 = vpop.f32.mrb[176].mxu1 }
 0x315   :  { %2496 = vst.msk [vmem:[%s7269_s2 + $0x2c0] sm:$0xff] %vm2407_vm3, %v2223_v22  ;;  %4752 = vtanh.f32 %v2223_v22  ;;  %v4454_v23 = vpop.f32.mrb[177].mxu1 }
 0x316   :  { %v2898_v24 = vpop.permute.xlu1 %2897 }
 0x317   :  { %v4749_v25 = vpop.eup %4748  ;;  %3215 = vst.msk [vmem:[%s7270_s3 + $0x1c8] sm:$0xff] %vm2407_vm3, %v2898_v24 }
 0x318   :  { %2955 = vrot.lane.b32.xlu0 %v4749_v25, %s4831_s15  ;;  %v2228_v26 = vpop.f32.mrb[178].mxu1 }
 0x319   :  { %2497 = vst.msk [vmem:[%s7269_s2 + $0x2c8] sm:$0xff] %vm2407_vm3, %v2228_v26  ;;  %4754 = vtanh.f32 %v2228_v26  ;;  %v4457_v27 = vpop.f32.mrb[179].mxu1 }
 0x31a   :  { %v2900_v28 = vpop.permute.xlu0 %2899 }
 0x31b   :  { %v4751_v29 = vpop.eup %4750  ;;  %3216 = vst.msk [vmem:[%s7270_s3 + $0x1d0] sm:$0xff] %vm2407_vm3, %v2900_v28 }
 0x31c   :  { %2957 = vrot.lane.b32.xlu1 %v4751_v29, %s4831_s15  ;;  %v2233_v30 = vpop.f32.mrb[180].mxu1 }
 0x31d   :  { %2498 = vst.msk [vmem:[%s7269_s2 + $0x2d0] sm:$0xff] %vm2407_vm3, %v2233_v30  ;;  %4756 = vtanh.f32 %v2233_v30  ;;  %v4460_v31 = vpop.f32.mrb[181].mxu1 }
 0x31e   :  { %v2902_v32 = vpop.permute.xlu1 %2901 }
 0x31f   :  { %v4753_v33 = vpop.eup %4752  ;;  %3217 = vst.msk [vmem:[%s7270_s3 + $0x1d8] sm:$0xff] %vm2407_vm3, %v2902_v32 }
 0x320   :  { %2959 = vrot.lane.b32.xlu0 %v4753_v33, %s4831_s15  ;;  %v2238_v34 = vpop.f32.mrb[182].mxu1 }
 0x321   :  { %2499 = vst.msk [vmem:[%s7269_s2 + $0x2d8] sm:$0xff] %vm2407_vm3, %v2238_v34  ;;  %4758 = vtanh.f32 %v2238_v34  ;;  %v4463_v35 = vpop.f32.mrb[183].mxu1 }
 0x322   :  { %v2904_v36 = vpop.permute.xlu0 %2903 }
 0x323   :  { %v4755_v37 = vpop.eup %4754  ;;  %3218 = vst.msk [vmem:[%s7270_s3 + $0x1e0] sm:$0xff] %vm2407_vm3, %v2904_v36 }
 0x324   :  { %2961 = vrot.lane.b32.xlu1 %v4755_v37, %s4831_s15  ;;  %v2243_v1 = vpop.f32.mrb[184].mxu1 }
 0x325   :  { %2500 = vst.msk [vmem:[%s7269_s2 + $0x2e0] sm:$0xff] %vm2407_vm3, %v2243_v1  ;;  %4760 = vtanh.f32 %v2243_v1  ;;  %v4466_v38 = vpop.f32.mrb[185].mxu1 }
 0x326   :  { %v2906_v39 = vpop.permute.xlu1 %2905 }
 0x327   :  { %v4757_v40 = vpop.eup %4756  ;;  %3219 = vst.msk [vmem:[%s7270_s3 + $0x1e8] sm:$0xff] %vm2407_vm3, %v2906_v39 }
 0x328   :  { %2963 = vrot.lane.b32.xlu0 %v4757_v40, %s4831_s15  ;;  %v2248_v42 = vpop.f32.mrb[186].mxu1 }
 0x329   :  { %2501 = vst.msk [vmem:[%s7269_s2 + $0x2e8] sm:$0xff] %vm2407_vm3, %v2248_v42  ;;  %4762 = vtanh.f32 %v2248_v42  ;;  %v4469_v43 = vpop.f32.mrb[187].mxu1 }
 0x32a   :  { %v2908_v44 = vpop.permute.xlu0 %2907 }
 0x32b   :  { %v4759_v45 = vpop.eup %4758  ;;  %3220 = vst.msk [vmem:[%s7270_s3 + $0x1f0] sm:$0xff] %vm2407_vm3, %v2908_v44 }
 0x32c   :  { %2965 = vrot.lane.b32.xlu1 %v4759_v45, %s4831_s15  ;;  %v2253_v46 = vpop.f32.mrb[188].mxu1 }
 0x32d   :  { %2502 = vst.msk [vmem:[%s7269_s2 + $0x2f0] sm:$0xff] %vm2407_vm3, %v2253_v46  ;;  %4764 = vtanh.f32 %v2253_v46  ;;  %v4472_v47 = vpop.f32.mrb[189].mxu1 }
 0x32e   :  { %v2910_v48 = vpop.permute.xlu1 %2909 }
 0x32f   :  { %v4761_v49 = vpop.eup %4760  ;;  %3221 = vst.msk [vmem:[%s7270_s3 + $0x1f8] sm:$0xff] %vm2407_vm3, %v2910_v48 }
 0x330   :  { %2967 = vrot.lane.b32.xlu0 %v4761_v49, %s4831_s15  ;;  %v2258_v50 = vpop.f32.mrb[190].mxu1 }
 0x331   :  { %2503 = vst.msk [vmem:[%s7269_s2 + $0x2f8] sm:$0xff] %vm2407_vm3, %v2258_v50  ;;  %4766 = vtanh.f32 %v2258_v50  ;;  %v4475_v51 = vpop.f32.mrb[191].mxu1 }
 0x332   :  { %v2912_v52 = vpop.permute.xlu0 %2911 }
 0x333   :  { %v4763_v53 = vpop.eup %4762  ;;  %3222 = vst.msk [vmem:[%s7270_s3 + $0x200] sm:$0xff] %vm2407_vm3, %v2912_v52 }
 0x334   :  { %2969 = vrot.lane.b32.xlu1 %v4763_v53, %s4831_s15  ;;  %v2263_v54 = vpop.f32.mrb[192].mxu1 }
 0x335   :  { %2504 = vst.msk [vmem:[%s7269_s2 + $0x300] sm:$0xff] %vm2407_vm3, %v2263_v54  ;;  %4768 = vtanh.f32 %v2263_v54  ;;  %v4478_v55 = vpop.f32.mrb[193].mxu1 }
 0x336   :  { %v2914_v56 = vpop.permute.xlu1 %2913 }
 0x337   :  { %v4765_v57 = vpop.eup %4764  ;;  %3223 = vst.msk [vmem:[%s7270_s3 + $0x208] sm:$0xff] %vm2407_vm3, %v2914_v56 }
 0x338   :  { %2971 = vrot.lane.b32.xlu0 %v4765_v57, %s4831_s15  ;;  %v2268_v58 = vpop.f32.mrb[194].mxu1 }
 0x339   :  { %2505 = vst.msk [vmem:[%s7269_s2 + $0x308] sm:$0xff] %vm2407_vm3, %v2268_v58  ;;  %4770 = vtanh.f32 %v2268_v58  ;;  %v4481_v59 = vpop.f32.mrb[195].mxu1 }
 0x33a   :  { %v2916_v60 = vpop.permute.xlu0 %2915 }
 0x33b   :  { %v4767_v61 = vpop.eup %4766  ;;  %3224 = vst.msk [vmem:[%s7270_s3 + $0x210] sm:$0xff] %vm2407_vm3, %v2916_v60 }
 0x33c   :  { %2973 = vrot.lane.b32.xlu1 %v4767_v61, %s4831_s15  ;;  %v2273_v62 = vpop.f32.mrb[196].mxu1 }
 0x33d   :  { %2506 = vst.msk [vmem:[%s7269_s2 + $0x310] sm:$0xff] %vm2407_vm3, %v2273_v62  ;;  %4772 = vtanh.f32 %v2273_v62  ;;  %v4484_v63 = vpop.f32.mrb[197].mxu1 }
 0x33e   :  { %v2918_v0 = vpop.permute.xlu1 %2917 }
 0x33f   :  { %v4769_v2 = vpop.eup %4768  ;;  %3225 = vst.msk [vmem:[%s7270_s3 + $0x218] sm:$0xff] %vm2407_vm3, %v2918_v0 }
 0x340   :  { %2975 = vrot.lane.b32.xlu0 %v4769_v2, %s4831_s15  ;;  %v2278_v4 = vpop.f32.mrb[198].mxu1 }
 0x341   :  { %2507 = vst.msk [vmem:[%s7269_s2 + $0x318] sm:$0xff] %vm2407_vm3, %v2278_v4  ;;  %4774 = vtanh.f32 %v2278_v4  ;;  %v4487_v5 = vpop.f32.mrb[199].mxu1 }
 0x342   :  { %v2920_v6 = vpop.permute.xlu0 %2919 }
 0x343   :  { %v4771_v7 = vpop.eup %4770  ;;  %3226 = vst.msk [vmem:[%s7270_s3 + $0x220] sm:$0xff] %vm2407_vm3, %v2920_v6 }
 0x344   :  { %2977 = vrot.lane.b32.xlu1 %v4771_v7, %s4831_s15  ;;  %v2283_v8 = vpop.f32.mrb[200].mxu1 }
 0x345   :  { %2508 = vst.msk [vmem:[%s7269_s2 + $0x320] sm:$0xff] %vm2407_vm3, %v2283_v8  ;;  %4776 = vtanh.f32 %v2283_v8  ;;  %v4490_v9 = vpop.f32.mrb[201].mxu1 }
 0x346   :  { %v2922_v10 = vpop.permute.xlu1 %2921 }
 0x347   :  { %v4773_v11 = vpop.eup %4772  ;;  %3227 = vst.msk [vmem:[%s7270_s3 + $0x228] sm:$0xff] %vm2407_vm3, %v2922_v10 }
 0x348   :  { %2979 = vrot.lane.b32.xlu0 %v4773_v11, %s4831_s15  ;;  %v2288_v12 = vpop.f32.mrb[202].mxu1 }
 0x349   :  { %2509 = vst.msk [vmem:[%s7269_s2 + $0x328] sm:$0xff] %vm2407_vm3, %v2288_v12  ;;  %4778 = vtanh.f32 %v2288_v12  ;;  %v4493_v13 = vpop.f32.mrb[203].mxu1 }
 0x34a   :  { %v2924_v14 = vpop.permute.xlu0 %2923 }
 0x34b   :  { %v4775_v15 = vpop.eup %4774  ;;  %3228 = vst.msk [vmem:[%s7270_s3 + $0x230] sm:$0xff] %vm2407_vm3, %v2924_v14 }
 0x34c   :  { %2981 = vrot.lane.b32.xlu1 %v4775_v15, %s4831_s15  ;;  %v2293_v16 = vpop.f32.mrb[204].mxu1 }
 0x34d   :  { %2510 = vst.msk [vmem:[%s7269_s2 + $0x330] sm:$0xff] %vm2407_vm3, %v2293_v16  ;;  %4780 = vtanh.f32 %v2293_v16  ;;  %v4496_v17 = vpop.f32.mrb[205].mxu1 }
 0x34e   :  { %v2926_v18 = vpop.permute.xlu1 %2925 }
 0x34f   :  { %v4777_v19 = vpop.eup %4776  ;;  %3229 = vst.msk [vmem:[%s7270_s3 + $0x238] sm:$0xff] %vm2407_vm3, %v2926_v18 }
 0x350   :  { %2983 = vrot.lane.b32.xlu0 %v4777_v19, %s4831_s15  ;;  %v2298_v21 = vpop.f32.mrb[206].mxu1 }
 0x351   :  { %2511 = vst.msk [vmem:[%s7269_s2 + $0x338] sm:$0xff] %vm2407_vm3, %v2298_v21  ;;  %4782 = vtanh.f32 %v2298_v21  ;;  %v4499_v41 = vpop.f32.mrb[207].mxu1 }
 0x352   :  { %v2928_v3 = vpop.permute.xlu0 %2927 }
 0x353   :  { %v4779_v20 = vpop.eup %4778  ;;  %3230 = vst.msk [vmem:[%s7270_s3 + $0x240] sm:$0xff] %vm2407_vm3, %v2928_v3 }
 0x354   :  { %2985 = vrot.lane.b32.xlu1 %v4779_v20, %s4831_s15  ;;  %v2303_v22 = vpop.f32.mrb[208].mxu1 }
 0x355   :  { %2512 = vst.msk [vmem:[%s7269_s2 + $0x340] sm:$0xff] %vm2407_vm3, %v2303_v22  ;;  %4784 = vtanh.f32 %v2303_v22  ;;  %v4502_v23 = vpop.f32.mrb[209].mxu1 }
 0x356   :  { %v2930_v24 = vpop.permute.xlu1 %2929 }
 0x357   :  { %v4781_v25 = vpop.eup %4780  ;;  %3231 = vst.msk [vmem:[%s7270_s3 + $0x248] sm:$0xff] %vm2407_vm3, %v2930_v24 }
 0x358   :  { %2987 = vrot.lane.b32.xlu0 %v4781_v25, %s4831_s15  ;;  %v2308_v26 = vpop.f32.mrb[210].mxu1 }
 0x359   :  { %2513 = vst.msk [vmem:[%s7269_s2 + $0x348] sm:$0xff] %vm2407_vm3, %v2308_v26  ;;  %4786 = vtanh.f32 %v2308_v26  ;;  %v4505_v27 = vpop.f32.mrb[211].mxu1 }
 0x35a   :  { %v2932_v28 = vpop.permute.xlu0 %2931 }
 0x35b   :  { %v4783_v29 = vpop.eup %4782  ;;  %3232 = vst.msk [vmem:[%s7270_s3 + $0x250] sm:$0xff] %vm2407_vm3, %v2932_v28 }
 0x35c   :  { %2989 = vrot.lane.b32.xlu1 %v4783_v29, %s4831_s15  ;;  %v2313_v30 = vpop.f32.mrb[212].mxu1 }
 0x35d   :  { %2514 = vst.msk [vmem:[%s7269_s2 + $0x350] sm:$0xff] %vm2407_vm3, %v2313_v30  ;;  %4788 = vtanh.f32 %v2313_v30  ;;  %v4508_v31 = vpop.f32.mrb[213].mxu1 }
 0x35e   :  { %v2934_v32 = vpop.permute.xlu1 %2933 }
 0x35f   :  { %v4785_v33 = vpop.eup %4784  ;;  %3233 = vst.msk [vmem:[%s7270_s3 + $0x258] sm:$0xff] %vm2407_vm3, %v2934_v32 }
 0x360   :  { %2991 = vrot.lane.b32.xlu0 %v4785_v33, %s4831_s15  ;;  %v2318_v34 = vpop.f32.mrb[214].mxu1 }
 0x361   :  { %2515 = vst.msk [vmem:[%s7269_s2 + $0x358] sm:$0xff] %vm2407_vm3, %v2318_v34  ;;  %4790 = vtanh.f32 %v2318_v34  ;;  %v4511_v35 = vpop.f32.mrb[215].mxu1 }
 0x362   :  { %v2936_v36 = vpop.permute.xlu0 %2935 }
 0x363   :  { %v4787_v37 = vpop.eup %4786  ;;  %3234 = vst.msk [vmem:[%s7270_s3 + $0x260] sm:$0xff] %vm2407_vm3, %v2936_v36 }
 0x364   :  { %2993 = vrot.lane.b32.xlu1 %v4787_v37, %s4831_s15  ;;  %v2323_v1 = vpop.f32.mrb[216].mxu1 }
 0x365   :  { %2516 = vst.msk [vmem:[%s7269_s2 + $0x360] sm:$0xff] %vm2407_vm3, %v2323_v1  ;;  %4792 = vtanh.f32 %v2323_v1  ;;  %v4514_v38 = vpop.f32.mrb[217].mxu1 }
 0x366   :  { %v2938_v39 = vpop.permute.xlu1 %2937 }
 0x367   :  { %v4789_v40 = vpop.eup %4788  ;;  %3235 = vst.msk [vmem:[%s7270_s3 + $0x268] sm:$0xff] %vm2407_vm3, %v2938_v39 }
 0x368   :  { %2995 = vrot.lane.b32.xlu0 %v4789_v40, %s4831_s15  ;;  %v2328_v42 = vpop.f32.mrb[218].mxu1 }
 0x369   :  { %2517 = vst.msk [vmem:[%s7269_s2 + $0x368] sm:$0xff] %vm2407_vm3, %v2328_v42  ;;  %4794 = vtanh.f32 %v2328_v42  ;;  %v4517_v43 = vpop.f32.mrb[219].mxu1 }
 0x36a   :  { %v2940_v44 = vpop.permute.xlu0 %2939 }
 0x36b   :  { %v4791_v45 = vpop.eup %4790  ;;  %3236 = vst.msk [vmem:[%s7270_s3 + $0x270] sm:$0xff] %vm2407_vm3, %v2940_v44 }
 0x36c   :  { %2997 = vrot.lane.b32.xlu1 %v4791_v45, %s4831_s15  ;;  %v2333_v46 = vpop.f32.mrb[220].mxu1 }
 0x36d   :  { %2518 = vst.msk [vmem:[%s7269_s2 + $0x370] sm:$0xff] %vm2407_vm3, %v2333_v46  ;;  %4796 = vtanh.f32 %v2333_v46  ;;  %v4520_v47 = vpop.f32.mrb[221].mxu1 }
 0x36e   :  { %v2942_v48 = vpop.permute.xlu1 %2941 }
 0x36f   :  { %v4793_v49 = vpop.eup %4792  ;;  %3237 = vst.msk [vmem:[%s7270_s3 + $0x278] sm:$0xff] %vm2407_vm3, %v2942_v48 }
 0x370   :  { %2999 = vrot.lane.b32.xlu0 %v4793_v49, %s4831_s15  ;;  %v2338_v50 = vpop.f32.mrb[222].mxu1 }
 0x371   :  { %2519 = vst.msk [vmem:[%s7269_s2 + $0x378] sm:$0xff] %vm2407_vm3, %v2338_v50  ;;  %4798 = vtanh.f32 %v2338_v50  ;;  %v4523_v51 = vpop.f32.mrb[223].mxu1 }
 0x372   :  { %v2944_v52 = vpop.permute.xlu0 %2943 }
 0x373   :  { %v4795_v53 = vpop.eup %4794  ;;  %3238 = vst.msk [vmem:[%s7270_s3 + $0x280] sm:$0xff] %vm2407_vm3, %v2944_v52 }
 0x374   :  { %3001 = vrot.lane.b32.xlu1 %v4795_v53, %s4831_s15  ;;  %v2343_v54 = vpop.f32.mrb[224].mxu1 }
 0x375   :  { %2520 = vst.msk [vmem:[%s7269_s2 + $0x380] sm:$0xff] %vm2407_vm3, %v2343_v54  ;;  %4800 = vtanh.f32 %v2343_v54  ;;  %v4526_v55 = vpop.f32.mrb[225].mxu1 }
 0x376   :  { %v2946_v56 = vpop.permute.xlu1 %2945 }
 0x377   :  { %v4797_v57 = vpop.eup %4796  ;;  %3239 = vst.msk [vmem:[%s7270_s3 + $0x288] sm:$0xff] %vm2407_vm3, %v2946_v56 }
 0x378   :  { %3003 = vrot.lane.b32.xlu0 %v4797_v57, %s4831_s15  ;;  %v2348_v58 = vpop.f32.mrb[226].mxu1 }
 0x379   :  { %2521 = vst.msk [vmem:[%s7269_s2 + $0x388] sm:$0xff] %vm2407_vm3, %v2348_v58  ;;  %4802 = vtanh.f32 %v2348_v58  ;;  %v4529_v59 = vpop.f32.mrb[227].mxu1 }
 0x37a   :  { %v2948_v60 = vpop.permute.xlu0 %2947 }
 0x37b   :  { %v4799_v61 = vpop.eup %4798  ;;  %3240 = vst.msk [vmem:[%s7270_s3 + $0x290] sm:$0xff] %vm2407_vm3, %v2948_v60 }
 0x37c   :  { %3005 = vrot.lane.b32.xlu1 %v4799_v61, %s4831_s15  ;;  %v2353_v62 = vpop.f32.mrb[228].mxu1 }
 0x37d   :  { %2522 = vst.msk [vmem:[%s7269_s2 + $0x390] sm:$0xff] %vm2407_vm3, %v2353_v62  ;;  %4804 = vtanh.f32 %v2353_v62  ;;  %v4532_v63 = vpop.f32.mrb[229].mxu1 }
 0x37e   :  { %v2950_v0 = vpop.permute.xlu1 %2949 }
 0x37f   :  { %v4801_v2 = vpop.eup %4800  ;;  %3241 = vst.msk [vmem:[%s7270_s3 + $0x298] sm:$0xff] %vm2407_vm3, %v2950_v0 }
 0x380   :  { %3007 = vrot.lane.b32.xlu0 %v4801_v2, %s4831_s15  ;;  %v2358_v4 = vpop.f32.mrb[230].mxu1 }
 0x381   :  { %2523 = vst.msk [vmem:[%s7269_s2 + $0x398] sm:$0xff] %vm2407_vm3, %v2358_v4  ;;  %4806 = vtanh.f32 %v2358_v4  ;;  %v4535_v5 = vpop.f32.mrb[231].mxu1 }
 0x382   :  { %v2952_v6 = vpop.permute.xlu0 %2951 }
 0x383   :  { %v4803_v7 = vpop.eup %4802  ;;  %3242 = vst.msk [vmem:[%s7270_s3 + $0x2a0] sm:$0xff] %vm2407_vm3, %v2952_v6 }
 0x384   :  { %3009 = vrot.lane.b32.xlu1 %v4803_v7, %s4831_s15  ;;  %v2363_v8 = vpop.f32.mrb[232].mxu1 }
 0x385   :  { %2524 = vst.msk [vmem:[%s7269_s2 + $0x3a0] sm:$0xff] %vm2407_vm3, %v2363_v8  ;;  %4808 = vtanh.f32 %v2363_v8  ;;  %v4538_v9 = vpop.f32.mrb[233].mxu1 }
 0x386   :  { %v2954_v10 = vpop.permute.xlu1 %2953 }
 0x387   :  { %v4805_v11 = vpop.eup %4804  ;;  %3243 = vst.msk [vmem:[%s7270_s3 + $0x2a8] sm:$0xff] %vm2407_vm3, %v2954_v10 }
 0x388   :  { %3011 = vrot.lane.b32.xlu0 %v4805_v11, %s4831_s15  ;;  %v2368_v12 = vpop.f32.mrb[234].mxu1 }
 0x389   :  { %2525 = vst.msk [vmem:[%s7269_s2 + $0x3a8] sm:$0xff] %vm2407_vm3, %v2368_v12  ;;  %4810 = vtanh.f32 %v2368_v12  ;;  %v4541_v13 = vpop.f32.mrb[235].mxu1 }
 0x38a   :  { %v2956_v14 = vpop.permute.xlu0 %2955 }
 0x38b   :  { %v4807_v15 = vpop.eup %4806  ;;  %3244 = vst.msk [vmem:[%s7270_s3 + $0x2b0] sm:$0xff] %vm2407_vm3, %v2956_v14 }
 0x38c   :  { %3013 = vrot.lane.b32.xlu1 %v4807_v15, %s4831_s15  ;;  %v2373_v16 = vpop.f32.mrb[236].mxu1 }
 0x38d   :  { %2526 = vst.msk [vmem:[%s7269_s2 + $0x3b0] sm:$0xff] %vm2407_vm3, %v2373_v16  ;;  %4812 = vtanh.f32 %v2373_v16  ;;  %v4544_v17 = vpop.f32.mrb[237].mxu1 }
 0x38e   :  { %v2958_v18 = vpop.permute.xlu1 %2957 }
 0x38f   :  { %v4809_v19 = vpop.eup %4808  ;;  %3245 = vst.msk [vmem:[%s7270_s3 + $0x2b8] sm:$0xff] %vm2407_vm3, %v2958_v18 }
 0x390   :  { %3015 = vrot.lane.b32.xlu0 %v4809_v19, %s4831_s15  ;;  %v2378_v21 = vpop.f32.mrb[238].mxu1 }
 0x391   :  { %2527 = vst.msk [vmem:[%s7269_s2 + $0x3b8] sm:$0xff] %vm2407_vm3, %v2378_v21  ;;  %4814 = vtanh.f32 %v2378_v21  ;;  %v4547_v41 = vpop.f32.mrb[239].mxu1 }
 0x392   :  { %v2960_v3 = vpop.permute.xlu0 %2959 }
 0x393   :  { %v4811_v20 = vpop.eup %4810  ;;  %3246 = vst.msk [vmem:[%s7270_s3 + $0x2c0] sm:$0xff] %vm2407_vm3, %v2960_v3 }
 0x394   :  { %3017 = vrot.lane.b32.xlu1 %v4811_v20, %s4831_s15  ;;  %v2383_v22 = vpop.f32.mrb[240].mxu1 }
 0x395   :  { %2528 = vst.msk [vmem:[%s7269_s2 + $0x3c0] sm:$0xff] %vm2407_vm3, %v2383_v22  ;;  %4816 = vtanh.f32 %v2383_v22  ;;  %v4550_v23 = vpop.f32.mrb[241].mxu1 }
 0x396   :  { %v2962_v24 = vpop.permute.xlu1 %2961 }
 0x397   :  { %v4813_v25 = vpop.eup %4812  ;;  %3247 = vst.msk [vmem:[%s7270_s3 + $0x2c8] sm:$0xff] %vm2407_vm3, %v2962_v24 }
 0x398   :  { %3019 = vrot.lane.b32.xlu0 %v4813_v25, %s4831_s15  ;;  %v2388_v26 = vpop.f32.mrb[242].mxu1 }
 0x399   :  { %2529 = vst.msk [vmem:[%s7269_s2 + $0x3c8] sm:$0xff] %vm2407_vm3, %v2388_v26  ;;  %4818 = vtanh.f32 %v2388_v26  ;;  %v4553_v27 = vpop.f32.mrb[243].mxu1 }
 0x39a   :  { %v2964_v28 = vpop.permute.xlu0 %2963 }
 0x39b   :  { %v4815_v29 = vpop.eup %4814  ;;  %3248 = vst.msk [vmem:[%s7270_s3 + $0x2d0] sm:$0xff] %vm2407_vm3, %v2964_v28 }
 0x39c   :  { %3021 = vrot.lane.b32.xlu1 %v4815_v29, %s4831_s15  ;;  %v2393_v30 = vpop.f32.mrb[244].mxu1 }
 0x39d   :  { %2530 = vst.msk [vmem:[%s7269_s2 + $0x3d0] sm:$0xff] %vm2407_vm3, %v2393_v30  ;;  %4820 = vtanh.f32 %v2393_v30  ;;  %v4556_v31 = vpop.f32.mrb[245].mxu1 }
 0x39e   :  { %v2966_v32 = vpop.permute.xlu1 %2965 }
 0x39f   :  { %v4817_v33 = vpop.eup %4816  ;;  %3249 = vst.msk [vmem:[%s7270_s3 + $0x2d8] sm:$0xff] %vm2407_vm3, %v2966_v32 }
 0x3a0   :  { %3023 = vrot.lane.b32.xlu0 %v4817_v33, %s4831_s15  ;;  %v2398_v34 = vpop.f32.mrb[246].mxu1 }
 0x3a1   :  { %2531 = vst.msk [vmem:[%s7269_s2 + $0x3d8] sm:$0xff] %vm2407_vm3, %v2398_v34  ;;  %4822 = vtanh.f32 %v2398_v34  ;;  %v4559_v35 = vpop.f32.mrb[247].mxu1 }
 0x3a2   :  { %v2968_v36 = vpop.permute.xlu0 %2967 }
 0x3a3   :  { %v4819_v37 = vpop.eup %4818  ;;  %3250 = vst.msk [vmem:[%s7270_s3 + $0x2e0] sm:$0xff] %vm2407_vm3, %v2968_v36 }
 0x3a4   :  { %3025 = vrot.lane.b32.xlu1 %v4819_v37, %s4831_s15  ;;  %v2403_v1 = vpop.f32.mrb[248].mxu1 }
 0x3a5   :  { %2532 = vst.msk [vmem:[%s7269_s2 + $0x3e0] sm:$0xff] %vm2407_vm3, %v2403_v1  ;;  %4824 = vtanh.f32 %v2403_v1  ;;  %v4562_v38 = vpop.f32.mrb[249].mxu1 }
 0x3a6   :  { %v2970_v39 = vpop.permute.xlu1 %2969 }
 0x3a7   :  { %v4821_v40 = vpop.eup %4820  ;;  %3251 = vst.msk [vmem:[%s7270_s3 + $0x2e8] sm:$0xff] %vm2407_vm3, %v2970_v39 }
 0x3a8   :  { %3027 = vrot.lane.b32.xlu0 %v4821_v40, %s4831_s15 }
 0x3aa   :  { %v2972_v42 = vpop.permute.xlu0 %2971 }
 0x3ab   :  { %v4823_v43 = vpop.eup %4822  ;;  %3252 = vst.msk [vmem:[%s7270_s3 + $0x2f0] sm:$0xff] %vm2407_vm3, %v2972_v42 }
 0x3ac   :  { %3029 = vrot.lane.b32.xlu1 %v4823_v43, %s4831_s15 }
 0x3ae   :  { %v2974_v44 = vpop.permute.xlu1 %2973 }
 0x3af   :  { %v4825_v45 = vpop.eup %4824  ;;  %3253 = vst.msk [vmem:[%s7270_s3 + $0x2f8] sm:$0xff] %vm2407_vm3, %v2974_v44 }
 0x3b0   :  { %3031 = vrot.lane.b32.xlu0 %v4825_v45, %s4831_s15 }
 0x3b2   :  { %v2976_v46 = vpop.permute.xlu0 %2975 }
 0x3b3   :  { %3254 = vst.msk [vmem:[%s7270_s3 + $0x300] sm:$0xff] %vm2407_vm3, %v2976_v46 }
 0x3b6   :  { %v2978_v47 = vpop.permute.xlu1 %2977 }
 0x3b7   :  { %3255 = vst.msk [vmem:[%s7270_s3 + $0x308] sm:$0xff] %vm2407_vm3, %v2978_v47 }
 0x3ba   :  { %v2980_v48 = vpop.permute.xlu0 %2979 }
 0x3bb   :  { %3256 = vst.msk [vmem:[%s7270_s3 + $0x310] sm:$0xff] %vm2407_vm3, %v2980_v48 }
 0x3be   :  { %v2982_v49 = vpop.permute.xlu1 %2981 }
 0x3bf   :  { %3257 = vst.msk [vmem:[%s7270_s3 + $0x318] sm:$0xff] %vm2407_vm3, %v2982_v49 }
 0x3c2   :  { %v2984_v50 = vpop.permute.xlu0 %2983 }
 0x3c3   :  { %3258 = vst.msk [vmem:[%s7270_s3 + $0x320] sm:$0xff] %vm2407_vm3, %v2984_v50 }
 0x3c6   :  { %v2986_v51 = vpop.permute.xlu1 %2985 }
 0x3c7   :  { %3259 = vst.msk [vmem:[%s7270_s3 + $0x328] sm:$0xff] %vm2407_vm3, %v2986_v51 }
 0x3ca   :  { %v2988_v52 = vpop.permute.xlu0 %2987 }
 0x3cb   :  { %3260 = vst.msk [vmem:[%s7270_s3 + $0x330] sm:$0xff] %vm2407_vm3, %v2988_v52 }
 0x3ce   :  { %v2990_v53 = vpop.permute.xlu1 %2989 }
 0x3cf   :  { %3261 = vst.msk [vmem:[%s7270_s3 + $0x338] sm:$0xff] %vm2407_vm3, %v2990_v53 }
 0x3d2   :  { %v2992_v54 = vpop.permute.xlu0 %2991 }
 0x3d3   :  { %3262 = vst.msk [vmem:[%s7270_s3 + $0x340] sm:$0xff] %vm2407_vm3, %v2992_v54 }
 0x3d6   :  { %v2994_v55 = vpop.permute.xlu1 %2993 }
 0x3d7   :  { %3263 = vst.msk [vmem:[%s7270_s3 + $0x348] sm:$0xff] %vm2407_vm3, %v2994_v55 }
 0x3da   :  { %v2996_v56 = vpop.permute.xlu0 %2995 }
 0x3db   :  { %3264 = vst.msk [vmem:[%s7270_s3 + $0x350] sm:$0xff] %vm2407_vm3, %v2996_v56 }
 0x3de   :  { %v2998_v57 = vpop.permute.xlu1 %2997 }
 0x3df   :  { %3265 = vst.msk [vmem:[%s7270_s3 + $0x358] sm:$0xff] %vm2407_vm3, %v2998_v57 }
 0x3e2   :  { %v3000_v58 = vpop.permute.xlu0 %2999 }
 0x3e3   :  { %3266 = vst.msk [vmem:[%s7270_s3 + $0x360] sm:$0xff] %vm2407_vm3, %v3000_v58 }
 0x3e6   :  { %v3002_v59 = vpop.permute.xlu1 %3001 }
 0x3e7   :  { %3267 = vst.msk [vmem:[%s7270_s3 + $0x368] sm:$0xff] %vm2407_vm3, %v3002_v59 }
 0x3ea   :  { %v3004_v60 = vpop.permute.xlu0 %3003 }
 0x3eb   :  { %3268 = vst.msk [vmem:[%s7270_s3 + $0x370] sm:$0xff] %vm2407_vm3, %v3004_v60 }
 0x3ee   :  { %v3006_v61 = vpop.permute.xlu1 %3005 }
 0x3ef   :  { %3269 = vst.msk [vmem:[%s7270_s3 + $0x378] sm:$0xff] %vm2407_vm3, %v3006_v61 }
 0x3f2   :  { %v3008_v62 = vpop.permute.xlu0 %3007 }
 0x3f3   :  { %3270 = vst.msk [vmem:[%s7270_s3 + $0x380] sm:$0xff] %vm2407_vm3, %v3008_v62 }
 0x3f6   :  { %v3010_v63 = vpop.permute.xlu1 %3009 }
 0x3f7   :  { %3271 = vst.msk [vmem:[%s7270_s3 + $0x388] sm:$0xff] %vm2407_vm3, %v3010_v63 }
 0x3fa   :  { %v3012_v0 = vpop.permute.xlu0 %3011 }
 0x3fb   :  { %3272 = vst.msk [vmem:[%s7270_s3 + $0x390] sm:$0xff] %vm2407_vm3, %v3012_v0 }
 0x3fe   :  { %v3014_v2 = vpop.permute.xlu1 %3013 }
 0x3ff   :  { %3273 = vst.msk [vmem:[%s7270_s3 + $0x398] sm:$0xff] %vm2407_vm3, %v3014_v2 }
 0x402   :  { %v3016_v4 = vpop.permute.xlu0 %3015 }
 0x403   :  { %3274 = vst.msk [vmem:[%s7270_s3 + $0x3a0] sm:$0xff] %vm2407_vm3, %v3016_v4 }
 0x406   :  { %v3018_v5 = vpop.permute.xlu1 %3017 }
 0x407   :  { %3275 = vst.msk [vmem:[%s7270_s3 + $0x3a8] sm:$0xff] %vm2407_vm3, %v3018_v5 }
 0x40a   :  { %v3020_v6 = vpop.permute.xlu0 %3019 }
 0x40b   :  { %3276 = vst.msk [vmem:[%s7270_s3 + $0x3b0] sm:$0xff] %vm2407_vm3, %v3020_v6 }
 0x40e   :  { %v3022_v7 = vpop.permute.xlu1 %3021 }
 0x40f   :  { %3277 = vst.msk [vmem:[%s7270_s3 + $0x3b8] sm:$0xff] %vm2407_vm3, %v3022_v7 }
 0x412   :  { %v3024_v8 = vpop.permute.xlu0 %3023 }
 0x413   :  { %3278 = vst.msk [vmem:[%s7270_s3 + $0x3c0] sm:$0xff] %vm2407_vm3, %v3024_v8 }
 0x416   :  { %v3026_v9 = vpop.permute.xlu1 %3025 }
 0x417   :  { %3279 = vst.msk [vmem:[%s7270_s3 + $0x3c8] sm:$0xff] %vm2407_vm3, %v3026_v9 }
 0x41a   :  { %v3028_v10 = vpop.permute.xlu0 %3027 }
 0x41b   :  { %3280 = vst.msk [vmem:[%s7270_s3 + $0x3d0] sm:$0xff] %vm2407_vm3, %v3028_v10 }
 0x41e   :  { %v3030_v11 = vpop.permute.xlu1 %3029 }
 0x41f   :  { %3281 = vst.msk [vmem:[%s7270_s3 + $0x3d8] sm:$0xff] %vm2407_vm3, %v3030_v11 }
 0x422   :  { %v3032_v12 = vpop.permute.xlu0 %3031 }
 0x423   :  { %3282 = vst.msk [vmem:[%s7270_s3 + $0x3e0] sm:$0xff] %vm2407_vm3, %v3032_v12 }

</bundles_post_ra>
